<compile_context>
chip_gen: v5e
topology: v5e:2x2
jax: 0.10.0
libtpu: 0.0.40
codegen_flags: <defaults>
</compile_context>

<pallas_src>
import functools

import jax
import jax.numpy as jnp
from jax import lax
from jax.experimental import pallas as pl
from jax.experimental.pallas import tpu as pltpu

EPS = 1e-5


# ----------------------------------------------------------------------------
# in-kernel helpers
# ----------------------------------------------------------------------------
def _conv3x3(xt, w_ref, th, w):
    """xt: (th+2, w+2, C) tile in the matmul dtype; w_ref: (9*C, Cout) weights
    laid out (kh, kw, cin)-major.  Per-kh accumulation: 3 MXU matmuls with
    K = 3*C (no (th*w, 9*C) patch materialisation).  Returns f32 (th*w, Cout).
    """
    c = xt.shape[-1]
    acc = None
    for kh in range(3):
        taps = [xt[kh:kh + th, kw:kw + w, :] for kw in range(3)]
        patch = jnp.concatenate(taps, axis=-1).reshape(th * w, 3 * c)
        part = jnp.dot(patch, w_ref[kh * 3 * c:(kh + 1) * 3 * c, :],
                       preferred_element_type=jnp.float32)
        acc = part if acc is None else acc + part
    return acc


def _accumulate_stats(st_ref, val, j):
    """One-pass BN statistics: per-channel sum and sum-of-squares of `val`."""
    @pl.when(j == 0)
    def _init():
        st_ref[...] = jnp.zeros_like(st_ref)

    st_ref[0, 0:1, :] += jnp.sum(val, axis=0, keepdims=True)
    st_ref[0, 1:2, :] += jnp.sum(val * val, axis=0, keepdims=True)


def _pass1_kernel(xa_ref, xh0_ref, xh1_ref, w1_ref, b1_ref, id_ref, st1_ref):
    """conv1 (bias) on one (image, row-block) tile + bn1 statistics."""
    _, th, wp, _ = xa_ref.shape
    w = wp - 2
    cmid = w1_ref.shape[1]
    # TH+2 input rows = TH rows of the main block (the 1-row top pre-pad means
    # the block's first row already is the top halo) + two 1-row bottom-halo
    # blocks from the padded input.
    xt = jnp.concatenate([xa_ref[0], xh0_ref[0], xh1_ref[0]], axis=0)
    acc = _conv3x3(xt, w1_ref, th, w) + b1_ref[...]          # (th*w, cmid) f32
    stored = acc.astype(id_ref.dtype)
    id_ref[0] = stored.reshape(th, w, cmid)                  # pre-BN conv1 out
    # bn1 statistics from the value actually stored / consumed downstream.
    _accumulate_stats(st1_ref, stored.astype(jnp.float32), pl.program_id(1))


def _pass2_kernel(idp_ref, idc_ref, idn_ref, s1_ref, t1_ref, w2_ref, b2_ref,
                  y2_ref, st2_ref):
    """bn1 (global stats) + ReLU + conv2 (bias) + bn2 statistics."""
    _, th, w, cmid = idc_ref.shape
    cout = w2_ref.shape[1]
    j = pl.program_id(1)
    nb = pl.num_programs(1)

    def act(v):  # bn1 folded to per-channel scale/shift, then ReLU (f32 VPU)
        return jnp.maximum(v.astype(jnp.float32) * s1_ref[...] + t1_ref[...], 0.0)

    # 1-row halos from the neighbouring row blocks; zero outside the image
    # (exactly the conv zero padding).
    top = jnp.where(j > 0, act(idp_ref[0]), 0.0)              # (1, w, cmid)
    bot = jnp.where(j < nb - 1, act(idn_ref[0]), 0.0)         # (1, w, cmid)
    x1 = jnp.concatenate([top, act(idc_ref[0]), bot], axis=0)  # (th+2, w, cmid)
    x1 = x1.astype(w2_ref.dtype)
    zcol = jnp.zeros((th + 2, 1, cmid), x1.dtype)             # only halo cols
    x1p = jnp.concatenate([zcol, x1, zcol], axis=1)           # (th+2, w+2, cmid)

    acc = _conv3x3(x1p, w2_ref, th, w) + b2_ref[...]          # (th*w, cout) f32
    stored = acc.astype(y2_ref.dtype)
    y2_ref[0] = stored.reshape(th, w, cout)                   # pre-BN conv2 out
    _accumulate_stats(st2_ref, stored.astype(jnp.float32), j)


def _pass3_kernel(y2_ref, id_ref, s2_ref, t2_ref, o_ref):
    """Lane-dense epilogue: bn2 (scale/shift) + residual add + ReLU."""
    y = y2_ref[...].astype(jnp.float32)
    res = id_ref[...].astype(jnp.float32)
    o_ref[...] = jnp.maximum(y * s2_ref[...] + t2_ref[...] + res, 0.0)


# ----------------------------------------------------------------------------
# wrapper helpers
# ----------------------------------------------------------------------------
def _bn_fold(stats, gamma, beta, count):
    """stats: (N, 2, C) per-image [sum, sum_sq].  Per-channel scale/shift for
    training-mode BN (biased variance, eps=1e-5).
    TODO(synk): one-pass E[x^2]-E[x]^2 can cancel for large-mean activations;
    a Welford/two-pass reduction would be safer for extreme inputs."""
    tot = jnp.sum(stats, axis=0)
    mean = tot[0] / count
    var = jnp.maximum(tot[1] / count - mean * mean, 0.0)
    scale = gamma / jnp.sqrt(var + EPS)
    shift = beta - mean * scale
    return scale, shift


def _vmem_caps():
    """(requested vmem_limit_bytes, per-step live-tile byte budget)."""
    phys = 64 * 1024 * 1024                       # conservative fallback (v7x)
    try:
        info = pltpu.get_tpu_info()
        for name in ("vmem_capacity_bytes", "vmem_size_bytes", "vmem_bytes"):
            v = getattr(info, name, None)
            if v:
                phys = int(v)
                break
    except Exception:
        pass
    limit = min(phys * 3 // 4, 100 * 1024 * 1024)  # 48 MiB on v7x, 96 on v5e/v6e
    budget = int(limit * 0.55)                     # ~26 MiB v7x, ~53 MiB v5e/v6e
    return limit, budget


def _pick_row_block(H, W, Cin, Cmid, Cout, mmb, stb, budget):
    """Largest row block (divisor of H, preferring multiples of 8) whose
    estimated per-step live VMEM fits the budget."""
    def est(th):
        p1 = (2 * th * (W + 2) * Cin * mmb          # xa (double-buffered)
              + 4 * (W + 2) * Cin * mmb             # 2x 1-row halo
              + 18 * Cin * Cmid * mmb               # w1 (x2 buffers)
              + 2 * th * W * Cmid * stb             # identity out
              + 2 * th * W * 3 * Cin * mmb          # per-kh patch (+tap copies)
              + th * W * Cmid * (4 + stb))          # f32 acc + stored cast
        p2 = (2 * th * W * Cmid * stb               # idc
              + 4 * W * Cmid * stb                  # 2x 1-row halo
              + 18 * Cmid * Cout * mmb              # w2
              + 2 * th * W * Cout * stb             # y2 out
              + (th + 2) * W * Cmid * (4 + mmb)     # bn1+relu act f32 + cast
              + (th + 2) * (W + 2) * Cmid * mmb     # zero-col padded copy
              + 2 * th * W * 3 * Cmid * mmb         # per-kh patch
              + th * W * Cout * (4 + stb))          # acc + stored cast
        return max(p1, p2)

    cands = [d for d in range(8, H + 1, 8) if H % d == 0]
    if not cands:
        cands = [d for d in range(1, H + 1) if H % d == 0]
    best = cands[0]
    for d in cands:
        if est(d) <= budget:
            best = max(best, d)
    return best


def _pick_epilogue_rows(rows, per_row_bytes, budget):
    # the epilogue block's row dim is sublane-constrained: multiple of 8 or full.
    cands = [d for d in range(8, rows + 1, 8) if rows % d == 0]
    if not cands:
        return rows
    best = cands[0]
    for d in cands:
        if d * per_row_bytes <= budget:
            best = max(best, d)
    return best


# ----------------------------------------------------------------------------
# forward wrapper
# ----------------------------------------------------------------------------
@functools.partial(jax.jit, static_argnames=("use_bf16", "row_block"))
def conv_block_nested_forward(x_nchw, params, *, use_bf16=True, row_block=None):
    """x_nchw: (N, Cin, H, W) float32 -> (N, Cout, H, W) float32."""
    w1, b1, g1, be1 = params["w1"], params["b1"], params["g1"], params["be1"]
    w2, b2, g2, be2 = params["w2"], params["b2"], params["g2"], params["be2"]
    N, Cin, H, W = x_nchw.shape
    Cmid = w1.shape[0]
    Cout = w2.shape[0]
    assert Cmid == Cout, "residual add in conv_block_nested needs mid_ch == out_ch"

    mm_dtype = jnp.bfloat16 if use_bf16 else jnp.float32   # MXU operand dtype
    st_dtype = jnp.bfloat16 if use_bf16 else jnp.float32   # identity/y2 storage
    mmb = 2 if use_bf16 else 4
    stb = 2 if use_bf16 else 4

    vmem_limit, budget = _vmem_caps()
    if row_block is not None and H % row_block == 0:
        TH = row_block
    else:
        TH = _pick_row_block(H, W, Cin, Cmid, Cout, mmb, stb, budget)
    nb = H // TH

    # ---- wrapper-side layout plumbing -----------------------------------
    x_nhwc = jnp.transpose(x_nchw, (0, 2, 3, 1)).astype(jnp.float32)
    # exactly the conv zero padding: 1 row top/bottom, 1 col left/right.
    x_pad = jnp.pad(x_nhwc, ((0, 0), (1, 1), (1, 1), (0, 0))).astype(mm_dtype)
    # OIHW -> (kh, kw, in, out) -> (9*in, out); (kh, kw, cin)-major matches the
    # per-kh im2col tap order in _conv3x3.
    w1_k = jnp.transpose(w1, (2, 3, 1, 0)).reshape(9 * Cin, Cmid).astype(mm_dtype)
    w2_k = jnp.transpose(w2, (2, 3, 1, 0)).reshape(9 * Cmid, Cout).astype(mm_dtype)
    b1_r = b1.reshape(1, Cmid).astype(jnp.float32)
    b2_r = b2.reshape(1, Cout).astype(jnp.float32)

    cparams = pltpu.CompilerParams(
        dimension_semantics=("parallel", "arbitrary"),
        vmem_limit_bytes=vmem_limit)

    # ---- pass 1: conv1 (+bias) + bn1 statistics ---------------------------
    identity, stats1 = pl.pallas_call(
        _pass1_kernel,
        grid=(N, nb),
        in_specs=[
            # TH output rows need padded rows j*TH .. j*TH+TH+1: the main block
            # carries the first TH, two 1-row halo blocks carry the last two
            # (x read ~1.1x instead of ~2x).
            pl.BlockSpec((1, TH, W + 2, Cin), lambda n, j: (n, j, 0, 0)),
            pl.BlockSpec((1, 1, W + 2, Cin), lambda n, j: (n, (j + 1) * TH, 0, 0)),
            pl.BlockSpec((1, 1, W + 2, Cin),
                         lambda n, j: (n, (j + 1) * TH + 1, 0, 0)),
            pl.BlockSpec((9 * Cin, Cmid), lambda n, j: (0, 0)),
            pl.BlockSpec((1, Cmid), lambda n, j: (0, 0)),
        ],
        out_specs=(
            pl.BlockSpec((1, TH, W, Cmid), lambda n, j: (n, j, 0, 0)),
            pl.BlockSpec((1, 2, Cmid), lambda n, j: (n, 0, 0)),
        ),
        out_shape=(
            jax.ShapeDtypeStruct((N, H, W, Cmid), st_dtype),
            jax.ShapeDtypeStruct((N, 2, Cmid), jnp.float32),
        ),
        compiler_params=cparams,
        cost_estimate=pl.CostEstimate(
            flops=2 * N * H * W * 9 * Cin * Cmid,
            transcendentals=0,
            bytes_accessed=N * (H + 2) * (W + 2) * Cin * mmb
                           + N * H * W * Cmid * stb),
    )(x_pad, x_pad, x_pad, w1_k, b1_r)

    scale1, shift1 = _bn_fold(stats1, g1.astype(jnp.float32),
                              be1.astype(jnp.float32), N * H * W)

    # ---- pass 2: bn1 + ReLU + conv2 (+bias) + bn2 statistics --------------
    y2, stats2 = pl.pallas_call(
        _pass2_kernel,
        grid=(N, nb),
        in_specs=[
            # 1-row halos (clamped at the border; kernel zeroes them there).
            pl.BlockSpec((1, 1, W, Cmid),
                         lambda n, j: (n, jnp.maximum(j * TH - 1, 0), 0, 0)),
            pl.BlockSpec((1, TH, W, Cmid), lambda n, j: (n, j, 0, 0)),
            pl.BlockSpec((1, 1, W, Cmid),
                         lambda n, j: (n, jnp.minimum((j + 1) * TH, H - 1), 0, 0)),
            pl.BlockSpec((1, Cmid), lambda n, j: (0, 0)),
            pl.BlockSpec((1, Cmid), lambda n, j: (0, 0)),
            pl.BlockSpec((9 * Cmid, Cout), lambda n, j: (0, 0)),
            pl.BlockSpec((1, Cout), lambda n, j: (0, 0)),
        ],
        out_specs=(
            pl.BlockSpec((1, TH, W, Cout), lambda n, j: (n, j, 0, 0)),
            pl.BlockSpec((1, 2, Cout), lambda n, j: (n, 0, 0)),
        ),
        out_shape=(
            jax.ShapeDtypeStruct((N, H, W, Cout), st_dtype),
            jax.ShapeDtypeStruct((N, 2, Cout), jnp.float32),
        ),
        compiler_params=cparams,
        cost_estimate=pl.CostEstimate(
            flops=2 * N * H * W * 9 * Cmid * Cout,
            transcendentals=0,
            bytes_accessed=N * H * W * (Cmid + Cout) * stb),
    )(identity, identity, identity,
      scale1.reshape(1, Cmid), shift1.reshape(1, Cmid), w2_k, b2_r)

    scale2, shift2 = _bn_fold(stats2, g2.astype(jnp.float32),
                              be2.astype(jnp.float32), N * H * W)

    # ---- pass 3: bn2 + residual + ReLU on a lane-dense (rows, W*C) view ----
    WC = W * Cout
    rows = N * H
    per_row = WC * (4 * stb + 16)               # y2 + identity + out + temps
    TR = _pick_epilogue_rows(rows, per_row, budget)
    y2_flat = y2.reshape(rows, WC)              # free: contiguous views
    id_flat = identity.reshape(rows, WC)
    s2_wc = jnp.tile(scale2, W).reshape(1, WC)
    t2_wc = jnp.tile(shift2, W).reshape(1, WC)
    out_flat = pl.pallas_call(
        _pass3_kernel,
        grid=(rows // TR,),
        in_specs=[
            pl.BlockSpec((TR, WC), lambda r: (r, 0)),
            pl.BlockSpec((TR, WC), lambda r: (r, 0)),
            pl.BlockSpec((1, WC), lambda r: (0, 0)),
            pl.BlockSpec((1, WC), lambda r: (0, 0)),
        ],
        out_specs=pl.BlockSpec((TR, WC), lambda r: (r, 0)),
        out_shape=jax.ShapeDtypeStruct((rows, WC), jnp.float32),
        compiler_params=pltpu.CompilerParams(
            dimension_semantics=("parallel",),
            vmem_limit_bytes=vmem_limit),
        cost_estimate=pl.CostEstimate(
            flops=3 * rows * WC, transcendentals=0,
            bytes_accessed=rows * WC * (2 * stb + 4)),
    )(y2_flat, id_flat, s2_wc, t2_wc)

    out_nhwc = out_flat.reshape(N, H, W, Cout)
    return jnp.transpose(out_nhwc, (0, 3, 1, 2))


# ----------------------------------------------------------------------------
# pure-JAX reference (same math) for the correctness check
# ----------------------------------------------------------------------------
def _reference_forward(x_nchw, params, *, quantize=False):
    """If quantize=True, conv inputs/weights and the stored pre-BN conv outputs
    are rounded to bf16 (mirrors the kernel's bf16 MXU-operand / bf16-storage,
    f32-accumulate path)."""
    q = (lambda a: a.astype(jnp.bfloat16).astype(jnp.float32)) if quantize \
        else (lambda a: a)
    w1, b1, g1, be1 = params["w1"], params["b1"], params["g1"], params["be1"]
    w2, b2, g2, be2 = params["w2"], params["b2"], params["g2"], params["be2"]
    x = jnp.transpose(x_nchw, (0, 2, 3, 1)).astype(jnp.float32)
    dn = ("NHWC", "HWIO", "NHWC")

    def conv(h, w, b):
        wk = jnp.transpose(w, (2, 3, 1, 0))  # OIHW -> HWIO
        y = lax.conv_general_dilated(q(h), q(wk), (1, 1), "SAME",
                                     dimension_numbers=dn,
                                     preferred_element_type=jnp.float32)
        return y + b

    def bn(h, g, be):
        m = jnp.mean(h, axis=(0, 1, 2), keepdims=True)
        v = jnp.mean((h - m) ** 2, axis=(0, 1, 2), keepdims=True)  # biased var
        return (h - m) / jnp.sqrt(v + EPS) * g + be

    h = conv(x, w1, b1)
    h = q(h)                     # kernel stores the pre-BN conv1 output in bf16
    identity = h
    h = jnp.maximum(bn(h, g1, be1), 0.0)
    h = conv(h, w2, b2)
    h = q(h)                     # kernel stores the pre-BN conv2 output in bf16
    h = bn(h, g2, be2)
    out = jnp.maximum(h + identity, 0.0)
    return jnp.transpose(out, (0, 3, 1, 2))


if __name__ == "__main__":
    in_ch, mid_ch, out_ch = 4, 8, 8
    N, H, W = 2, 16, 16

    key = jax.random.PRNGKey(0)
    keys = jax.random.split(key, 9)
    params = {
        "w1": 0.1 * jax.random.normal(keys[0], (mid_ch, in_ch, 3, 3), jnp.float32),
        "b1": 0.1 * jax.random.normal(keys[1], (mid_ch,), jnp.float32),
        "g1": 1.0 + 0.1 * jax.random.normal(keys[2], (mid_ch,), jnp.float32),
        "be1": 0.1 * jax.random.normal(keys[3], (mid_ch,), jnp.float32),
        "w2": 0.1 * jax.random.normal(keys[4], (out_ch, mid_ch, 3, 3), jnp.float32),
        "b2": 0.1 * jax.random.normal(keys[5], (out_ch,), jnp.float32),
        "g2": 1.0 + 0.1 * jax.random.normal(keys[6], (out_ch,), jnp.float32),
        "be2": 0.1 * jax.random.normal(keys[7], (out_ch,), jnp.float32),
    }
    x = jax.random.normal(keys[8], (N, in_ch, H, W), jnp.float32)

    # f32-operand path vs pure-JAX reference.
    out_f32 = jax.block_until_ready(
        conv_block_nested_forward(x, params, use_bf16=False))
    ref_f32 = jax.block_until_ready(_reference_forward(x, params))
    assert out_f32.shape == (N, out_ch, H, W)
    assert out_f32.dtype == jnp.float32
    assert jnp.allclose(out_f32, ref_f32, rtol=1e-2, atol=1e-2), "f32 path mismatch"

    # default bf16 path vs a reference with the same bf16 quantisation points.
    out_bf16 = jax.block_until_ready(conv_block_nested_forward(x, params))
    ref_q = jax.block_until_ready(_reference_forward(x, params, quantize=True))
    assert jnp.allclose(out_bf16, ref_q, rtol=2e-2, atol=2e-2), "bf16 path mismatch"
    # bf16 operand/storage quantisation stays close to the exact f32 result.
    assert float(jnp.max(jnp.abs(out_bf16 - ref_f32))) < 0.1, "bf16 drift too large"

    # also exercise a multi-row-block grid (TH=8 -> 2 row blocks per image).
    out_rb8 = jax.block_until_ready(
        conv_block_nested_forward(x, params, use_bf16=False, row_block=8))
    assert jnp.allclose(out_rb8, ref_f32, rtol=1e-2, atol=1e-2), "row_block=8 mismatch"

    print("KERNEL_OK")
</pallas_src>

<mosaic_0001>
module attributes {stable_mosaic.version = 11 : i64} {
  func.func @_pass1_kernel(%arg0: i32, %arg1: i32, %arg2: memref<1x16x18x4xf32, #tpu.memory_space<vmem>>, %arg3: memref<1x1x18x4xf32, #tpu.memory_space<vmem>>, %arg4: memref<1x1x18x4xf32, #tpu.memory_space<vmem>>, %arg5: memref<36x8xf32, #tpu.memory_space<vmem>>, %arg6: memref<1x8xf32, #tpu.memory_space<vmem>>, %arg7: memref<1x16x16x8xf32, #tpu.memory_space<vmem>>, %arg8: memref<1x2x8xf32, #tpu.memory_space<vmem>>) attributes {dimension_semantics = [#tpu.dimension_semantics<parallel>, #tpu.dimension_semantics<arbitrary>], iteration_bounds = array<i64: 2, 1>, scalar_prefetch = 0 : i64, scratch_operands = 0 : i64, tpu.core_type = #tpu.core_type<tc>, window_params = [{transform_indices = @transform_0, window_bounds = array<i64: 1, 16, 18, 4>}, {transform_indices = @transform_1, window_bounds = array<i64: 1, 1, 18, 4>}, {transform_indices = @transform_2, window_bounds = array<i64: 1, 1, 18, 4>}, {pipeline_mode = #tpu.pipeline_mode<synchronous>, transform_indices = @transform_3, window_bounds = array<i64: 36, 8>}, {pipeline_mode = #tpu.pipeline_mode<synchronous>, transform_indices = @transform_4, window_bounds = array<i64: 1, 8>}, {transform_indices = @transform_5, window_bounds = array<i64: 1, 16, 16, 8>}, {transform_indices = @transform_6, window_bounds = array<i64: 1, 2, 8>}]} {
    %c0 = arith.constant 0 : index
    %c0_0 = arith.constant 0 : index
    %c0_1 = arith.constant 0 : index
    %c0_2 = arith.constant 0 : index
    %0 = vector.load %arg2[%c0, %c0_0, %c0_1, %c0_2] : memref<1x16x18x4xf32, #tpu.memory_space<vmem>>, vector<1x16x18x4xf32>
    %1 = vector.shape_cast %0 : vector<1x16x18x4xf32> to vector<16x18x4xf32>
    %c0_3 = arith.constant 0 : index
    %c0_4 = arith.constant 0 : index
    %c0_5 = arith.constant 0 : index
    %c0_6 = arith.constant 0 : index
    %2 = vector.load %arg3[%c0_3, %c0_4, %c0_5, %c0_6] : memref<1x1x18x4xf32, #tpu.memory_space<vmem>>, vector<1x1x18x4xf32>
    %3 = vector.shape_cast %2 : vector<1x1x18x4xf32> to vector<1x18x4xf32>
    %c0_7 = arith.constant 0 : index
    %c0_8 = arith.constant 0 : index
    %c0_9 = arith.constant 0 : index
    %c0_10 = arith.constant 0 : index
    %4 = vector.load %arg4[%c0_7, %c0_8, %c0_9, %c0_10] : memref<1x1x18x4xf32, #tpu.memory_space<vmem>>, vector<1x1x18x4xf32>
    %5 = vector.shape_cast %4 : vector<1x1x18x4xf32> to vector<1x18x4xf32>
    %6 = tpu.concatenate %1, %3, %5 in 0 : vector<16x18x4xf32>, vector<1x18x4xf32>, vector<1x18x4xf32> -> vector<18x18x4xf32>
    %7 = vector.extract_strided_slice %6 {offsets = [0, 0, 0], sizes = [16, 16, 4], strides = [1, 1, 1]} : vector<18x18x4xf32> to vector<16x16x4xf32>
    %8 = vector.extract_strided_slice %6 {offsets = [0, 1, 0], sizes = [16, 16, 4], strides = [1, 1, 1]} : vector<18x18x4xf32> to vector<16x16x4xf32>
    %9 = vector.extract_strided_slice %6 {offsets = [0, 2, 0], sizes = [16, 16, 4], strides = [1, 1, 1]} : vector<18x18x4xf32> to vector<16x16x4xf32>
    %10 = tpu.concatenate %7, %8, %9 in 2 : vector<16x16x4xf32>, vector<16x16x4xf32>, vector<16x16x4xf32> -> vector<16x16x12xf32>
    %11 = vector.shape_cast %10 : vector<16x16x12xf32> to vector<256x12xf32>
    %c0_11 = arith.constant 0 : index
    %c0_12 = arith.constant 0 : index
    %12 = vector.load %arg5[%c0_11, %c0_12] : memref<36x8xf32, #tpu.memory_space<vmem>>, vector<12x8xf32>
    %cst = arith.constant dense<0.000000e+00> : vector<256x8xf32>
    %13 = tpu.matmul %11, %12, %cst {dimension_numbers = #tpu.dot_dimension_numbers<[1], [0], [0], [1], [0, 0, 1, 1], [], []>} : vector<256x12xf32>, vector<12x8xf32>, vector<256x8xf32> -> vector<256x8xf32>
    %14 = vector.extract_strided_slice %6 {offsets = [1, 0, 0], sizes = [16, 16, 4], strides = [1, 1, 1]} : vector<18x18x4xf32> to vector<16x16x4xf32>
    %15 = vector.extract_strided_slice %6 {offsets = [1, 1, 0], sizes = [16, 16, 4], strides = [1, 1, 1]} : vector<18x18x4xf32> to vector<16x16x4xf32>
    %16 = vector.extract_strided_slice %6 {offsets = [1, 2, 0], sizes = [16, 16, 4], strides = [1, 1, 1]} : vector<18x18x4xf32> to vector<16x16x4xf32>
    %17 = tpu.concatenate %14, %15, %16 in 2 : vector<16x16x4xf32>, vector<16x16x4xf32>, vector<16x16x4xf32> -> vector<16x16x12xf32>
    %18 = vector.shape_cast %17 : vector<16x16x12xf32> to vector<256x12xf32>
    %c12 = arith.constant 12 : index
    %c0_13 = arith.constant 0 : index
    %19 = vector.load %arg5[%c12, %c0_13] : memref<36x8xf32, #tpu.memory_space<vmem>>, vector<12x8xf32>
    %cst_14 = arith.constant dense<0.000000e+00> : vector<256x8xf32>
    %20 = tpu.matmul %18, %19, %cst_14 {dimension_numbers = #tpu.dot_dimension_numbers<[1], [0], [0], [1], [0, 0, 1, 1], [], []>} : vector<256x12xf32>, vector<12x8xf32>, vector<256x8xf32> -> vector<256x8xf32>
    %21 = arith.addf %13, %20 : vector<256x8xf32>
    %22 = vector.extract_strided_slice %6 {offsets = [2, 0, 0], sizes = [16, 16, 4], strides = [1, 1, 1]} : vector<18x18x4xf32> to vector<16x16x4xf32>
    %23 = vector.extract_strided_slice %6 {offsets = [2, 1, 0], sizes = [16, 16, 4], strides = [1, 1, 1]} : vector<18x18x4xf32> to vector<16x16x4xf32>
    %24 = vector.extract_strided_slice %6 {offsets = [2, 2, 0], sizes = [16, 16, 4], strides = [1, 1, 1]} : vector<18x18x4xf32> to vector<16x16x4xf32>
    %25 = tpu.concatenate %22, %23, %24 in 2 : vector<16x16x4xf32>, vector<16x16x4xf32>, vector<16x16x4xf32> -> vector<16x16x12xf32>
    %26 = vector.shape_cast %25 : vector<16x16x12xf32> to vector<256x12xf32>
    %c24 = arith.constant 24 : index
    %c0_15 = arith.constant 0 : index
    %27 = vector.load %arg5[%c24, %c0_15] : memref<36x8xf32, #tpu.memory_space<vmem>>, vector<12x8xf32>
    %cst_16 = arith.constant dense<0.000000e+00> : vector<256x8xf32>
    %28 = tpu.matmul %26, %27, %cst_16 {dimension_numbers = #tpu.dot_dimension_numbers<[1], [0], [0], [1], [0, 0, 1, 1], [], []>} : vector<256x12xf32>, vector<12x8xf32>, vector<256x8xf32> -> vector<256x8xf32>
    %29 = arith.addf %21, %28 : vector<256x8xf32>
    %c0_17 = arith.constant 0 : index
    %c0_18 = arith.constant 0 : index
    %30 = vector.load %arg6[%c0_17, %c0_18] : memref<1x8xf32, #tpu.memory_space<vmem>>, vector<1x8xf32>
    %31 = vector.broadcast %30 : vector<1x8xf32> to vector<256x8xf32>
    %32 = arith.addf %29, %31 : vector<256x8xf32>
    %33 = vector.shape_cast %32 : vector<256x8xf32> to vector<16x16x8xf32>
    %c0_19 = arith.constant 0 : index
    %c0_20 = arith.constant 0 : index
    %c0_21 = arith.constant 0 : index
    %c0_22 = arith.constant 0 : index
    %34 = vector.load %arg7[%c0_19, %c0_20, %c0_21, %c0_22] : memref<1x16x16x8xf32, #tpu.memory_space<vmem>>, vector<1x16x16x8xf32>
    %35 = vector.shape_cast %34 : vector<1x16x16x8xf32> to vector<16x16x8xf32>
    %36 = vector.shape_cast %33 : vector<16x16x8xf32> to vector<1x16x16x8xf32>
    tpu.vector_store %arg7[%c0_19, %c0_20, %c0_21, %c0_22], %36 {strides = array<i32>} : memref<1x16x16x8xf32, #tpu.memory_space<vmem>>, vector<1x16x16x8xf32>,
    %c0_i32 = arith.constant 0 : i32
    %37 = arith.cmpi eq, %arg1, %c0_i32 : i32
    %38 = arith.extui %37 : i1 to i32
    %c0_i32_23 = arith.constant 0 : i32
    %39 = arith.cmpi ne, %38, %c0_i32_23 : i32
    scf.if %39 {
      %cst_37 = arith.constant 0.000000e+00 : f32
      %57 = vector.broadcast %cst_37 : f32 to vector<1x2x8xf32>
      %c0_38 = arith.constant 0 : index
      %c0_39 = arith.constant 0 : index
      %c0_40 = arith.constant 0 : index
      %58 = vector.load %arg8[%c0_38, %c0_39, %c0_40] : memref<1x2x8xf32, #tpu.memory_space<vmem>>, vector<1x2x8xf32>
      tpu.vector_store %arg8[%c0_38, %c0_39, %c0_40], %57 {strides = array<i32>} : memref<1x2x8xf32, #tpu.memory_space<vmem>>, vector<1x2x8xf32>,
    } else {
    }
    %c0_24 = arith.constant 0 : index
    %c0_25 = arith.constant 0 : index
    %c0_26 = arith.constant 0 : index
    %40 = vector.load %arg8[%c0_24, %c0_25, %c0_26] : memref<1x2x8xf32, #tpu.memory_space<vmem>>, vector<1x1x8xf32>
    %41 = vector.shape_cast %40 : vector<1x1x8xf32> to vector<1x8xf32>
    %cst_27 = arith.constant dense<0.000000e+00> : vector<8xf32>
    %42 = vector.multi_reduction <add>, %32, %cst_27 [0] : vector<256x8xf32> to vector<8xf32>
    %43 = vector.shape_cast %42 : vector<8xf32> to vector<1x8xf32>
    %44 = arith.addf %41, %43 : vector<1x8xf32>
    %c0_28 = arith.constant 0 : index
    %c0_29 = arith.constant 0 : index
    %c0_30 = arith.constant 0 : index
    %45 = vector.load %arg8[%c0_28, %c0_29, %c0_30] : memref<1x2x8xf32, #tpu.memory_space<vmem>>, vector<1x1x8xf32>
    %46 = vector.shape_cast %45 : vector<1x1x8xf32> to vector<1x8xf32>
    %47 = vector.shape_cast %44 : vector<1x8xf32> to vector<1x1x8xf32>
    tpu.vector_store %arg8[%c0_28, %c0_29, %c0_30], %47 {strides = array<i32>} : memref<1x2x8xf32, #tpu.memory_space<vmem>>, vector<1x1x8xf32>,
    %c0_31 = arith.constant 0 : index
    %c1 = arith.constant 1 : index
    %c0_32 = arith.constant 0 : index
    %48 = vector.load %arg8[%c0_31, %c1, %c0_32] : memref<1x2x8xf32, #tpu.memory_space<vmem>>, vector<1x1x8xf32>
    %49 = vector.shape_cast %48 : vector<1x1x8xf32> to vector<1x8xf32>
    %50 = arith.mulf %32, %32 : vector<256x8xf32>
    %cst_33 = arith.constant dense<0.000000e+00> : vector<8xf32>
    %51 = vector.multi_reduction <add>, %50, %cst_33 [0] : vector<256x8xf32> to vector<8xf32>
    %52 = vector.shape_cast %51 : vector<8xf32> to vector<1x8xf32>
    %53 = arith.addf %49, %52 : vector<1x8xf32>
    %c0_34 = arith.constant 0 : index
    %c1_35 = arith.constant 1 : index
    %c0_36 = arith.constant 0 : index
    %54 = vector.load %arg8[%c0_34, %c1_35, %c0_36] : memref<1x2x8xf32, #tpu.memory_space<vmem>>, vector<1x1x8xf32>
    %55 = vector.shape_cast %54 : vector<1x1x8xf32> to vector<1x8xf32>
    %56 = vector.shape_cast %53 : vector<1x8xf32> to vector<1x1x8xf32>
    tpu.vector_store %arg8[%c0_34, %c1_35, %c0_36], %56 {strides = array<i32>} : memref<1x2x8xf32, #tpu.memory_space<vmem>>, vector<1x1x8xf32>,
    return
  }
  func.func @transform_0(%arg0: i32, %arg1: i32) -> (i32, i32, i32, i32) {
    %c0_i32 = arith.constant 0 : i32
    %c0_i32_0 = arith.constant 0 : i32
    %c0_i32_1 = arith.constant 0 : i32
    return %arg0, %arg1, %c0_i32, %c0_i32_0 : i32, i32, i32, i32
  }
  func.func @transform_1(%arg0: i32, %arg1: i32) -> (i32, i32, i32, i32) {
    %c1_i32 = arith.constant 1 : i32
    %0 = arith.addi %arg1, %c1_i32 : i32
    %c16_i32 = arith.constant 16 : i32
    %1 = arith.muli %0, %c16_i32 : i32
    %c0_i32 = arith.constant 0 : i32
    %c0_i32_0 = arith.constant 0 : i32
    %c0_i32_1 = arith.constant 0 : i32
    return %arg0, %1, %c0_i32, %c0_i32_0 : i32, i32, i32, i32
  }
  func.func @transform_2(%arg0: i32, %arg1: i32) -> (i32, i32, i32, i32) {
    %c1_i32 = arith.constant 1 : i32
    %0 = arith.addi %arg1, %c1_i32 : i32
    %c16_i32 = arith.constant 16 : i32
    %1 = arith.muli %0, %c16_i32 : i32
    %c1_i32_0 = arith.constant 1 : i32
    %2 = arith.addi %1, %c1_i32_0 : i32
    %c0_i32 = arith.constant 0 : i32
    %c0_i32_1 = arith.constant 0 : i32
    %c0_i32_2 = arith.constant 0 : i32
    return %arg0, %2, %c0_i32, %c0_i32_1 : i32, i32, i32, i32
  }
  func.func @transform_3(%arg0: i32, %arg1: i32) -> (i32, i32) {
    %c0_i32 = arith.constant 0 : i32
    %c0_i32_0 = arith.constant 0 : i32
    %c0_i32_1 = arith.constant 0 : i32
    return %c0_i32, %c0_i32_0 : i32, i32
  }
  func.func @transform_4(%arg0: i32, %arg1: i32) -> (i32, i32) {
    %c0_i32 = arith.constant 0 : i32
    %c0_i32_0 = arith.constant 0 : i32
    %c0_i32_1 = arith.constant 0 : i32
    return %c0_i32, %c0_i32_0 : i32, i32
  }
  func.func @transform_5(%arg0: i32, %arg1: i32) -> (i32, i32, i32, i32) {
    %c0_i32 = arith.constant 0 : i32
    %c0_i32_0 = arith.constant 0 : i32
    %c0_i32_1 = arith.constant 0 : i32
    return %arg0, %arg1, %c0_i32, %c0_i32_0 : i32, i32, i32, i32
  }
  func.func @transform_6(%arg0: i32, %arg1: i32) -> (i32, i32, i32) {
    %c0_i32 = arith.constant 0 : i32
    %c0_i32_0 = arith.constant 0 : i32
    %c0_i32_1 = arith.constant 0 : i32
    return %arg0, %c0_i32, %c0_i32_0 : i32, i32, i32
  }
}

module attributes {stable_mosaic.version = 11 : i64} {
  func.func @_pass2_kernel(%arg0: i32, %arg1: i32, %arg2: memref<1x1x16x8xf32, #tpu.memory_space<vmem>>, %arg3: memref<1x16x16x8xf32, #tpu.memory_space<vmem>>, %arg4: memref<1x1x16x8xf32, #tpu.memory_space<vmem>>, %arg5: memref<1x8xf32, #tpu.memory_space<vmem>>, %arg6: memref<1x8xf32, #tpu.memory_space<vmem>>, %arg7: memref<72x8xf32, #tpu.memory_space<vmem>>, %arg8: memref<1x8xf32, #tpu.memory_space<vmem>>, %arg9: memref<1x16x16x8xf32, #tpu.memory_space<vmem>>, %arg10: memref<1x2x8xf32, #tpu.memory_space<vmem>>) attributes {dimension_semantics = [#tpu.dimension_semantics<parallel>, #tpu.dimension_semantics<arbitrary>], iteration_bounds = array<i64: 2, 1>, scalar_prefetch = 0 : i64, scratch_operands = 0 : i64, tpu.core_type = #tpu.core_type<tc>, window_params = [{transform_indices = @transform_0, window_bounds = array<i64: 1, 1, 16, 8>}, {transform_indices = @transform_1, window_bounds = array<i64: 1, 16, 16, 8>}, {transform_indices = @transform_2, window_bounds = array<i64: 1, 1, 16, 8>}, {pipeline_mode = #tpu.pipeline_mode<synchronous>, transform_indices = @transform_3, window_bounds = array<i64: 1, 8>}, {pipeline_mode = #tpu.pipeline_mode<synchronous>, transform_indices = @transform_4, window_bounds = array<i64: 1, 8>}, {pipeline_mode = #tpu.pipeline_mode<synchronous>, transform_indices = @transform_5, window_bounds = array<i64: 72, 8>}, {pipeline_mode = #tpu.pipeline_mode<synchronous>, transform_indices = @transform_6, window_bounds = array<i64: 1, 8>}, {transform_indices = @transform_7, window_bounds = array<i64: 1, 16, 16, 8>}, {transform_indices = @transform_8, window_bounds = array<i64: 1, 2, 8>}]} {
    %c0_i32 = arith.constant 0 : i32
    %0 = arith.cmpi sgt, %arg1, %c0_i32 : i32
    %c0 = arith.constant 0 : index
    %c0_0 = arith.constant 0 : index
    %c0_1 = arith.constant 0 : index
    %c0_2 = arith.constant 0 : index
    %1 = vector.load %arg2[%c0, %c0_0, %c0_1, %c0_2] : memref<1x1x16x8xf32, #tpu.memory_space<vmem>>, vector<1x1x16x8xf32>
    %2 = vector.shape_cast %1 : vector<1x1x16x8xf32> to vector<1x16x8xf32>
    %c0_3 = arith.constant 0 : index
    %c0_4 = arith.constant 0 : index
    %3 = vector.load %arg5[%c0_3, %c0_4] : memref<1x8xf32, #tpu.memory_space<vmem>>, vector<1x8xf32>
    %4 = vector.shape_cast %3 : vector<1x8xf32> to vector<1x1x8xf32>
    %5 = vector.broadcast %4 : vector<1x1x8xf32> to vector<1x16x8xf32>
    %6 = arith.mulf %2, %5 : vector<1x16x8xf32>
    %c0_5 = arith.constant 0 : index
    %c0_6 = arith.constant 0 : index
    %7 = vector.load %arg6[%c0_5, %c0_6] : memref<1x8xf32, #tpu.memory_space<vmem>>, vector<1x8xf32>
    %8 = vector.shape_cast %7 : vector<1x8xf32> to vector<1x1x8xf32>
    %9 = vector.broadcast %8 : vector<1x1x8xf32> to vector<1x16x8xf32>
    %10 = arith.addf %6, %9 : vector<1x16x8xf32>
    %cst = arith.constant 0.000000e+00 : f32
    %11 = vector.broadcast %cst : f32 to vector<1x16x8xf32>
    %12 = arith.maximumf %10, %11 : vector<1x16x8xf32>
    %cst_7 = arith.constant 0.000000e+00 : f32
    %13 = vector.broadcast %cst_7 : f32 to vector<1x16x8xf32>
    %14 = arith.select %0, %12, %13 : vector<1x16x8xf32>
    %c0_i32_8 = arith.constant 0 : i32
    %15 = arith.cmpi slt, %arg1, %c0_i32_8 : i32
    %c0_9 = arith.constant 0 : index
    %c0_10 = arith.constant 0 : index
    %c0_11 = arith.constant 0 : index
    %c0_12 = arith.constant 0 : index
    %16 = vector.load %arg4[%c0_9, %c0_10, %c0_11, %c0_12] : memref<1x1x16x8xf32, #tpu.memory_space<vmem>>, vector<1x1x16x8xf32>
    %17 = vector.shape_cast %16 : vector<1x1x16x8xf32> to vector<1x16x8xf32>
    %c0_13 = arith.constant 0 : index
    %c0_14 = arith.constant 0 : index
    %18 = vector.load %arg5[%c0_13, %c0_14] : memref<1x8xf32, #tpu.memory_space<vmem>>, vector<1x8xf32>
    %19 = vector.shape_cast %18 : vector<1x8xf32> to vector<1x1x8xf32>
    %20 = vector.broadcast %19 : vector<1x1x8xf32> to vector<1x16x8xf32>
    %21 = arith.mulf %17, %20 : vector<1x16x8xf32>
    %c0_15 = arith.constant 0 : index
    %c0_16 = arith.constant 0 : index
    %22 = vector.load %arg6[%c0_15, %c0_16] : memref<1x8xf32, #tpu.memory_space<vmem>>, vector<1x8xf32>
    %23 = vector.shape_cast %22 : vector<1x8xf32> to vector<1x1x8xf32>
    %24 = vector.broadcast %23 : vector<1x1x8xf32> to vector<1x16x8xf32>
    %25 = arith.addf %21, %24 : vector<1x16x8xf32>
    %cst_17 = arith.constant 0.000000e+00 : f32
    %26 = vector.broadcast %cst_17 : f32 to vector<1x16x8xf32>
    %27 = arith.maximumf %25, %26 : vector<1x16x8xf32>
    %cst_18 = arith.constant 0.000000e+00 : f32
    %28 = vector.broadcast %cst_18 : f32 to vector<1x16x8xf32>
    %29 = arith.select %15, %27, %28 : vector<1x16x8xf32>
    %c0_19 = arith.constant 0 : index
    %c0_20 = arith.constant 0 : index
    %c0_21 = arith.constant 0 : index
    %c0_22 = arith.constant 0 : index
    %30 = vector.load %arg3[%c0_19, %c0_20, %c0_21, %c0_22] : memref<1x16x16x8xf32, #tpu.memory_space<vmem>>, vector<1x16x16x8xf32>
    %31 = vector.shape_cast %30 : vector<1x16x16x8xf32> to vector<16x16x8xf32>
    %c0_23 = arith.constant 0 : index
    %c0_24 = arith.constant 0 : index
    %32 = vector.load %arg5[%c0_23, %c0_24] : memref<1x8xf32, #tpu.memory_space<vmem>>, vector<1x8xf32>
    %33 = vector.shape_cast %32 : vector<1x8xf32> to vector<1x1x8xf32>
    %34 = vector.broadcast %33 : vector<1x1x8xf32> to vector<16x16x8xf32>
    %35 = arith.mulf %31, %34 : vector<16x16x8xf32>
    %c0_25 = arith.constant 0 : index
    %c0_26 = arith.constant 0 : index
    %36 = vector.load %arg6[%c0_25, %c0_26] : memref<1x8xf32, #tpu.memory_space<vmem>>, vector<1x8xf32>
    %37 = vector.shape_cast %36 : vector<1x8xf32> to vector<1x1x8xf32>
    %38 = vector.broadcast %37 : vector<1x1x8xf32> to vector<16x16x8xf32>
    %39 = arith.addf %35, %38 : vector<16x16x8xf32>
    %cst_27 = arith.constant 0.000000e+00 : f32
    %40 = vector.broadcast %cst_27 : f32 to vector<16x16x8xf32>
    %41 = arith.maximumf %39, %40 : vector<16x16x8xf32>
    %42 = tpu.concatenate %14, %41, %29 in 0 : vector<1x16x8xf32>, vector<16x16x8xf32>, vector<1x16x8xf32> -> vector<18x16x8xf32>
    %cst_28 = arith.constant 0.000000e+00 : f32
    %43 = vector.broadcast %cst_28 : f32 to vector<18x1x8xf32>
    %44 = tpu.concatenate %43, %42, %43 in 1 : vector<18x1x8xf32>, vector<18x16x8xf32>, vector<18x1x8xf32> -> vector<18x18x8xf32>
    %45 = vector.extract_strided_slice %44 {offsets = [0, 0, 0], sizes = [16, 16, 8], strides = [1, 1, 1]} : vector<18x18x8xf32> to vector<16x16x8xf32>
    %46 = vector.extract_strided_slice %44 {offsets = [0, 1, 0], sizes = [16, 16, 8], strides = [1, 1, 1]} : vector<18x18x8xf32> to vector<16x16x8xf32>
    %47 = vector.extract_strided_slice %44 {offsets = [0, 2, 0], sizes = [16, 16, 8], strides = [1, 1, 1]} : vector<18x18x8xf32> to vector<16x16x8xf32>
    %48 = tpu.concatenate %45, %46, %47 in 2 : vector<16x16x8xf32>, vector<16x16x8xf32>, vector<16x16x8xf32> -> vector<16x16x24xf32>
    %49 = vector.shape_cast %48 : vector<16x16x24xf32> to vector<256x24xf32>
    %c0_29 = arith.constant 0 : index
    %c0_30 = arith.constant 0 : index
    %50 = vector.load %arg7[%c0_29, %c0_30] : memref<72x8xf32, #tpu.memory_space<vmem>>, vector<24x8xf32>
    %cst_31 = arith.constant dense<0.000000e+00> : vector<256x8xf32>
    %51 = tpu.matmul %49, %50, %cst_31 {dimension_numbers = #tpu.dot_dimension_numbers<[1], [0], [0], [1], [0, 0, 1, 1], [], []>} : vector<256x24xf32>, vector<24x8xf32>, vector<256x8xf32> -> vector<256x8xf32>
    %52 = vector.extract_strided_slice %44 {offsets = [1, 0, 0], sizes = [16, 16, 8], strides = [1, 1, 1]} : vector<18x18x8xf32> to vector<16x16x8xf32>
    %53 = vector.extract_strided_slice %44 {offsets = [1, 1, 0], sizes = [16, 16, 8], strides = [1, 1, 1]} : vector<18x18x8xf32> to vector<16x16x8xf32>
    %54 = vector.extract_strided_slice %44 {offsets = [1, 2, 0], sizes = [16, 16, 8], strides = [1, 1, 1]} : vector<18x18x8xf32> to vector<16x16x8xf32>
    %55 = tpu.concatenate %52, %53, %54 in 2 : vector<16x16x8xf32>, vector<16x16x8xf32>, vector<16x16x8xf32> -> vector<16x16x24xf32>
    %56 = vector.shape_cast %55 : vector<16x16x24xf32> to vector<256x24xf32>
    %c24 = arith.constant 24 : index
    %c0_32 = arith.constant 0 : index
    %57 = vector.load %arg7[%c24, %c0_32] : memref<72x8xf32, #tpu.memory_space<vmem>>, vector<24x8xf32>
    %cst_33 = arith.constant dense<0.000000e+00> : vector<256x8xf32>
    %58 = tpu.matmul %56, %57, %cst_33 {dimension_numbers = #tpu.dot_dimension_numbers<[1], [0], [0], [1], [0, 0, 1, 1], [], []>} : vector<256x24xf32>, vector<24x8xf32>, vector<256x8xf32> -> vector<256x8xf32>
    %59 = arith.addf %51, %58 : vector<256x8xf32>
    %60 = vector.extract_strided_slice %44 {offsets = [2, 0, 0], sizes = [16, 16, 8], strides = [1, 1, 1]} : vector<18x18x8xf32> to vector<16x16x8xf32>
    %61 = vector.extract_strided_slice %44 {offsets = [2, 1, 0], sizes = [16, 16, 8], strides = [1, 1, 1]} : vector<18x18x8xf32> to vector<16x16x8xf32>
    %62 = vector.extract_strided_slice %44 {offsets = [2, 2, 0], sizes = [16, 16, 8], strides = [1, 1, 1]} : vector<18x18x8xf32> to vector<16x16x8xf32>
    %63 = tpu.concatenate %60, %61, %62 in 2 : vector<16x16x8xf32>, vector<16x16x8xf32>, vector<16x16x8xf32> -> vector<16x16x24xf32>
    %64 = vector.shape_cast %63 : vector<16x16x24xf32> to vector<256x24xf32>
    %c48 = arith.constant 48 : index
    %c0_34 = arith.constant 0 : index
    %65 = vector.load %arg7[%c48, %c0_34] : memref<72x8xf32, #tpu.memory_space<vmem>>, vector<24x8xf32>
    %cst_35 = arith.constant dense<0.000000e+00> : vector<256x8xf32>
    %66 = tpu.matmul %64, %65, %cst_35 {dimension_numbers = #tpu.dot_dimension_numbers<[1], [0], [0], [1], [0, 0, 1, 1], [], []>} : vector<256x24xf32>, vector<24x8xf32>, vector<256x8xf32> -> vector<256x8xf32>
    %67 = arith.addf %59, %66 : vector<256x8xf32>
    %c0_36 = arith.constant 0 : index
    %c0_37 = arith.constant 0 : index
    %68 = vector.load %arg8[%c0_36, %c0_37] : memref<1x8xf32, #tpu.memory_space<vmem>>, vector<1x8xf32>
    %69 = vector.broadcast %68 : vector<1x8xf32> to vector<256x8xf32>
    %70 = arith.addf %67, %69 : vector<256x8xf32>
    %71 = vector.shape_cast %70 : vector<256x8xf32> to vector<16x16x8xf32>
    %c0_38 = arith.constant 0 : index
    %c0_39 = arith.constant 0 : index
    %c0_40 = arith.constant 0 : index
    %c0_41 = arith.constant 0 : index
    %72 = vector.load %arg9[%c0_38, %c0_39, %c0_40, %c0_41] : memref<1x16x16x8xf32, #tpu.memory_space<vmem>>, vector<1x16x16x8xf32>
    %73 = vector.shape_cast %72 : vector<1x16x16x8xf32> to vector<16x16x8xf32>
    %74 = vector.shape_cast %71 : vector<16x16x8xf32> to vector<1x16x16x8xf32>
    tpu.vector_store %arg9[%c0_38, %c0_39, %c0_40, %c0_41], %74 {strides = array<i32>} : memref<1x16x16x8xf32, #tpu.memory_space<vmem>>, vector<1x16x16x8xf32>,
    %c0_i32_42 = arith.constant 0 : i32
    %75 = arith.cmpi eq, %arg1, %c0_i32_42 : i32
    %76 = arith.extui %75 : i1 to i32
    %c0_i32_43 = arith.constant 0 : i32
    %77 = arith.cmpi ne, %76, %c0_i32_43 : i32
    scf.if %77 {
      %cst_57 = arith.constant 0.000000e+00 : f32
      %95 = vector.broadcast %cst_57 : f32 to vector<1x2x8xf32>
      %c0_58 = arith.constant 0 : index
      %c0_59 = arith.constant 0 : index
      %c0_60 = arith.constant 0 : index
      %96 = vector.load %arg10[%c0_58, %c0_59, %c0_60] : memref<1x2x8xf32, #tpu.memory_space<vmem>>, vector<1x2x8xf32>
      tpu.vector_store %arg10[%c0_58, %c0_59, %c0_60], %95 {strides = array<i32>} : memref<1x2x8xf32, #tpu.memory_space<vmem>>, vector<1x2x8xf32>,
    } else {
    }
    %c0_44 = arith.constant 0 : index
    %c0_45 = arith.constant 0 : index
    %c0_46 = arith.constant 0 : index
    %78 = vector.load %arg10[%c0_44, %c0_45, %c0_46] : memref<1x2x8xf32, #tpu.memory_space<vmem>>, vector<1x1x8xf32>
    %79 = vector.shape_cast %78 : vector<1x1x8xf32> to vector<1x8xf32>
    %cst_47 = arith.constant dense<0.000000e+00> : vector<8xf32>
    %80 = vector.multi_reduction <add>, %70, %cst_47 [0] : vector<256x8xf32> to vector<8xf32>
    %81 = vector.shape_cast %80 : vector<8xf32> to vector<1x8xf32>
    %82 = arith.addf %79, %81 : vector<1x8xf32>
    %c0_48 = arith.constant 0 : index
    %c0_49 = arith.constant 0 : index
    %c0_50 = arith.constant 0 : index
    %83 = vector.load %arg10[%c0_48, %c0_49, %c0_50] : memref<1x2x8xf32, #tpu.memory_space<vmem>>, vector<1x1x8xf32>
    %84 = vector.shape_cast %83 : vector<1x1x8xf32> to vector<1x8xf32>
    %85 = vector.shape_cast %82 : vector<1x8xf32> to vector<1x1x8xf32>
    tpu.vector_store %arg10[%c0_48, %c0_49, %c0_50], %85 {strides = array<i32>} : memref<1x2x8xf32, #tpu.memory_space<vmem>>, vector<1x1x8xf32>,
    %c0_51 = arith.constant 0 : index
    %c1 = arith.constant 1 : index
    %c0_52 = arith.constant 0 : index
    %86 = vector.load %arg10[%c0_51, %c1, %c0_52] : memref<1x2x8xf32, #tpu.memory_space<vmem>>, vector<1x1x8xf32>
    %87 = vector.shape_cast %86 : vector<1x1x8xf32> to vector<1x8xf32>
    %88 = arith.mulf %70, %70 : vector<256x8xf32>
    %cst_53 = arith.constant dense<0.000000e+00> : vector<8xf32>
    %89 = vector.multi_reduction <add>, %88, %cst_53 [0] : vector<256x8xf32> to vector<8xf32>
    %90 = vector.shape_cast %89 : vector<8xf32> to vector<1x8xf32>
    %91 = arith.addf %87, %90 : vector<1x8xf32>
    %c0_54 = arith.constant 0 : index
    %c1_55 = arith.constant 1 : index
    %c0_56 = arith.constant 0 : index
    %92 = vector.load %arg10[%c0_54, %c1_55, %c0_56] : memref<1x2x8xf32, #tpu.memory_space<vmem>>, vector<1x1x8xf32>
    %93 = vector.shape_cast %92 : vector<1x1x8xf32> to vector<1x8xf32>
    %94 = vector.shape_cast %91 : vector<1x8xf32> to vector<1x1x8xf32>
    tpu.vector_store %arg10[%c0_54, %c1_55, %c0_56], %94 {strides = array<i32>} : memref<1x2x8xf32, #tpu.memory_space<vmem>>, vector<1x1x8xf32>,
    return
  }
  func.func @transform_0(%arg0: i32, %arg1: i32) -> (i32, i32, i32, i32) {
    %c16_i32 = arith.constant 16 : i32
    %0 = arith.muli %arg1, %c16_i32 : i32
    %c1_i32 = arith.constant 1 : i32
    %1 = arith.subi %0, %c1_i32 : i32
    %c0_i32 = arith.constant 0 : i32
    %2 = arith.maxsi %1, %c0_i32 : i32
    %c0_i32_0 = arith.constant 0 : i32
    %c0_i32_1 = arith.constant 0 : i32
    %c0_i32_2 = arith.constant 0 : i32
    return %arg0, %2, %c0_i32_0, %c0_i32_1 : i32, i32, i32, i32
  }
  func.func @transform_1(%arg0: i32, %arg1: i32) -> (i32, i32, i32, i32) {
    %c0_i32 = arith.constant 0 : i32
    %c0_i32_0 = arith.constant 0 : i32
    %c0_i32_1 = arith.constant 0 : i32
    return %arg0, %arg1, %c0_i32, %c0_i32_0 : i32, i32, i32, i32
  }
  func.func @transform_2(%arg0: i32, %arg1: i32) -> (i32, i32, i32, i32) {
    %c1_i32 = arith.constant 1 : i32
    %0 = arith.addi %arg1, %c1_i32 : i32
    %c16_i32 = arith.constant 16 : i32
    %1 = arith.muli %0, %c16_i32 : i32
    %c15_i32 = arith.constant 15 : i32
    %2 = arith.minsi %1, %c15_i32 : i32
    %c0_i32 = arith.constant 0 : i32
    %c0_i32_0 = arith.constant 0 : i32
    %c0_i32_1 = arith.constant 0 : i32
    return %arg0, %2, %c0_i32, %c0_i32_0 : i32, i32, i32, i32
  }
  func.func @transform_3(%arg0: i32, %arg1: i32) -> (i32, i32) {
    %c0_i32 = arith.constant 0 : i32
    %c0_i32_0 = arith.constant 0 : i32
    %c0_i32_1 = arith.constant 0 : i32
    return %c0_i32, %c0_i32_0 : i32, i32
  }
  func.func @transform_4(%arg0: i32, %arg1: i32) -> (i32, i32) {
    %c0_i32 = arith.constant 0 : i32
    %c0_i32_0 = arith.constant 0 : i32
    %c0_i32_1 = arith.constant 0 : i32
    return %c0_i32, %c0_i32_0 : i32, i32
  }
  func.func @transform_5(%arg0: i32, %arg1: i32) -> (i32, i32) {
    %c0_i32 = arith.constant 0 : i32
    %c0_i32_0 = arith.constant 0 : i32
    %c0_i32_1 = arith.constant 0 : i32
    return %c0_i32, %c0_i32_0 : i32, i32
  }
  func.func @transform_6(%arg0: i32, %arg1: i32) -> (i32, i32) {
    %c0_i32 = arith.constant 0 : i32
    %c0_i32_0 = arith.constant 0 : i32
    %c0_i32_1 = arith.constant 0 : i32
    return %c0_i32, %c0_i32_0 : i32, i32
  }
  func.func @transform_7(%arg0: i32, %arg1: i32) -> (i32, i32, i32, i32) {
    %c0_i32 = arith.constant 0 : i32
    %c0_i32_0 = arith.constant 0 : i32
    %c0_i32_1 = arith.constant 0 : i32
    return %arg0, %arg1, %c0_i32, %c0_i32_0 : i32, i32, i32, i32
  }
  func.func @transform_8(%arg0: i32, %arg1: i32) -> (i32, i32, i32) {
    %c0_i32 = arith.constant 0 : i32
    %c0_i32_0 = arith.constant 0 : i32
    %c0_i32_1 = arith.constant 0 : i32
    return %arg0, %c0_i32, %c0_i32_0 : i32, i32, i32
  }
}

module attributes {stable_mosaic.version = 11 : i64} {
  func.func @_pass3_kernel(%arg0: i32, %arg1: memref<32x128xf32, #tpu.memory_space<vmem>>, %arg2: memref<32x128xf32, #tpu.memory_space<vmem>>, %arg3: memref<1x128xf32, #tpu.memory_space<vmem>>, %arg4: memref<1x128xf32, #tpu.memory_space<vmem>>, %arg5: memref<32x128xf32, #tpu.memory_space<vmem>>) attributes {dimension_semantics = [#tpu.dimension_semantics<parallel>], iteration_bounds = array<i64: 1>, scalar_prefetch = 0 : i64, scratch_operands = 0 : i64, tpu.core_type = #tpu.core_type<tc>, window_params = [{transform_indices = @transform_0, window_bounds = array<i64: 32, 128>}, {transform_indices = @transform_1, window_bounds = array<i64: 32, 128>}, {pipeline_mode = #tpu.pipeline_mode<synchronous>, transform_indices = @transform_2, window_bounds = array<i64: 1, 128>}, {pipeline_mode = #tpu.pipeline_mode<synchronous>, transform_indices = @transform_3, window_bounds = array<i64: 1, 128>}, {transform_indices = @transform_4, window_bounds = array<i64: 32, 128>}]} {
    %c0 = arith.constant 0 : index
    %c0_0 = arith.constant 0 : index
    %0 = vector.load %arg1[%c0, %c0_0] : memref<32x128xf32, #tpu.memory_space<vmem>>, vector<32x128xf32>
    %c0_1 = arith.constant 0 : index
    %c0_2 = arith.constant 0 : index
    %1 = vector.load %arg2[%c0_1, %c0_2] : memref<32x128xf32, #tpu.memory_space<vmem>>, vector<32x128xf32>
    %c0_3 = arith.constant 0 : index
    %c0_4 = arith.constant 0 : index
    %2 = vector.load %arg3[%c0_3, %c0_4] : memref<1x128xf32, #tpu.memory_space<vmem>>, vector<1x128xf32>
    %3 = vector.broadcast %2 : vector<1x128xf32> to vector<32x128xf32>
    %4 = arith.mulf %0, %3 : vector<32x128xf32>
    %c0_5 = arith.constant 0 : index
    %c0_6 = arith.constant 0 : index
    %5 = vector.load %arg4[%c0_5, %c0_6] : memref<1x128xf32, #tpu.memory_space<vmem>>, vector<1x128xf32>
    %6 = vector.broadcast %5 : vector<1x128xf32> to vector<32x128xf32>
    %7 = arith.addf %4, %6 : vector<32x128xf32>
    %8 = arith.addf %7, %1 : vector<32x128xf32>
    %cst = arith.constant 0.000000e+00 : f32
    %9 = vector.broadcast %cst : f32 to vector<32x128xf32>
    %10 = arith.maximumf %8, %9 : vector<32x128xf32>
    %c0_7 = arith.constant 0 : index
    %c0_8 = arith.constant 0 : index
    %11 = vector.load %arg5[%c0_7, %c0_8] : memref<32x128xf32, #tpu.memory_space<vmem>>, vector<32x128xf32>
    tpu.vector_store %arg5[%c0_7, %c0_8], %10 {strides = array<i32>} : memref<32x128xf32, #tpu.memory_space<vmem>>, vector<32x128xf32>,
    return
  }
  func.func @transform_0(%arg0: i32) -> (i32, i32) {
    %c0_i32 = arith.constant 0 : i32
    %c0_i32_0 = arith.constant 0 : i32
    return %arg0, %c0_i32 : i32, i32
  }
  func.func @transform_1(%arg0: i32) -> (i32, i32) {
    %c0_i32 = arith.constant 0 : i32
    %c0_i32_0 = arith.constant 0 : i32
    return %arg0, %c0_i32 : i32, i32
  }
  func.func @transform_2(%arg0: i32) -> (i32, i32) {
    %c0_i32 = arith.constant 0 : i32
    %c0_i32_0 = arith.constant 0 : i32
    %c0_i32_1 = arith.constant 0 : i32
    return %c0_i32, %c0_i32_0 : i32, i32
  }
  func.func @transform_3(%arg0: i32) -> (i32, i32) {
    %c0_i32 = arith.constant 0 : i32
    %c0_i32_0 = arith.constant 0 : i32
    %c0_i32_1 = arith.constant 0 : i32
    return %c0_i32, %c0_i32_0 : i32, i32
  }
  func.func @transform_4(%arg0: i32) -> (i32, i32) {
    %c0_i32 = arith.constant 0 : i32
    %c0_i32_0 = arith.constant 0 : i32
    return %arg0, %c0_i32 : i32, i32
  }
}

</mosaic_0001>

<bundles_post_ra>
// kernel: tile.13
= control target key start
LH: loop header
LB: loop body
LE: loop exit
PB: predicated region body
PF: predicated region fallthrough
CT: control target
= control target key end

     0   :  { %s28_s0 = inlined_call_operand.vmem [shape: f32[8], index: 0, kind: input, shape index: {}]   ;;  %s29_s1 = inlined_call_operand.vmem [shape: f32[16,8], index: 1, kind: output, shape index: {}]  }
   0x1   :  { %v4_v0 = vld [vmem:[%s28_s0] ss:$0 sm:$0xff] }
   0x2   :  { %5 = vst [vmem:[%s29_s1] sm:$0xff] %v4_v0 }
   0x3   :  { %8 = vst [vmem:[%s29_s1 + $0x8] sm:$0xff] %v4_v0 }

// kernel: tile.14
= control target key start
LH: loop header
LB: loop body
LE: loop exit
PB: predicated region body
PF: predicated region fallthrough
CT: control target
= control target key end

     0   :  { %s131_s10 = smov 120   ;;  %s132_s11 = smov 104   ;;  %vm3_vm0 = vcmask 64512   ;;  %vm9_vm1 = vcmask 1048512   ;;  %vm15_vm2 = vcmask 982912   ;;  %vm21_vm3 = vcmask 917312   ;;  %s207_s0 = inlined_call_operand.vmem [shape: f32[16,8], index: 0, kind: input, shape index: {}]   ;;  %s208_s1 = inlined_call_operand.vmem [shape: f32[1,128], index: 1, kind: output, shape index: {}]  }
   0x1   :  { %v101_v0 = vld [vmem:[%s207_s0 + $0xf] sm:$0x1]   ;;  %v103_v1 = vld [vmem:[%s207_s0 + $0xd] sm:$0x1]   ;;  %v105_v2 = vld [vmem:[%s207_s0 + $0xb] sm:$0x1]  }
   0x2   :  { %7 = vrot.lane.b32.xlu0 %v101_v0, %s131_s10  ;;  %19 = vrot.lane.b32.xlu1 %v103_v1, %s132_s11  ;;  %s133_s14 = smov 88   ;;  %v102_v3 = vld [vmem:[%s207_s0 + $0xe] sm:$0x1]   ;;  %v104_v4 = vld [vmem:[%s207_s0 + $0xc] sm:$0x1]   ;;  %s134_s19 = smov 112  }
   0x3   :  { %31 = vrot.lane.b32.xlu2 %v105_v2, %s133_s14  ;;  %s135_s20 = smov 96   ;;  %v106_v5 = vld [vmem:[%s207_s0 + $0xa] sm:$0x1]   ;;  %s136_s23 = smov 80   ;;  %v107_v6 = vld [vmem:[%s207_s0 + $0x9] sm:$0x1]  }
   0x4   :  { %v108_v7 = vld [vmem:[%s207_s0 + $0x8] sm:$0x1]   ;;  %s137_s28 = smov 72   ;;  %s138_s29 = smov 64   ;;  %v109_v8 = vld [vmem:[%s207_s0 + $0x7] sm:$0x1]  }
   0x5   :  { %s139_s3 = smov 56   ;;  %v110_v9 = vld [vmem:[%s207_s0 + $0x6] sm:$0x1]   ;;  %v111_v10 = vld [vmem:[%s207_s0 + $0x5] sm:$0x1]   ;;  %s140_s8 = smov 48  }
   0x6   :  { %s141_s9 = smov 40   ;;  %v112_v11 = vld [vmem:[%s207_s0 + $0x4] sm:$0x1]   ;;  %s142_s12 = smov 32   ;;  %v113_v12 = vld [vmem:[%s207_s0 + $0x3] sm:$0x1]  }
   0x7   :  { %v114_v13 = vld [vmem:[%s207_s0 + $0x2] sm:$0x1]   ;;  %s143_s17 = smov 24   ;;  %s144_s18 = smov 16   ;;  %v115_v14 = vld [vmem:[%s207_s0 + $0x1] sm:$0x1]  }
   0x8   :  { %s145_s21 = smov 8   ;;  %v2_v15 = vld [vmem:[%s207_s0] sm:$0x1]   ;;  %vm27_vm4 = vcmask 851712   ;;  %vm33_vm5 = vcmask 786112   ;;  %vm39_vm6 = vcmask 720512  }
   0x9   :  { %4 = vst.msk [vmem:[#allocation0] sm:$0x1] %vm3_vm0, %v2_v15   ;;  %vm45_vm7 = vcmask 654912   ;;  %vm51_vm8 = vcmask 589312   ;;  %vm57_vm9 = vcmask 523712   ;;  %vm63_vm10 = vcmask 458112  }
   0xa   :  { %13 = vrot.lane.b32.xlu0 %v102_v3, %s134_s19  ;;  %25 = vrot.lane.b32.xlu1 %v104_v4, %s135_s20  ;;  %vm69_vm11 = vcmask 392512   ;;  %vm75_vm12 = vcmask 326912   ;;  %vm81_vm13 = vcmask 261312   ;;  %vm87_vm14 = vcmask 195712  }
   0xb   :  { %37 = vrot.lane.b32.xlu2 %v106_v5, %s136_s23  ;;  %vm93_vm15 = vcmask 130112  }
  0x12   :  { %43 = vrot.lane.b32.xlu0 %v107_v6, %s137_s28  ;;  %49 = vrot.lane.b32.xlu1 %v108_v7, %s138_s29 }
  0x13   :  { %55 = vrot.lane.b32.xlu2 %v109_v8, %s139_s3 }
  0x1a   :  { %61 = vrot.lane.b32.xlu0 %v110_v9, %s140_s8  ;;  %67 = vrot.lane.b32.xlu1 %v111_v10, %s141_s9 }
  0x1b   :  { %73 = vrot.lane.b32.xlu2 %v112_v11, %s142_s12 }
  0x22   :  { %79 = vrot.lane.b32.xlu0 %v113_v12, %s143_s17  ;;  %85 = vrot.lane.b32.xlu1 %v114_v13, %s144_s18 }
  0x23   :  { %91 = vrot.lane.b32.xlu2 %v115_v14, %s145_s21 }
  0x5d   :  { %v32_v16 = vpop.permute.xlu2 %31  }
  0x65   :  { %v38_v17 = vpop.permute.xlu2 %37  }
  0x6d   :  { %v56_v18 = vpop.permute.xlu2 %55  }
  0x74   :  { %v8_v19 = vpop.permute.xlu0 %7   ;;  %v20_v20 = vpop.permute.xlu1 %19  }
  0x75   :  { %10 = vst.msk [vmem:[#allocation0] sm:$0x1] %vm9_vm1, %v8_v19   ;;  %v74_v21 = vpop.permute.xlu2 %73  }
  0x7c   :  { %v14_v22 = vpop.permute.xlu0 %13   ;;  %v26_v23 = vpop.permute.xlu1 %25  }
  0x7d   :  { %16 = vst.msk [vmem:[#allocation0] sm:$0x1] %vm15_vm2, %v14_v22   ;;  %v92_v24 = vpop.permute.xlu2 %91  }
  0x7e   :  { %22 = vst.msk [vmem:[#allocation0] sm:$0x1] %vm21_vm3, %v20_v20  }
  0x7f   :  { %28 = vst.msk [vmem:[#allocation0] sm:$0x1] %vm27_vm4, %v26_v23  }
  0x80   :  { %34 = vst.msk [vmem:[#allocation0] sm:$0x1] %vm33_vm5, %v32_v16  }
  0x81   :  { %40 = vst.msk [vmem:[#allocation0] sm:$0x1] %vm39_vm6, %v38_v17  }
  0x84   :  { %v44_v25 = vpop.permute.xlu0 %43   ;;  %v50_v26 = vpop.permute.xlu1 %49  }
  0x85   :  { %46 = vst.msk [vmem:[#allocation0] sm:$0x1] %vm45_vm7, %v44_v25  }
  0x86   :  { %52 = vst.msk [vmem:[#allocation0] sm:$0x1] %vm51_vm8, %v50_v26  }
  0x87   :  { %58 = vst.msk [vmem:[#allocation0] sm:$0x1] %vm57_vm9, %v56_v18  }
  0x8c   :  { %v62_v27 = vpop.permute.xlu0 %61   ;;  %v68_v28 = vpop.permute.xlu1 %67  }
  0x8d   :  { %64 = vst.msk [vmem:[#allocation0] sm:$0x1] %vm63_vm10, %v62_v27  }
  0x8e   :  { %70 = vst.msk [vmem:[#allocation0] sm:$0x1] %vm69_vm11, %v68_v28  }
  0x8f   :  { %76 = vst.msk [vmem:[#allocation0] sm:$0x1] %vm75_vm12, %v74_v21  }
  0x94   :  { %v80_v29 = vpop.permute.xlu0 %79   ;;  %v86_v30 = vpop.permute.xlu1 %85  }
  0x95   :  { %82 = vst.msk [vmem:[#allocation0] sm:$0x1] %vm81_vm13, %v80_v29  }
  0x96   :  { %88 = vst.msk [vmem:[#allocation0] sm:$0x1] %vm87_vm14, %v86_v30  }
  0x97   :  { %94 = vst.msk [vmem:[#allocation0] sm:$0x1] %vm93_vm15, %v92_v24  }
  0x9e   :  { %v97_v31 = vld [vmem:[#allocation0] sm:$0x1] }
  0x9f   :  { %100 = vst [vmem:[%s208_s1] sm:$0x1] %v97_v31 }

// kernel: conv_block_nested_forward.5
= control target key start
LH: loop header
LB: loop body
LE: loop exit
PB: predicated region body
PF: predicated region fallthrough
CT: control target
= control target key end

     0   :  { %s126_s0 = inlined_call_operand.vmem [shape: f32[32,128], index: 0, kind: input, shape index: {}]   ;;  %s127_s2 = inlined_call_operand.vmem [shape: f32[1,128], index: 2, kind: input, shape index: {}]   ;;  %s128_s3 = inlined_call_operand.vmem [shape: f32[1,128], index: 3, kind: input, shape index: {}]   ;;  %s129_s1 = inlined_call_operand.vmem [shape: f32[32,128], index: 1, kind: input, shape index: {}]   ;;  %s130_s4 = inlined_call_operand.vmem [shape: f32[32,128], index: 4, kind: output, shape index: {}]  }
   0x1   :  { %v17_v0 = vld [vmem:[%s126_s0] sm:$0xff]  ;;  %v18_v3 = vld [vmem:[%s126_s0 + $0x8] sm:$0xff]  ;;  %v19_v4 = vld [vmem:[%s126_s0 + $0x10] sm:$0xff] }
   0x2   :  { %v57_v1 = vld [vmem:[%s127_s2] ss:$0 sm:$0xff]  ;;  %v20_v8 = vld [vmem:[%s126_s0 + $0x18] sm:$0xff]  ;;  %v22_v10 = vld [vmem:[%s129_s1 + $0x8] sm:$0xff] }
   0x3   :  { %v58_v2 = vld [vmem:[%s128_s3] ss:$0 sm:$0xff]  ;;  %v29_v5 = vmul.f32 %v57_v1, %v17_v0  ;;  %v30_v6 = vmul.f32 %v57_v1, %v18_v3  ;;  %v31_v7 = vmul.f32 %v57_v1, %v19_v4  ;;  %v23_v11 = vld [vmem:[%s129_s1 + $0x10] sm:$0xff]  ;;  %v32_v12 = vmul.f32 %v57_v1, %v20_v8  ;;  %v24_v16 = vld [vmem:[%s129_s1 + $0x18] sm:$0xff] }
   0x4   :  { %v21_v9 = vld [vmem:[%s129_s1] sm:$0xff] }
   0x5   :  { %v37_v13 = vadd.f32 %v58_v2, %v29_v5  ;;  %v38_v14 = vadd.f32 %v58_v2, %v30_v6  ;;  %v39_v15 = vadd.f32 %v58_v2, %v31_v7  ;;  %v40_v17 = vadd.f32 %v58_v2, %v32_v12 }
   0x7   :  { %v41_v18 = vadd.f32 %v37_v13, %v21_v9  ;;  %v42_v19 = vadd.f32 %v38_v14, %v22_v10  ;;  %v43_v20 = vadd.f32 %v39_v15, %v23_v11  ;;  %v44_v21 = vadd.f32 %v40_v17, %v24_v16 }
   0x9   :  { %v45_v22 = vmax.f32 %v41_v18, 0.0  ;;  %v46_v23 = vmax.f32 %v42_v19, 0.0  ;;  %v47_v24 = vmax.f32 %v43_v20, 0.0  ;;  %v48_v25 = vmax.f32 %v44_v21, 0.0 }
   0xb   :  { %49 = vst [vmem:[%s130_s4] sm:$0xff] %v45_v22 }
   0xc   :  { %50 = vst [vmem:[%s130_s4 + $0x8] sm:$0xff] %v46_v23 }
   0xd   :  { %51 = vst [vmem:[%s130_s4 + $0x10] sm:$0xff] %v47_v24 }
   0xe   :  { %52 = vst [vmem:[%s130_s4 + $0x18] sm:$0xff] %v48_v25 }

// kernel: conv_block_nested_forward.3
= control target key start
LH: loop header
LB: loop body
LE: loop exit
PB: predicated region body
PF: predicated region fallthrough
CT: control target
= control target key end

     0   :  { %s2147_s21 = smov 0   ;;  %s2149_s22 = smov 0   ;;  %s3102_s0 = inlined_call_operand.vmem [shape: f32[2,18,18,4], index: 0, kind: input, shape index: {}, may-alias: {0,1,2}]   ;;  %s3103_s1 = inlined_call_operand.vmem [shape: f32[2,18,18,4], index: 1, kind: input, shape index: {}, may-alias: {0,1,2}]   ;;  %s3104_s2 = inlined_call_operand.vmem [shape: f32[2,18,18,4], index: 2, kind: input, shape index: {}, may-alias: {0,1,2}]   ;;  %s3105_s3 = inlined_call_operand.vmem [shape: f32[36,8], index: 3, kind: input, shape index: {}]   ;;  %s3106_s4 = inlined_call_operand.vmem [shape: f32[1,8], index: 4, kind: input, shape index: {}]   ;;  %s3107_s5 = inlined_call_operand.vmem [shape: f32[2,16,16,8], index: 5, kind: output, shape index: {0}]   ;;  %s3108_s6 = inlined_call_operand.vmem [shape: f32[2,2,8], index: 6, kind: output, shape index: {1}]  }
   0x1   :  { %s2151_s23 = smov 0  }
   0x2 LB: > { %s29_s24 = sadd.s32 1, %s2103_s22  ;;  %p1935_p0 = scmp.ge.s32.totalorder %s2107_s23, 1  ;;  %s2107_s23 = sphi %s2151_s23, %s17_s23   ;;  %s2103_s22 = sphi %s2149_s22, %s3110_s22   ;;  %s2099_s21 = sphi %s2147_s21, %s3109_s21  }
   0x3   : > { %p31_p1 = scmp.ge.s32.totalorder %s29_s24, 2  ;;  %p299_p2 = scmp.lt.s32.totalorder %s2107_s23, 3 }
   0x5   : > { %s3112_s24 = smov (%p31_p1, %s29_s24), 0  ;;  %p300_p3 = pnand %p1935_p0, %p299_p2 }
   0x6   : > { %p377_p4 = scmp.lt.s32.totalorder (!%p300_p3), %s2099_s21, 1  ;;  %s2109_s29 = smov (!%p300_p3), 4  }
   0x7   : > { %303 = sbr.rel (%p300_p3) target bundleno = 540 (0x21c), region = 40  ;;  %s2110_s30 = smov (!%p300_p3), 8  }
   0xc   : > { %s3114_s21 = smov (!%p377_p4, %s2099_s21), 1  ;;  %vm537_vm0 = vcmask 1046528   ;;  %vm714_vm1 = vcmask 1045504   ;;  %vm1087_vm2 = vcmask 1043456   ;;  %vm924_vm3 = vcmask 64512  }
   0xd   : > { %s2168_s25 = smul.u32 432, %s3114_s21  ;;  %vm891_vm4 = vcmask 31744   ;;  %vm990_vm5 = vcmask 97280   ;;  %s1941_s13 = sshll.u32 %s3114_s21, 1  ;;  %vm1583_vm6 = vcmask 58368   ;;  %vm1656_vm7 = vcmask 57344  }
   0xe   : > { %s3024_s15 = scalar_lea.vmem %s3108_s6, %s1941_s13 }
   0xf   : > { %s2174_s28 = scalar_lea.vmem %s3102_s0, %s2168_s25  ;;  %s2044_s7 = sadd.s32 384, %s2168_s25 }
  0x10   : > { %v2177_v0 = vld [vmem:[%s2174_s28 + $0x30] sm:$0xff]  ;;  %v2180_v1 = vld [vmem:[%s2174_s28 + $0x38] sm:$0xff]  ;;  %v2183_v2 = vld [vmem:[%s2174_s28] sm:$0xff]  ;;  %s2344_s10 = scalar_lea.vmem %s3103_s1, %s2044_s7 }
  0x11   : > { %v548_v3 = vrot.slane %v2177_v0, 1  ;;  %v549_v4 = vrot.slane %v2180_v1, 1  ;;  %v2188_v5 = vld [vmem:[%s2174_s28 + $0x8] sm:$0xff]  ;;  %v538_v6 = vrot.slane %v2183_v2, 1  ;;  %v2194_v9 = vld [vmem:[%s2174_s28 + $0x18] sm:$0xff]  ;;  %v2197_v10 = vld [vmem:[%s2174_s28 + $0x20] sm:$0xff] }
  0x12   : > { %v539_v7 = vrot.slane %v2188_v5, 1  ;;  %v716_v12 = vrot.slane %v2188_v5, 2  ;;  %v725_v13 = vrot.slane %v2177_v0, 2  ;;  %v726_v14 = vrot.slane %v2180_v1, 2  ;;  %v443_v21 = vld [vmem:[%s2174_s28 + $0x40] sm:$0x3] }
  0x13   : > { %v550_v8 = vsel %vm537_vm0, %v548_v3, %v549_v4  ;;  %v543_v15 = vrot.slane %v2194_v9, 1  ;;  %v544_v16 = vrot.slane %v2197_v10, 1  ;;  %v715_v17 = vrot.slane %v2183_v2, 2  ;;  %v437_v28 = vld [vmem:[%s2174_s28 + $0x10] sm:$0x3]  ;;  %v2230_v37 = vld [vmem:[%s2174_s28 + $0x48] sm:$0xff] }
  0x14   : > { %626 = vrot.lane.b32.xlu0 %v550_v8, %s2109_s29  ;;  %v540_v11 = vsel %vm537_vm0, %v538_v6, %v539_v7  ;;  %v727_v19 = vsel %vm714_vm1, %v725_v13, %v726_v14  ;;  %v720_v22 = vrot.slane %v2194_v9, 2  ;;  %v721_v23 = vrot.slane %v2197_v10, 2  ;;  %v440_v30 = vld [vmem:[%s2174_s28 + $0x28] sm:$0x3]  ;;  %v2233_v38 = vld [vmem:[%s2174_s28 + $0x50] sm:$0xff]  ;;  %v2236_v40 = vld [vmem:[%s2174_s28 + $0x138] sm:$0xff] }
  0x15   : > { %618 = vrot.lane.b32.xlu1 %v540_v11, %s2109_s29  ;;  %v717_v18 = vsel %vm714_vm1, %v715_v17, %v716_v12  ;;  %v545_v20 = vsel %vm537_vm0, %v543_v15, %v544_v16  ;;  %v551_v24 = vrot.slane %v443_v21, 1  ;;  %v728_v25 = vrot.slane %v443_v21, 2  ;;  %v2239_v41 = vld [vmem:[%s2174_s28 + $0x140] sm:$0xff]  ;;  %v446_v50 = vld [vmem:[%s2174_s28 + $0x58] sm:$0x3]  ;;  %v2273_v6 = vld [vmem:[%s2174_s28 + $0x150] sm:$0xff] }
  0x16   : > { %795 = vrot.lane.b32.xlu2 %v717_v18, %s2110_s30  ;;  %v722_v26 = vsel %vm714_vm1, %v720_v22, %v721_v23  ;;  %v541_v31 = vrot.slane %v437_v28, 1  ;;  %v546_v32 = vrot.slane %v440_v30, 1  ;;  %v718_v33 = vrot.slane %v437_v28, 2  ;;  %v476_v57 = vld [vmem:[%s2174_s28 + $0x148] sm:$0x3]  ;;  %v2268_v3 = vld [vmem:[%s2174_s28 + $0x60] sm:$0xff] }
  0x17   : > { %v552_v27 = vsel %vm537_vm0, %v549_v4, %v551_v24  ;;  %v729_v29 = vsel %vm714_vm1, %v726_v14, %v728_v25  ;;  %v723_v39 = vrot.slane %v440_v30, 2  ;;  %v553_v42 = vrot.slane %v2230_v37, 1  ;;  %v2280_v11 = vld [vmem:[%s2174_s28 + $0x68] sm:$0xff]  ;;  %v479_v22 = vld [vmem:[%s2174_s28 + $0x160] sm:$0x3]  ;;  %v2304_v30 = vld [vmem:[%s2174_s28 + $0x78] sm:$0xff] }
  0x18   : > { %v542_v34 = vsel %vm537_vm0, %v539_v7, %v541_v31  ;;  %v547_v35 = vsel %vm537_vm0, %v544_v16, %v546_v32  ;;  %v719_v36 = vsel %vm714_vm1, %v716_v12, %v718_v33  ;;  %v554_v43 = vrot.slane %v2233_v38, 1  ;;  %v2276_v7 = vld [vmem:[%s2174_s28 + $0x158] sm:$0xff]  ;;  %v2307_v31 = vld [vmem:[%s2174_s28 + $0x80] sm:$0xff] }
  0x19   : > { %v603_v44 = vrot.slane %v2236_v40, 1  ;;  %v604_v45 = vrot.slane %v2239_v41, 1  ;;  %v724_v46 = vsel %vm714_vm1, %v721_v23, %v723_v39  ;;  %v730_v49 = vrot.slane %v2230_v37, 2  ;;  %v2316_v39 = vld [vmem:[%s2174_s28 + $0x168] sm:$0xff] }
  0x1a   : > { %v555_v47 = vsel %vm537_vm0, %v553_v42, %v554_v43  ;;  %v731_v51 = vrot.slane %v2233_v38, 2  ;;  %v780_v52 = vrot.slane %v2236_v40, 2  ;;  %v781_v53 = vrot.slane %v2239_v41, 2 }
  0x1b   : > { %v605_v48 = vsel %vm537_vm0, %v603_v44, %v604_v45  ;;  %v556_v54 = vrot.slane %v446_v50, 1  ;;  %v606_v59 = vrot.slane %v476_v57, 1  ;;  %v733_v60 = vrot.slane %v446_v50, 2  ;;  %v2322_v44 = vld [vmem:[%s2174_s28 + $0x170] sm:$0xff] }
  0x1c   : > { %803 = vrot.lane.b32.xlu0 %v727_v19, %s2110_s30  ;;  %v732_v55 = vsel %vm714_vm1, %v730_v49, %v731_v51  ;;  %v782_v56 = vsel %vm714_vm1, %v780_v52, %v781_v53  ;;  %v783_v61 = vrot.slane %v476_v57, 2  ;;  %v558_v8 = vrot.slane %v2268_v3, 1  ;;  %v452_v52 = vld [vmem:[%s2174_s28 + $0x88] sm:$0x3] }
  0x1d   : > { %622 = vrot.lane.b32.xlu1 %v545_v20, %s2109_s29  ;;  %v557_v58 = vsel %vm537_vm0, %v554_v43, %v556_v54  ;;  %v607_v62 = vsel %vm537_vm0, %v604_v45, %v606_v59  ;;  %v734_v63 = vsel %vm714_vm1, %v731_v51, %v733_v60  ;;  %v559_v12 = vrot.slane %v2280_v11, 1  ;;  %v449_v20 = vld [vmem:[%s2174_s28 + $0x70] sm:$0x3]  ;;  %v482_v54 = vld [vmem:[%s2174_s28 + $0x178] sm:$0x3] }
  0x1e   : > { %799 = vrot.lane.b32.xlu2 %v722_v26, %s2110_s30  ;;  %v784_v4 = vsel %vm714_vm1, %v781_v53, %v783_v61  ;;  %v608_v13 = vrot.slane %v2273_v6, 1  ;;  %v609_v14 = vrot.slane %v2276_v7, 1  ;;  %v735_v15 = vrot.slane %v2268_v3, 2  ;;  %v2348_v60 = vld [vmem:[%s2174_s28 + $0x90] sm:$0xff] }
  0x1f   : > { %v736_v16 = vrot.slane %v2280_v11, 2  ;;  %v560_v17 = vsel %vm537_vm0, %v558_v8, %v559_v12  ;;  %v785_v21 = vrot.slane %v2273_v6, 2  ;;  %v786_v23 = vrot.slane %v2276_v7, 2  ;;  %v2359_v8 = vld [vmem:[%s2344_s10 + $0x8] sm:$0xff] }
  0x20   : > { %v610_v18 = vsel %vm537_vm0, %v608_v13, %v609_v14  ;;  %v561_v24 = vrot.slane %v449_v20, 1  ;;  %v611_v25 = vrot.slane %v479_v22, 1  ;;  %v788_v32 = vrot.slane %v479_v22, 2  ;;  %v988_v22 = vld [vmem:[%s3105_s3 + $0xc] sm:$0xff] }
  0x21   : > { %v737_v19 = vsel %vm714_vm1, %v735_v15, %v736_v16  ;;  %v787_v26 = vsel %vm714_vm1, %v785_v21, %v786_v23  ;;  %v563_v33 = vrot.slane %v2304_v30, 1  ;;  %v613_v43 = vrot.slane %v2316_v39, 1  ;;  %v2371_v15 = vld [vmem:[%s3105_s3 + $0x20] sm:$0xf]  ;;  %v2389_v21 = vld [vmem:[%s3105_s3 + $0x18] sm:$0xff] }
  0x22   : > { %v612_v28 = vsel %vm537_vm0, %v609_v14, %v611_v25  ;;  %v614_v45 = vrot.slane %v2322_v44, 1  ;;  %v791_v49 = vrot.slane %v2322_v44, 2  ;;  %v743_v57 = vrot.slane %v452_v52, 2  ;;  %v958_v14 = vld [vmem:[%s3105_s3 + $0x8] sm:$0xf]  ;;  %2008 = vmatpush.msk.msra.mxu2 %vm1087_vm2, %v2371_v15 }
  0x23   : > { %1975 = vmatpush.msk.msra.mxu1 %vm1087_vm2, %v958_v14  ;;  %v745_v25 = vrot.slane %v2348_v60, 2 }
  0x24   : > { %628 = vrot.lane.b32.xlu0 %v552_v27, %s2109_s29  ;;  %v562_v27 = vsel %vm537_vm0, %v559_v12, %v561_v24  ;;  %v615_v50 = vsel %vm537_vm0, %v613_v43, %v614_v45  ;;  %v568_v12 = vrot.slane %v2348_v60, 1  ;;  %1381 = vmatpush.msra.mxu2 %v2389_v21 }
  0x25   : > { %805 = vrot.lane.b32.xlu1 %v729_v29, %s2110_s30  ;;  %v738_v29 = vrot.slane %v449_v20, 2  ;;  %v957_v20 = vld [vmem:[%s3105_s3] sm:$0xff] }
  0x26   : > { %620 = vrot.lane.b32.xlu2 %v542_v34, %s2109_s29  ;;  %v564_v34 = vrot.slane %v2307_v31, 1  ;;  %1228 = vmatpush.msra.mxu1 %v957_v20 }
  0x28   : > { %v565_v42 = vsel %vm537_vm0, %v563_v33, %v564_v34 }
  0x2c   : > { %624 = vrot.lane.b32.xlu0 %v547_v35, %s2109_s29  ;;  %v739_v35 = vsel %vm714_vm1, %v736_v16, %v738_v29 }
  0x2d   : > { %797 = vrot.lane.b32.xlu1 %v719_v36, %s2110_s30  ;;  %v789_v36 = vsel %vm714_vm1, %v786_v23, %v788_v32  ;;  %v974_v32 = vrot.slane %v2359_v8, 2 }
  0x2e   : > { %801 = vrot.lane.b32.xlu2 %v724_v46, %s2110_s30  ;;  %v740_v46 = vrot.slane %v2304_v30, 2 }
  0x34   : > { %630 = vrot.lane.b32.xlu0 %v555_v47, %s2109_s29  ;;  %v741_v47 = vrot.slane %v2307_v31, 2 }
  0x35   : > { %670 = vrot.lane.b32.xlu1 %v605_v48, %s2109_s29  ;;  %v790_v48 = vrot.slane %v2316_v39, 2 }
  0x36   : > { %807 = vrot.lane.b32.xlu2 %v732_v55, %s2110_s30  ;;  %v742_v51 = vsel %vm714_vm1, %v740_v46, %v741_v47  ;;  %v566_v55 = vrot.slane %v452_v52, 1  ;;  %v744_v61 = vsel %vm714_vm1, %v741_v47, %v743_v57  ;;  %v2422_v52 = vld [vmem:[%s2174_s28 + $0x120] sm:$0xff] }
  0x37   : > { %v792_v53 = vsel %vm714_vm1, %v790_v48, %v791_v49 }
  0x3c   : > { %847 = vrot.lane.b32.xlu0 %v782_v56, %s2110_s30  ;;  %v616_v56 = vrot.slane %v482_v54, 1 }
  0x3d   : > { %632 = vrot.lane.b32.xlu1 %v557_v58, %s2109_s29  ;;  %v567_v58 = vsel %vm537_vm0, %v564_v34, %v566_v55  ;;  %v2429_v55 = vld [vmem:[%s2174_s28 + $0xb0] sm:$0xff] }
  0x3e   : > { %672 = vrot.lane.b32.xlu2 %v607_v62, %s2109_s29  ;;  %v617_v59 = vsel %vm537_vm0, %v614_v45, %v616_v56  ;;  %v2353_v62 = vld [vmem:[%s2174_s28 + $0x98] sm:$0xff]  ;;  %v574_v57 = vrot.slane %v2429_v55, 1 }
  0x3f   : > { %v569_v13 = vrot.slane %v2353_v62, 1 }
  0x41   : > { %v570_v23 = vsel %vm537_vm0, %v568_v12, %v569_v13  ;;  %v751_v12 = vrot.slane %v2429_v55, 2 }
  0x44   : > { %809 = vrot.lane.b32.xlu0 %v734_v63, %s2110_s30  ;;  %v793_v63 = vrot.slane %v482_v54, 2 }
  0x45   : > { %849 = vrot.lane.b32.xlu1 %v784_v4, %s2110_s30  ;;  %v2356_v4 = vld [vmem:[%s2344_s10] sm:$0xff] }
  0x46   : > { %634 = vrot.lane.b32.xlu2 %v560_v17, %s2109_s29  ;;  %v962_v16 = vrot.slane %v2356_v4, 1  ;;  %v963_v17 = vrot.slane %v2359_v8, 1  ;;  %v973_v29 = vrot.slane %v2356_v4, 2 }
  0x48   : > { %v964_v24 = vsel %vm537_vm0, %v962_v16, %v963_v17 }
  0x4c   : > { %674 = vrot.lane.b32.xlu0 %v610_v18, %s2109_s29  ;;  %v794_v18 = vsel %vm714_vm1, %v791_v49, %v793_v63 }
  0x4d   : > { %811 = vrot.lane.b32.xlu1 %v737_v19, %s2110_s30  ;;  %v989_v19 = vld [vmem:[%s3105_s3 + $0x14] sm:$0xf] }
  0x4e   : > { %851 = vrot.lane.b32.xlu2 %v787_v26, %s2110_s30  ;;  %1942 = vmatpush.msk.msra.mxu0 %vm1087_vm2, %v989_v19  ;;  %v455_v26 = vld [vmem:[%s2174_s28 + $0xa0] sm:$0x3] }
  0x4f   : > { %2048 = vmatpush.msk.msra.mxu3 %vm1087_vm2, %v989_v19  ;;  %v571_v33 = vrot.slane %v455_v26, 1  ;;  %v748_v46 = vrot.slane %v455_v26, 2 }
  0x50   : > { %1106 = vmatpush.msra.mxu0 %v988_v22 }
  0x51   : > { %2049 = vmatpush.msra.mxu3 %v988_v22  ;;  %v775_v22 = vrot.slane %v2422_v52, 2 }
  0x53   : > { %2050 = vmatpush.msk.msrb.mxu3 %vm1087_vm2, %v958_v14 }
  0x54   : > { %636 = vrot.lane.b32.xlu0 %v562_v27, %s2109_s29 }
  0x55   : > { %676 = vrot.lane.b32.xlu1 %v612_v28, %s2109_s29  ;;  %v746_v28 = vrot.slane %v2353_v62, 2  ;;  %2051 = vmatpush.msrb.mxu3 %v957_v20  ;;  %v458_v20 = vld [vmem:[%s2174_s28 + $0xb8] sm:$0x3] }
  0x56   : > { %813 = vrot.lane.b32.xlu2 %v739_v35, %s2110_s30  ;;  %v975_v35 = vsel %vm714_vm1, %v973_v29, %v974_v32 }
  0x57   : > { %v747_v34 = vsel %vm714_vm1, %v745_v25, %v746_v28  ;;  %v749_v49 = vsel %vm714_vm1, %v746_v28, %v748_v46  ;;  %v2473_v46 = vld [vmem:[%s2174_s28 + $0xc8] sm:$0xff] }
  0x5c   : > { %853 = vrot.lane.b32.xlu0 %v789_v36, %s2110_s30  ;;  %v485_v36 = vld [vmem:[%s2344_s10 + $0x10] sm:$0x3] }
  0x5d   : > { %638 = vrot.lane.b32.xlu1 %v565_v42, %s2109_s29  ;;  %v572_v42 = vsel %vm537_vm0, %v569_v13, %v571_v33  ;;  %v965_v43 = vrot.slane %v485_v36, 1  ;;  %v976_v47 = vrot.slane %v485_v36, 2 }
  0x5e   : > { %678 = vrot.lane.b32.xlu2 %v615_v50, %s2109_s29  ;;  %v2417_v50 = vld [vmem:[%s2174_s28 + $0xa8] sm:$0xff] }
  0x5f   : > { %v966_v48 = vsel %vm537_vm0, %v963_v17, %v965_v43  ;;  %v573_v54 = vrot.slane %v2417_v50, 1  ;;  %v750_v63 = vrot.slane %v2417_v50, 2  ;;  %v2470_v43 = vld [vmem:[%s2174_s28 + $0xc0] sm:$0xff] }
  0x61   : > { %v575_v13 = vsel %vm537_vm0, %v573_v54, %v574_v57  ;;  %v752_v19 = vsel %vm714_vm1, %v750_v63, %v751_v12  ;;  %v461_v63 = vld [vmem:[%s2174_s28 + $0xd0] sm:$0x3] }
  0x64   : > { %815 = vrot.lane.b32.xlu0 %v742_v51, %s2110_s30  ;;  %v977_v51 = vsel %vm714_vm1, %v974_v32, %v976_v47 }
  0x65   : > { %855 = vrot.lane.b32.xlu1 %v792_v53, %s2110_s30  ;;  %v2425_v53 = vld [vmem:[%s2174_s28 + $0x128] sm:$0xff] }
  0x66   : > { %640 = vrot.lane.b32.xlu2 %v567_v58, %s2109_s29  ;;  %v598_v58 = vrot.slane %v2422_v52, 1  ;;  %v776_v25 = vrot.slane %v2425_v53, 2 }
  0x68   : > { %v777_v29 = vsel %vm714_vm1, %v775_v22, %v776_v25 }
  0x6c   : > { %680 = vrot.lane.b32.xlu0 %v617_v59, %s2109_s29  ;;  %v599_v59 = vrot.slane %v2425_v53, 1 }
  0x6d   : > { %817 = vrot.lane.b32.xlu1 %v744_v61, %s2110_s30 }
  0x6e   : > { %857 = vrot.lane.b32.xlu2 %v794_v18, %s2110_s30  ;;  %v600_v17 = vsel %vm537_vm0, %v598_v58, %v599_v59 }
  0x70   : > { %v796_v27 = vpop.permute.xlu2 %795 }
  0x74   : > { %642 = vrot.lane.b32.xlu0 %v570_v23, %s2109_s29  ;;  %v473_v23 = vld [vmem:[%s2174_s28 + $0x130] sm:$0x3] }
  0x75   : > { %967 = vrot.lane.b32.xlu1 %v964_v24, %s2109_s29  ;;  %v601_v28 = vrot.slane %v473_v23, 1 }
  0x76   : > { %819 = vrot.lane.b32.xlu2 %v747_v34, %s2110_s30 }
  0x78   : > { %v800_v45 = vpop.permute.xlu2 %799 }
  0x7c   : > { %978 = vrot.lane.b32.xlu0 %v975_v35, %s2110_s30 }
  0x7d   : > { %644 = vrot.lane.b32.xlu1 %v572_v42, %s2109_s29  ;;  %v753_v42 = vrot.slane %v458_v20, 2 }
  0x7e   : > { %969 = vrot.lane.b32.xlu2 %v966_v48, %s2109_s29  ;;  %v578_v48 = vrot.slane %v2470_v43, 1 }
  0x80   : > { %v2431_v56 = vpop.permute.xlu2 %620 }
  0x84   : > { %821 = vrot.lane.b32.xlu0 %v749_v49, %s2110_s30  ;;  %v579_v49 = vrot.slane %v2473_v46, 1 }
  0x85   : > { %980 = vrot.lane.b32.xlu1 %v977_v51, %s2110_s30  ;;  %v754_v51 = vsel %vm714_vm1, %v751_v12, %v753_v42  ;;  %v755_v12 = vrot.slane %v2470_v43, 2 }
  0x86   : > { %v627_v61 = vpop.permute.xlu0 %626  ;;  %646 = vrot.lane.b32.xlu2 %v575_v13, %s2109_s29 }
  0x87   : > { %v619_v14 = vpop.permute.xlu1 %618  ;;  %v896_v26 = vsel %vm891_vm4, %v2177_v0, %v627_v61  ;;  %v602_v0 = vsel %vm537_vm0, %v599_v59, %v601_v28  ;;  %v580_v61 = vsel %vm537_vm0, %v578_v48, %v579_v49 }
  0x88   : > { %v892_v16 = vsel %vm891_vm4, %v2183_v2, %v619_v14  ;;  %v802_v24 = vpop.permute.xlu2 %801  ;;  %v576_v2 = vrot.slane %v458_v20, 1  ;;  %v581_v14 = vrot.slane %v461_v63, 1 }
  0x89   : > { %v925_v18 = vsel %vm924_vm3, %v892_v16, %v796_v27  ;;  %v756_v16 = vrot.slane %v2473_v46, 2 }
  0x8a   : > { %1976 = vmatmul.msk.f32.vlgmr.msra.gmra.mxu1 %vm990_vm5, %v925_v18  ;;  %v577_v36 = vsel %vm537_vm0, %v574_v57, %v576_v2  ;;  %v758_v18 = vrot.slane %v461_v63, 2  ;;  %v2510_v2 = vld [vmem:[%s2174_s28 + $0xd8] sm:$0xff] }
  0x8b   : > { %v757_v22 = vsel %vm714_vm1, %v755_v12, %v756_v16  ;;  %v583_v28 = vrot.slane %v2510_v2, 1 }
  0x8c   : > { %666 = vrot.lane.b32.xlu0 %v600_v17, %s2109_s29 }
  0x8d   : > { %823 = vrot.lane.b32.xlu1 %v752_v19, %s2110_s30 }
  0x8e   : > { %v804_v27 = vpop.permute.xlu0 %803  ;;  %843 = vrot.lane.b32.xlu2 %v777_v29, %s2110_s30 }
  0x8f   : > { %v623_v32 = vpop.permute.xlu1 %622  ;;  %v2458_v33 = vsel %vm924_vm3, %v896_v26, %v804_v27  ;;  %v2513_v26 = vld [vmem:[%s2174_s28 + $0xe0] sm:$0xff] }
  0x90   : > { %v894_v34 = vsel %vm891_vm4, %v2194_v9, %v623_v32  ;;  %2009 = vmatmul.msk.f32.vlgmr.msra.gmra.mxu2 %vm990_vm5, %v2458_v33  ;;  %v808_v9 = vpop.permute.xlu2 %807  ;;  %v761_v29 = vrot.slane %v2513_v26, 2  ;;  %v584_v32 = vrot.slane %v2513_v26, 1 }
  0x91   : > { %v927_v35 = vsel %vm924_vm3, %v894_v34, %v800_v45  ;;  %v778_v45 = vrot.slane %v473_v23, 2 }
  0x92   : > { %1943 = vmatmul.msk.f32.vlgmr.msra.gmra.mxu0 %vm990_vm5, %v927_v35 }
  0x93   : > { %v779_v59 = vsel %vm714_vm1, %v776_v25, %v778_v45  ;;  %v585_v45 = vsel %vm537_vm0, %v583_v28, %v584_v32 }
  0x94   : > { %648 = vrot.lane.b32.xlu0 %v577_v36, %s2109_s29 }
  0x95   : > { %668 = vrot.lane.b32.xlu1 %v602_v0, %s2109_s29 }
  0x96   : > { %v629_v47 = vpop.permute.xlu0 %628  ;;  %825 = vrot.lane.b32.xlu2 %v754_v51, %s2110_s30  ;;  %v2539_v51 = vld [vmem:[%s2174_s28 + $0xf0] sm:$0xff] }
  0x97   : > { %v897_v54 = vsel %vm891_vm4, %v2180_v1, %v629_v47  ;;  %v806_v57 = vpop.permute.xlu1 %805  ;;  %v893_v1 = vsel %vm891_vm4, %v2188_v5, %v2431_v56  ;;  %v582_v5 = vsel %vm537_vm0, %v579_v49, %v581_v14  ;;  %v759_v56 = vsel %vm714_vm1, %v756_v16, %v758_v18  ;;  %v467_v18 = vld [vmem:[%s2174_s28 + $0x100] sm:$0x3] }
  0x98   : > { %v2483_v58 = vsel %vm924_vm3, %v897_v54, %v806_v57  ;;  %v2491_v13 = vpop.permute.xlu2 %672  ;;  %v588_v57 = vrot.slane %v2539_v51, 1  ;;  %v765_v63 = vrot.slane %v2539_v51, 2 }
  0x99   : > { %2010 = vmatmul.msk.f32.gmra.mxu2 %vm990_vm5, %v2483_v58 }
  0x9c   : > { %845 = vrot.lane.b32.xlu0 %v779_v59, %s2110_s30 }
  0x9d   : > { %650 = vrot.lane.b32.xlu1 %v580_v61, %s2109_s29 }
  0x9e   : > { %v625_v17 = vpop.permute.xlu0 %624  ;;  %827 = vrot.lane.b32.xlu2 %v757_v22, %s2110_s30  ;;  %v2572_v22 = vld [vmem:[%s2174_s28 + $0x110] sm:$0xff] }
  0x9f   : > { %v895_v19 = vsel %vm891_vm4, %v2197_v10, %v625_v17  ;;  %v798_v20 = vpop.permute.xlu1 %797  ;;  %v464_v10 = vld [vmem:[%s2174_s28 + $0xe8] sm:$0x3] }
  0xa0   : > { %v926_v23 = vsel %vm924_vm3, %v893_v1, %v798_v20  ;;  %v928_v25 = vsel %vm924_vm3, %v895_v19, %v802_v24  ;;  %v2517_v27 = vpop.permute.xlu2 %634  ;;  %v760_v24 = vrot.slane %v2510_v2, 2  ;;  %v586_v36 = vrot.slane %v464_v10, 1  ;;  %v2569_v20 = vld [vmem:[%s2174_s28 + $0x108] sm:$0xff] }
  0xa1   : > { %1977 = vmatmul.msk.f32.gmra.mxu1 %vm990_vm5, %v926_v23  ;;  %1944 = vmatmul.msk.f32.gmra.mxu0 %vm990_vm5, %v928_v25  ;;  %v763_v54 = vrot.slane %v464_v10, 2  ;;  %v594_v10 = vrot.slane %v2572_v22, 1 }
  0xa2   : > { %v762_v48 = vsel %vm714_vm1, %v760_v24, %v761_v29  ;;  %v587_v49 = vsel %vm537_vm0, %v584_v32, %v586_v36  ;;  %v470_v24 = vld [vmem:[%s2174_s28 + $0x118] sm:$0x3] }
  0xa3   : > { %v596_v36 = vrot.slane %v470_v24, 1 }
  0xa4   : > { %652 = vrot.lane.b32.xlu0 %v582_v5, %s2109_s29 }
  0xa5   : > { %829 = vrot.lane.b32.xlu1 %v759_v56, %s2110_s30  ;;  %v593_v56 = vrot.slane %v2569_v20, 1 }
  0xa6   : > { %v631_v34 = vpop.permute.xlu0 %630  ;;  %654 = vrot.lane.b32.xlu2 %v585_v45, %s2109_s29  ;;  %v773_v45 = vrot.slane %v470_v24, 2 }
  0xa7   : > { %v898_v0 = vsel %vm891_vm4, %v2230_v37, %v631_v34  ;;  %v671_v42 = vpop.permute.xlu1 %670  ;;  %v2542_v37 = vld [vmem:[%s2174_s28 + $0xf8] sm:$0xff]  ;;  %s2046_s28 = sadd.s32 408, %s2168_s25  ;;  %s2047_s25 = sshll.u32 %s3114_s21, 8 }
  0xa8   : > { %v2529_v47 = vsel %vm924_vm3, %v898_v0, %v808_v9  ;;  %v852_v9 = vpop.permute.xlu2 %851  ;;  %v589_v59 = vrot.slane %v2542_v37, 1  ;;  %v766_v12 = vrot.slane %v2542_v37, 2  ;;  %s416_s9 = scalar_lea.vmem %s3104_s2, %s2046_s28  ;;  %s2755_s12 = scalar_lea.vmem %s3107_s5, %s2047_s25 }
  0xa9   : > { %1978 = vmatmul.msk.f32.gmra.mxu1 %vm990_vm5, %v927_v35  ;;  %1945 = vmatmul.msk.f32.gmra.mxu0 %vm990_vm5, %v2458_v33  ;;  %v918_v35 = vsel %vm891_vm4, %v2236_v40, %v671_v42  ;;  %v764_v40 = vsel %vm714_vm1, %v761_v29, %v763_v54  ;;  %v591_v29 = vrot.slane %v467_v18, 1  ;;  %v771_v42 = vrot.slane %v2572_v22, 2 }
  0xaa   : > { %2011 = vmatmul.msk.f32.gmra.mxu2 %vm990_vm5, %v2529_v47  ;;  %v590_v16 = vsel %vm537_vm0, %v588_v57, %v589_v59  ;;  %v767_v17 = vsel %vm714_vm1, %v765_v63, %v766_v12 }
  0xab   : > { %v592_v32 = vsel %vm537_vm0, %v589_v59, %v591_v29 }
  0xac   : > { %831 = vrot.lane.b32.xlu0 %v762_v48, %s2110_s30 }
  0xad   : > { %656 = vrot.lane.b32.xlu1 %v587_v49, %s2109_s29 }
  0xae   : > { %v848_v61 = vpop.permute.xlu0 %847  ;;  %833 = vrot.lane.b32.xlu2 %v764_v40, %s2110_s30 }
  0xaf   : > { %v633_v1 = vpop.permute.xlu1 %632  ;;  %v2554_v14 = vsel %vm924_vm3, %v918_v35, %v848_v61 }
  0xb0   : > { %1967 = vmatmul.msk.f32.vlgmr.msra.gmra.mxu3 %vm990_vm5, %v2554_v14  ;;  %v814_v19 = vpop.permute.xlu2 %813  ;;  %v899_v23 = vsel %vm891_vm4, %v2233_v38, %v633_v1 }
  0xb1   : > { %1979 = vmatmul.msk.f32.gmra.mxu1 %vm990_vm5, %v928_v25  ;;  %1946 = vmatmul.msk.f32.gmra.mxu0 %vm990_vm5, %v2483_v58  ;;  %v919_v25 = vsel %vm891_vm4, %v2239_v41, %v2491_v13  ;;  %v595_v13 = vsel %vm537_vm0, %v593_v56, %v594_v10 }
  0xb2   : > { %2052 = vmatpush.msk.msra.mxu3 %vm1087_vm2, %v2371_v15  ;;  %v768_v15 = vrot.slane %v467_v18, 2 }
  0xb4   : > { %658 = vrot.lane.b32.xlu0 %v590_v16, %s2109_s29  ;;  %2053 = vmatpush.msra.mxu3 %v2389_v21  ;;  %v769_v41 = vsel %vm714_vm1, %v766_v12, %v768_v15 }
  0xb5   : > { %835 = vrot.lane.b32.xlu1 %v767_v17, %s2110_s30 }
  0xb6   : > { %v810_v5 = vpop.permute.xlu0 %809  ;;  %660 = vrot.lane.b32.xlu2 %v592_v32, %s2109_s29 }
  0xb7   : > { %v850_v28 = vpop.permute.xlu1 %849  ;;  %v932_v38 = vsel %vm924_vm3, %v899_v23, %v810_v5 }
  0xb8   : > { %2012 = vmatmul.msk.f32.gmra.mxu2 %vm990_vm5, %v932_v38  ;;  %v2587_v21 = vsel %vm924_vm3, %v919_v25, %v850_v28  ;;  %v679_v34 = vpop.permute.xlu2 %678 }
  0xb9   : > { %1980 = vmatmul.msk.f32.gmra.mxu1 %vm990_vm5, %v2458_v33  ;;  %1947 = vmatmul.msk.f32.gmra.mxu0 %vm990_vm5, %v2529_v47  ;;  %v900_v33 = vsel %vm891_vm4, %v2268_v3, %v2517_v27  ;;  %v597_v3 = vsel %vm537_vm0, %v594_v10, %v596_v36  ;;  %v770_v27 = vrot.slane %v2569_v20, 2 }
  0xba   : > { %1968 = vmatmul.msk.f32.gmra.mxu3 %vm990_vm5, %v2587_v21 }
  0xbc   : > { %837 = vrot.lane.b32.xlu0 %v769_v41, %s2110_s30 }
  0xbd   : > { %662 = vrot.lane.b32.xlu1 %v595_v13, %s2109_s29 }
  0xbe   : > { %v675_v0 = vpop.permute.xlu0 %674 }
  0xbf   : > { %v920_v48 = vsel %vm891_vm4, %v2273_v6, %v675_v0  ;;  %v812_v49 = vpop.permute.xlu1 %811  ;;  %v774_v6 = vsel %vm714_vm1, %v771_v42, %v773_v45 }
  0xc0   : > { %v933_v54 = vsel %vm924_vm3, %v900_v33, %v812_v49  ;;  %v2610_v35 = vsel %vm924_vm3, %v920_v48, %v852_v9  ;;  %v772_v9 = vsel %vm714_vm1, %v770_v27, %v771_v42  ;;  %v641_v61 = vpop.permute.xlu2 %640 }
  0xc1   : > { %1981 = vmatmul.msk.f32.gmra.mxu1 %vm990_vm5, %v2483_v58  ;;  %2013 = vmatmul.msk.f32.gmra.mxu2 %vm990_vm5, %v933_v54 }
  0xc2   : > { %1948 = vmatmul.msk.f32.gmra.mxu0 %vm990_vm5, %v932_v38  ;;  %1969 = vmatmul.msk.f32.gmra.mxu3 %vm990_vm5, %v2610_v35 }
  0xc3   : > { %839 = vrot.lane.b32.xlu2 %v772_v9, %s2110_s30 }
  0xc4   : > { %664 = vrot.lane.b32.xlu0 %v597_v3, %s2109_s29 }
  0xc5   : > { %841 = vrot.lane.b32.xlu1 %v774_v6, %s2110_s30 }
  0xc6   : > { %v637_v58 = vpop.permute.xlu0 %636 }
  0xc7   : > { %v901_v57 = vsel %vm891_vm4, %v2280_v11, %v637_v58  ;;  %v677_v59 = vpop.permute.xlu1 %676 }
  0xc8   : > { %v934_v63 = vsel %vm924_vm3, %v901_v57, %v814_v19  ;;  %v921_v12 = vsel %vm891_vm4, %v2276_v7, %v677_v59  ;;  %v858_v11 = vpop.permute.xlu2 %857  ;;  %v922_v7 = vsel %vm891_vm4, %v2316_v39, %v679_v34  ;;  %v903_v39 = vsel %vm891_vm4, %v2307_v31, %v641_v61  ;;  %v2671_v31 = vld [vmem:[%s416_s9] sm:$0xff]  ;;  %v488_v34 = vld [vmem:[%s416_s9 + $0x10] sm:$0x3] }
  0xc9   : > { %1982 = vmatmul.msk.f32.gmra.mxu1 %vm990_vm5, %v2529_v47  ;;  %2014 = vmatmul.msk.f32.gmra.mxu2 %vm990_vm5, %v934_v63  ;;  %v1340_v28 = vrot.slane %v2671_v31, 2  ;;  %v1332_v0 = vrot.slane %v488_v34, 1  ;;  %v1329_v57 = vrot.slane %v2671_v31, 1 }
  0xca   : > { %1949 = vmatmul.msk.f32.gmra.mxu0 %vm990_vm5, %v933_v54 }
  0xce   : > { %v854_v1 = vpop.permute.xlu0 %853 }
  0xcf   : > { %v639_v40 = vpop.permute.xlu1 %638  ;;  %v2635_v16 = vsel %vm924_vm3, %v921_v12, %v854_v1 }
  0xd0   : > { %1970 = vmatmul.msk.f32.gmra.mxu3 %vm990_vm5, %v2635_v16  ;;  %v902_v47 = vsel %vm891_vm4, %v2304_v30, %v639_v40  ;;  %v820_v30 = vpop.permute.xlu2 %819 }
  0xd1   : > { %1983 = vmatmul.msk.f32.gmra.mxu1 %vm990_vm5, %v932_v38 }
  0xd2   : > { %1950 = vmatmul.msk.f32.gmra.mxu0 %vm990_vm5, %v934_v63 }
  0xd6   : > { %v816_v17 = vpop.permute.xlu0 %815 }
  0xd7   : > { %v856_v18 = vpop.permute.xlu1 %855  ;;  %v935_v19 = vsel %vm924_vm3, %v902_v47, %v816_v17 }
  0xd8   : > { %2015 = vmatmul.msk.f32.gmra.mxu2 %vm990_vm5, %v935_v19  ;;  %v2648_v23 = vsel %vm924_vm3, %v922_v7, %v856_v18  ;;  %v970_v41 = vpop.permute.xlu2 %969 }
  0xd9   : > { %1984 = vmatmul.msk.f32.gmra.mxu1 %vm990_vm5, %v933_v54  ;;  %1971 = vmatmul.msk.f32.gmra.mxu3 %vm990_vm5, %v2648_v23 }
  0xda   : > { %1951 = vmatmul.msk.f32.gmra.mxu0 %vm990_vm5, %v935_v19 }
  0xde   : > { %v681_v25 = vpop.permute.xlu0 %680 }
  0xdf   : > { %v923_v15 = vsel %vm891_vm4, %v2322_v44, %v681_v25  ;;  %v818_v5 = vpop.permute.xlu1 %817  ;;  %v2673_v44 = vld [vmem:[%s416_s9 + $0x8] sm:$0xff] }
  0xe0   : > { %v936_v56 = vsel %vm924_vm3, %v903_v39, %v818_v5  ;;  %v2664_v10 = vsel %vm924_vm3, %v923_v15, %v858_v11  ;;  %v1341_v38 = vrot.slane %v2673_v44, 2  ;;  %v1330_v36 = vrot.slane %v2673_v44, 1  ;;  %v647_v54 = vpop.permute.xlu2 %646 }
  0xe1   : > { %1985 = vmatmul.msk.f32.gmra.mxu1 %vm990_vm5, %v934_v63  ;;  %2016 = vmatmul.msk.f32.gmra.mxu2 %vm990_vm5, %v936_v56  ;;  %v906_v59 = vsel %vm891_vm4, %v2417_v50, %v647_v54  ;;  %v1343_v11 = vrot.slane %v488_v34, 2 }
  0xe2   : > { %1952 = vmatmul.msk.f32.gmra.mxu0 %vm990_vm5, %v936_v56  ;;  %1972 = vmatmul.msk.f32.gmra.mxu3 %vm990_vm5, %v2664_v10  ;;  %v1342_v13 = vsel %vm714_vm1, %v1340_v28, %v1341_v38  ;;  %v1333_v45 = vsel %vm537_vm0, %v1330_v36, %v1332_v0 }
  0xe3   : > { %1345 = vrot.lane.b32.xlu0 %v1342_v13, %s2110_s30  ;;  %1336 = vrot.lane.b32.xlu1 %v1333_v45, %s2109_s29  ;;  %v1344_v47 = vsel %vm714_vm1, %v1341_v38, %v1343_v11 }
  0xe6   : > { %v643_v24 = vpop.permute.xlu0 %642 }
  0xe7   : > { %v904_v29 = vsel %vm891_vm4, %v2348_v60, %v643_v24  ;;  %v968_v32 = vpop.permute.xlu1 %967 }
  0xe8   : > { %v937_v33 = vsel %vm924_vm3, %v904_v29, %v820_v30  ;;  %v984_v42 = vsel %vm891_vm4, %v2356_v4, %v968_v32  ;;  %v985_v4 = vsel %vm891_vm4, %v2359_v8, %v970_v41  ;;  %v1331_v8 = vsel %vm537_vm0, %v1329_v57, %v1330_v36 }
  0xe9   : > { %1986 = vmatmul.msk.f32.gmra.mxu1 %vm990_vm5, %v935_v19  ;;  %2017 = vmatmul.msk.f32.gmra.mxu2 %vm990_vm5, %v937_v33 }
  0xea   : > { %1953 = vmatmul.msk.f32.gmra.mxu0 %vm990_vm5, %v937_v33  ;;  %1334 = vrot.lane.b32.xlu2 %v1331_v8, %s2109_s29 }
  0xee   : > { %v979_v60 = vpop.permute.xlu0 %978 }
  0xef   : > { %v645_v48 = vpop.permute.xlu1 %644  ;;  %v2691_v49 = vsel %vm924_vm3, %v984_v42, %v979_v60 }
  0xf0   : > { %1973 = vmatmul.msk.f32.gmra.mxu3 %vm990_vm5, %v2691_v49  ;;  %v905_v3 = vsel %vm891_vm4, %v2353_v62, %v645_v48  ;;  %v844_v62 = vpop.permute.xlu2 %843 }
  0xf1   : > { %1987 = vmatmul.msk.f32.gmra.mxu1 %vm990_vm5, %v936_v56 }
  0xf2   : > { %1347 = vrot.lane.b32.xlu2 %v1344_v47, %s2110_s30 }
  0xf6   : > { %v822_v6 = vpop.permute.xlu0 %821 }
  0xf7   : > { %v981_v27 = vpop.permute.xlu1 %980  ;;  %v938_v9 = vsel %vm924_vm3, %v905_v3, %v822_v6 }
  0xf8   : > { %1954 = vmatmul.msk.f32.gmra.mxu0 %vm990_vm5, %v938_v9  ;;  %2018 = vmatmul.msk.f32.gmra.mxu2 %vm990_vm5, %v938_v9  ;;  %v2704_v58 = vsel %vm924_vm3, %v985_v4, %v981_v27  ;;  %v826_v50 = vpop.permute.xlu2 %825 }
  0xf9   : > { %1988 = vmatmul.msk.f32.gmra.mxu1 %vm990_vm5, %v937_v33  ;;  %1974 = vmatmul.msk.f32.gmra.mxu3 %vm990_vm5, %v2704_v58 }
  0xfe   : > { %v667_v61 = vpop.permute.xlu0 %666 }
  0xff   : > { %v916_v63 = vsel %vm891_vm4, %v2422_v52, %v667_v61  ;;  %v824_v12 = vpop.permute.xlu1 %823 }
 0x100   : > { %v2717_v1 = vsel %vm924_vm3, %v916_v63, %v844_v62  ;;  %v939_v40 = vsel %vm924_vm3, %v906_v59, %v824_v12  ;;  %v828_v30 = vpop.permute.xlu2 %827 }
 0x101   : > { %1955 = vmatmul.msk.f32.gmra.mxu0 %vm990_vm5, %v939_v40  ;;  %1989 = vmatmul.msk.f32.gmra.mxu1 %vm990_vm5, %v938_v9 }
 0x102   : > { %2019 = vmatmul.msk.f32.gmra.mxu2 %vm990_vm5, %v939_v40  ;;  %2000 = vmatmul.msk.f32.vlgmr.msrb.gmra.mxu3 %vm990_vm5, %v2717_v1 }
 0x106   : > { %v649_v52 = vpop.permute.xlu0 %648 }
 0x107   : > { %v907_v7 = vsel %vm891_vm4, %v2429_v55, %v649_v52  ;;  %v669_v17 = vpop.permute.xlu1 %668  ;;  %v1230_v39 = vpop.f32.mrf.mxu1 }
 0x108   : > { %v940_v18 = vsel %vm924_vm3, %v907_v7, %v826_v50  ;;  %v917_v19 = vsel %vm891_vm4, %v2425_v53, %v669_v17  ;;  %v2750_v53 = vld [vmem:[%s3106_s4] ss:$0 sm:$0xff]  ;;  %v655_v34 = vpop.permute.xlu2 %654 }
 0x109   : > { %1990 = vmatmul.msk.f32.gmra.mxu1 %vm990_vm5, %v939_v40  ;;  %1956 = vmatmul.msk.f32.gmra.mxu0 %vm990_vm5, %v940_v18  ;;  %v910_v36 = vsel %vm891_vm4, %v2510_v2, %v655_v34 }
 0x10a   : > { %2020 = vmatmul.msk.f32.gmra.mxu2 %vm990_vm5, %v940_v18 }
 0x10e   : > { %v846_v25 = vpop.permute.xlu0 %845 }
 0x10f   : > { %v1108_v15 = vpop.f32.mrf.mxu0  ;;  %v651_v5 = vpop.permute.xlu1 %650  ;;  %v2736_v55 = vsel %vm924_vm3, %v917_v19, %v846_v25 }
 0x110   : > { %v908_v56 = vsel %vm891_vm4, %v2470_v43, %v651_v5  ;;  %2001 = vmatmul.msk.f32.gmra.mxu3 %vm990_vm5, %v2736_v55  ;;  %v1231_v38 = vadd.f32 %v1230_v39, %v1108_v15  ;;  %v834_v27 = vpop.permute.xlu2 %833 }
 0x111   : > { %1991 = vmatmul.msk.f32.gmra.mxu1 %vm990_vm5, %v940_v18  ;;  %v941_v28 = vsel %vm924_vm3, %v908_v56, %v828_v30 }
 0x112   : > { %1957 = vmatmul.msk.f32.gmra.mxu0 %vm990_vm5, %v941_v28  ;;  %2021 = vmatmul.msk.f32.gmra.mxu2 %vm990_vm5, %v941_v28 }
 0x113   : > { %v1383_v41 = vpop.f32.mrf.mxu2 }
 0x114   : > { %v1479_v43 = vadd.f32 %v1383_v41, %v1231_v38 }
 0x116   : > { %v1515_v13 = vadd.f32 %v2750_v53, %v1479_v43  ;;  %v653_v24 = vpop.permute.xlu0 %652 }
 0x117   : > { %v909_v29 = vsel %vm891_vm4, %v2473_v46, %v653_v24  ;;  %v830_v32 = vpop.permute.xlu1 %829 }
 0x118   : > { %1547 = vst.msk [vmem:[%s2755_s12] sm:$0xff] %vm924_vm3, %v1515_v13  ;;  %2002 = vmatmul.msk.f32.gmra.mxu3 %vm990_vm5, %v2554_v14  ;;  %v942_v33 = vsel %vm924_vm3, %v909_v29, %v830_v32  ;;  %v1659_v2 = vmul.f32 %v1515_v13, %v1515_v13  ;;  %v1586_v9 = vsel %vm924_vm3, %v1515_v13, 0.0  ;;  %v661_v25 = vpop.permute.xlu2 %660 }
 0x119   : > { %1992 = vmatmul.msk.f32.gmra.mxu1 %vm990_vm5, %v941_v28  ;;  %v913_v28 = vsel %vm891_vm4, %v2542_v37, %v661_v25 }
 0x11a   : > { %1958 = vmatmul.msk.f32.gmra.mxu0 %vm990_vm5, %v942_v33  ;;  %2022 = vmatmul.msk.f32.gmra.mxu2 %vm990_vm5, %v942_v33  ;;  %v1691_v63 = vsel %vm924_vm3, %v1659_v2, 0.0 }
 0x11c   : > { %v1386_v60 = vpop.f32.mrf.mxu2 }
 0x11e   : > { %v1233_v0 = vpop.f32.mrf.mxu1  ;;  %v1111_v46 = vpop.f32.mrf.mxu0 }
 0x11f   : > { %v1234_v42 = vadd.f32 %v1233_v0, %v1111_v46  ;;  %v832_v45 = vpop.permute.xlu0 %831  ;;  %v657_v3 = vpop.permute.xlu1 %656 }
 0x120   : > { %2003 = vmatmul.msk.f32.gmra.mxu3 %vm990_vm5, %v2587_v21  ;;  %v943_v48 = vsel %vm924_vm3, %v910_v36, %v832_v45  ;;  %v911_v6 = vsel %vm891_vm4, %v2513_v26, %v657_v3  ;;  %v840_v36 = vpop.permute.xlu2 %839 }
 0x121   : > { %v1480_v54 = vadd.f32 %v1386_v60, %v1234_v42  ;;  %1993 = vmatmul.msk.f32.gmra.mxu1 %vm990_vm5, %v942_v33  ;;  %v944_v40 = vsel %vm924_vm3, %v911_v6, %v834_v27 }
 0x122   : > { %1959 = vmatmul.msk.f32.gmra.mxu0 %vm990_vm5, %v943_v48  ;;  %2023 = vmatmul.msk.f32.gmra.mxu2 %vm990_vm5, %v943_v48 }
 0x123   : > { %v1516_v4 = vadd.f32 %v2750_v53, %v1480_v54 }
 0x125   : > { %1548 = vst.msk [vmem:[%s2755_s12 + $0x8] sm:$0xff] %vm924_vm3, %v1516_v4  ;;  %v1587_v62 = vsel %vm924_vm3, %v1516_v4, 0.0  ;;  %v1660_v57 = vmul.f32 %v1516_v4, %v1516_v4 }
 0x126   : > { %v1236_v8 = vpop.f32.mrf.mxu1  ;;  %v1114_v59 = vpop.f32.mrf.mxu0  ;;  %v1588_v61 = vadd.f32 %v1587_v62, %v1586_v9 }
 0x127   : > { %v1692_v12 = vsel %vm924_vm3, %v1660_v57, 0.0  ;;  %v659_v50 = vpop.permute.xlu0 %658  ;;  %v1237_v11 = vadd.f32 %v1236_v8, %v1114_v59  ;;  %v836_v52 = vpop.permute.xlu1 %835 }
 0x128   : > { %2004 = vmatmul.msk.f32.gmra.mxu3 %vm990_vm5, %v2610_v35  ;;  %v1693_v26 = vadd.f32 %v1692_v12, %v1691_v63  ;;  %v912_v47 = vsel %vm891_vm4, %v2539_v51, %v659_v50 }
 0x129   : > { %1994 = vmatmul.msk.f32.gmra.mxu1 %vm990_vm5, %v943_v48  ;;  %v945_v30 = vsel %vm924_vm3, %v912_v47, %v836_v52 }
 0x12a   : > { %1960 = vmatmul.msk.f32.gmra.mxu0 %vm990_vm5, %v944_v40  ;;  %2024 = vmatmul.msk.f32.gmra.mxu2 %vm990_vm5, %v944_v40 }
 0x12d   : > { %v1389_v7 = vpop.f32.mrf.mxu2 }
 0x12e   : > { %v1481_v17 = vadd.f32 %v1389_v7, %v1237_v11  ;;  %v1239_v18 = vpop.f32.mrf.mxu1  ;;  %v1117_v19 = vpop.f32.mrf.mxu0 }
 0x12f   : > { %v838_v38 = vpop.permute.xlu0 %837  ;;  %v663_v29 = vpop.permute.xlu1 %662  ;;  %v1240_v32 = vadd.f32 %v1239_v18, %v1117_v19 }
 0x130   : > { %v1517_v39 = vadd.f32 %v2750_v53, %v1481_v17  ;;  %2005 = vmatmul.msk.f32.gmra.mxu3 %vm990_vm5, %v2635_v16  ;;  %v946_v24 = vsel %vm924_vm3, %v913_v28, %v838_v38  ;;  %v914_v34 = vsel %vm891_vm4, %v2569_v20, %v663_v29 }
 0x131   : > { %1995 = vmatmul.msk.f32.gmra.mxu1 %vm990_vm5, %v944_v40  ;;  %v947_v60 = vsel %vm924_vm3, %v914_v34, %v840_v36 }
 0x132   : > { %1549 = vst.msk [vmem:[%s2755_s12 + $0x10] sm:$0xff] %vm924_vm3, %v1517_v39  ;;  %v1589_v15 = vsel %vm924_vm3, %v1517_v39, 0.0  ;;  %v1661_v51 = vmul.f32 %v1517_v39, %v1517_v39  ;;  %1961 = vmatmul.msk.f32.gmra.mxu0 %vm990_vm5, %v945_v30  ;;  %2025 = vmatmul.msk.f32.gmra.mxu2 %vm990_vm5, %v945_v30 }
 0x133   : > { %v1590_v5 = vadd.f32 %v1589_v15, %v1588_v61  ;;  %v2815_v42 = vpop.f32.mrf.mxu3 }
 0x134   : > { %v1694_v56 = vsel %vm924_vm3, %v1661_v51, 0.0 }
 0x135   : > { %v1695_v41 = vadd.f32 %v1694_v56, %v1693_v26 }
 0x136   : > { %v1242_v43 = vpop.f32.mrf.mxu1  ;;  %v1120_v13 = vpop.f32.mrf.mxu0 }
 0x137   : > { %v665_v20 = vpop.permute.xlu0 %664  ;;  %v1243_v4 = vadd.f32 %v1242_v43, %v1120_v13  ;;  %v842_v62 = vpop.permute.xlu1 %841 }
 0x138   : > { %2006 = vmatmul.msk.f32.gmra.mxu3 %vm990_vm5, %v2648_v23  ;;  %v915_v9 = vsel %vm891_vm4, %v2572_v22, %v665_v20 }
 0x139   : > { %1996 = vmatmul.msk.f32.gmra.mxu1 %vm990_vm5, %v945_v30  ;;  %v948_v63 = vsel %vm924_vm3, %v915_v9, %v842_v62 }
 0x13a   : > { %1962 = vmatmul.msk.f32.gmra.mxu0 %vm990_vm5, %v946_v24  ;;  %2026 = vmatmul.msk.f32.gmra.mxu2 %vm990_vm5, %v946_v24 }
 0x13b   : > { %v1392_v33 = vpop.f32.mrf.mxu2 }
 0x13c   : > { %v1482_v37 = vadd.f32 %v1392_v33, %v1240_v32 }
 0x13d   : > { %v2833_v12 = vpop.f32.mrf.mxu3 }
 0x13e   : > { %v1518_v0 = vadd.f32 %v2750_v53, %v1482_v37  ;;  %v1245_v46 = vpop.f32.mrf.mxu1 }
 0x13f   : > { %v1123_v45 = vpop.f32.mrf.mxu0 }
 0x140   : > { %1550 = vst.msk [vmem:[%s2755_s12 + $0x18] sm:$0xff] %vm924_vm3, %v1518_v0  ;;  %v1591_v48 = vsel %vm924_vm3, %v1518_v0, 0.0  ;;  %v1662_v54 = vmul.f32 %v1518_v0, %v1518_v0  ;;  %2007 = vmatmul.msk.f32.gmra.mxu3 %vm990_vm5, %v2664_v10  ;;  %v1246_v50 = vadd.f32 %v1245_v46, %v1123_v45 }
 0x141   : > { %v1592_v3 = vadd.f32 %v1591_v48, %v1590_v5  ;;  %1997 = vmatmul.msk.f32.gmra.mxu1 %vm990_vm5, %v946_v24 }
 0x142   : > { %v1696_v2 = vsel %vm924_vm3, %v1662_v54, 0.0  ;;  %1963 = vmatmul.msk.f32.gmra.mxu0 %vm990_vm5, %v947_v60  ;;  %2027 = vmatmul.msk.f32.gmra.mxu2 %vm990_vm5, %v947_v60 }
 0x143   : > { %v1697_v6 = vadd.f32 %v1696_v2, %v1695_v41 }
 0x144   : > { %v1395_v27 = vpop.f32.mrf.mxu2 }
 0x145   : > { %v1483_v57 = vadd.f32 %v1395_v27, %v1243_v4  ;;  %v2853_v25 = vpop.f32.mrf.mxu3 }
 0x146   : > { %v1248_v8 = vpop.f32.mrf.mxu1 }
 0x147   : > { %v1519_v59 = vadd.f32 %v2750_v53, %v1483_v57  ;;  %v1126_v61 = vpop.f32.mrf.mxu0 }
 0x148   : > { %2033 = vmatmul.msk.f32.vlgmr.msra.gmra.mxu3 %vm990_vm5, %v2610_v35  ;;  %v1249_v56 = vadd.f32 %v1248_v8, %v1126_v61 }
 0x149   : > { %1551 = vst.msk [vmem:[%s2755_s12 + $0x20] sm:$0xff] %vm924_vm3, %v1519_v59  ;;  %v1593_v40 = vsel %vm924_vm3, %v1519_v59, 0.0  ;;  %v1663_v26 = vmul.f32 %v1519_v59, %v1519_v59  ;;  %1998 = vmatmul.msk.f32.gmra.mxu1 %vm990_vm5, %v947_v60 }
 0x14a   : > { %v1594_v22 = vadd.f32 %v1593_v40, %v1592_v3  ;;  %1964 = vmatmul.msk.f32.gmra.mxu0 %vm990_vm5, %v948_v63  ;;  %2028 = vmatmul.msk.f32.gmra.mxu2 %vm990_vm5, %v948_v63 }
 0x14b   : > { %v1698_v11 = vsel %vm924_vm3, %v1663_v26, 0.0 }
 0x14c   : > { %v1699_v47 = vadd.f32 %v1698_v11, %v1697_v6  ;;  %v1398_v35 = vpop.f32.mrf.mxu2  ;;  %v1335_v6 = vpop.permute.xlu2 %1334 }
 0x14d   : > { %v1484_v52 = vadd.f32 %v1398_v35, %v1246_v50  ;;  %v1351_v57 = vsel %vm891_vm4, %v2671_v31, %v1335_v6 }
 0x14e   : > { %v1251_v7 = vpop.f32.mrf.mxu1 }
 0x14f   : > { %v1520_v17 = vadd.f32 %v2750_v53, %v1484_v52  ;;  %v1129_v18 = vpop.f32.mrf.mxu0 }
 0x150   : > { %2034 = vmatmul.msk.f32.gmra.mxu3 %vm990_vm5, %v2635_v16 }
 0x151   : > { %1552 = vst.msk [vmem:[%s2755_s12 + $0x28] sm:$0xff] %vm924_vm3, %v1520_v17  ;;  %v1595_v19 = vsel %vm924_vm3, %v1520_v17, 0.0  ;;  %v1664_v30 = vmul.f32 %v1520_v17, %v1520_v17  ;;  %1999 = vmatmul.msk.f32.gmra.mxu1 %vm990_vm5, %v948_v63 }
 0x152   : > { %v1596_v39 = vadd.f32 %v1595_v19, %v1594_v22  ;;  %1965 = vmatmul.msk.f32.gmra.mxu0 %vm990_vm5, %v2717_v1  ;;  %2029 = vmatmul.msk.f32.gmra.mxu2 %vm990_vm5, %v2717_v1 }
 0x153   : > { %v1700_v15 = vsel %vm924_vm3, %v1664_v30, 0.0  ;;  %v2862_v28 = vpop.f32.mrf.mxu3 }
 0x154   : > { %v1701_v16 = vadd.f32 %v1700_v15, %v1699_v47  ;;  %v1348_v11 = vpop.permute.xlu2 %1347 }
 0x155   : > { %v1346_v8 = vpop.permute.xlu0 %1345 }
 0x156   : > { %v1254_v51 = vpop.f32.mrf.mxu1  ;;  %v1353_v40 = vsel %vm924_vm3, %v1351_v57, %v1346_v8 }
 0x157   : > { %v1132_v5 = vpop.f32.mrf.mxu0 }
 0x158   : > { %2035 = vmatmul.msk.f32.gmra.mxu3 %vm990_vm5, %v2648_v23  ;;  %v1255_v60 = vadd.f32 %v1254_v51, %v1132_v5 }
 0x15a   : > { %1966 = vmatmul.msk.f32.gmra.mxu0 %vm990_vm5, %v2736_v55  ;;  %2030 = vmatmul.msk.f32.gmra.mxu2 %vm990_vm5, %v2736_v55  ;;  %v1252_v55 = vadd.f32 %v1251_v7, %v1129_v18 }
 0x15b   : > { %v1401_v1 = vpop.f32.mrf.mxu2 }
 0x15c   : > { %v1485_v38 = vadd.f32 %v1401_v1, %v1249_v56  ;;  %v2873_v34 = vpop.f32.mrf.mxu3 }
 0x15e   : > { %v1521_v41 = vadd.f32 %v2750_v53, %v1485_v38  ;;  %v1257_v43 = vpop.f32.mrf.mxu1 }
 0x15f   : > { %v1135_v33 = vpop.f32.mrf.mxu0 }
 0x160   : > { %1553 = vst.msk [vmem:[%s2755_s12 + $0x30] sm:$0xff] %vm924_vm3, %v1521_v41  ;;  %v1597_v23 = vsel %vm924_vm3, %v1521_v41, 0.0  ;;  %v1665_v13 = vmul.f32 %v1521_v41, %v1521_v41  ;;  %2036 = vmatmul.msk.f32.gmra.mxu3 %vm990_vm5, %v2664_v10  ;;  %v1258_v22 = vadd.f32 %v1257_v43, %v1135_v33 }
 0x161   : > { %v1598_v24 = vadd.f32 %v1597_v23, %v1596_v39 }
 0x162   : > { %v1702_v29 = vsel %vm924_vm3, %v1665_v13, 0.0  ;;  %2031 = vmatmul.msk.f32.gmra.mxu2 %vm990_vm5, %v2554_v14 }
 0x163   : > { %v1703_v32 = vadd.f32 %v1702_v29, %v1701_v16 }
 0x164   : > { %v1404_v37 = vpop.f32.mrf.mxu2 }
 0x165   : > { %v1486_v36 = vadd.f32 %v1404_v37, %v1252_v55  ;;  %v2884_v4 = vpop.f32.mrf.mxu3 }
 0x166   : > { %v1260_v46 = vpop.f32.mrf.mxu1 }
 0x167   : > { %v1522_v0 = vadd.f32 %v2750_v53, %v1486_v36  ;;  %v1138_v20 = vpop.f32.mrf.mxu0 }
 0x168   : > { %2037 = vmatmul.msk.f32.gmra.mxu3 %vm990_vm5, %v2691_v49  ;;  %v1261_v16 = vadd.f32 %v1260_v46, %v1138_v20 }
 0x169   : > { %1554 = vst.msk [vmem:[%s2755_s12 + $0x38] sm:$0xff] %vm924_vm3, %v1522_v0  ;;  %v1599_v10 = vsel %vm924_vm3, %v1522_v0, 0.0  ;;  %v1666_v45 = vmul.f32 %v1522_v0, %v1522_v0 }
 0x16a   : > { %v1600_v14 = vadd.f32 %v1599_v10, %v1598_v24  ;;  %2032 = vmatmul.msk.f32.gmra.mxu2 %vm990_vm5, %v2587_v21 }
 0x16b   : > { %v1704_v48 = vsel %vm924_vm3, %v1666_v45, 0.0 }
 0x16c   : > { %v1705_v54 = vadd.f32 %v1704_v48, %v1703_v32  ;;  %v1407_v3 = vpop.f32.mrf.mxu2 }
 0x16d   : > { %v1487_v2 = vadd.f32 %v1407_v3, %v1255_v60 }
 0x16e   : > { %v1263_v62 = vpop.f32.mrf.mxu1 }
 0x16f   : > { %v1523_v49 = vadd.f32 %v2750_v53, %v1487_v2 }
 0x170   : > { %2038 = vmatmul.msk.f32.gmra.mxu3 %vm990_vm5, %v2704_v58  ;;  %v1337_v58 = vpop.permute.xlu1 %1336 }
 0x171   : > { %1555 = vst.msk [vmem:[%s2755_s12 + $0x40] sm:$0xff] %vm924_vm3, %v1523_v49  ;;  %v1601_v27 = vsel %vm924_vm3, %v1523_v49, 0.0  ;;  %v1667_v21 = vmul.f32 %v1523_v49, %v1523_v49  ;;  %v1352_v50 = vsel %vm891_vm4, %v2673_v44, %v1337_v58 }
 0x172   : > { %v1602_v9 = vadd.f32 %v1601_v27, %v1600_v14  ;;  %v1354_v52 = vsel %vm924_vm3, %v1352_v50, %v1348_v11 }
 0x173   : > { %v1706_v59 = vsel %vm924_vm3, %v1667_v21, 0.0  ;;  %v2896_v26 = vpop.f32.mrf.mxu3 }
 0x174   : > { %v1707_v61 = vadd.f32 %v1706_v59, %v1705_v54 }
 0x175   : > { %v1141_v63 = vpop.f32.mrf.mxu0 }
 0x176   : > { %v1266_v31 = vpop.f32.mrf.mxu1  ;;  %v1264_v24 = vadd.f32 %v1263_v62, %v1141_v63 }
 0x178   : > { %2039 = vmatmul.msk.f32.gmra.mxu3 %vm990_vm5, %v1353_v40 }
 0x17b   : > { %v1410_v47 = vpop.f32.mrf.mxu2 }
 0x17c   : > { %v1488_v35 = vadd.f32 %v1410_v47, %v1258_v22  ;;  %v2907_v39 = vpop.f32.mrf.mxu3 }
 0x17e   : > { %v1524_v7 = vadd.f32 %v2750_v53, %v1488_v35  ;;  %v1144_v17 = vpop.f32.mrf.mxu0  ;;  %v1269_v5 = vpop.f32.mrf.mxu1 }
 0x17f   : > { %v1267_v60 = vadd.f32 %v1266_v31, %v1144_v17 }
 0x180   : > { %1556 = vst.msk [vmem:[%s2755_s12 + $0x48] sm:$0xff] %vm924_vm3, %v1524_v7  ;;  %v1603_v18 = vsel %vm924_vm3, %v1524_v7, 0.0  ;;  %v1668_v19 = vmul.f32 %v1524_v7, %v1524_v7  ;;  %2040 = vmatmul.msk.f32.gmra.mxu3 %vm990_vm5, %v1354_v52 }
 0x181   : > { %v1604_v30 = vadd.f32 %v1603_v18, %v1602_v9 }
 0x182   : > { %v1708_v44 = vsel %vm924_vm3, %v1668_v19, 0.0 }
 0x183   : > { %v1709_v15 = vadd.f32 %v1708_v44, %v1707_v61 }
 0x185   : > { %v1413_v51 = vpop.f32.mrf.mxu2  ;;  %v2914_v13 = vpop.f32.mrf.mxu3 }
 0x186   : > { %v1489_v56 = vadd.f32 %v1413_v51, %v1261_v16  ;;  %v1147_v1 = vpop.f32.mrf.mxu0  ;;  %v1272_v36 = vpop.f32.mrf.mxu1 }
 0x187   : > { %v1270_v57 = vadd.f32 %v1269_v5, %v1147_v1 }
 0x188   : > { %v1525_v38 = vadd.f32 %v2750_v53, %v1489_v56 }
 0x18a   : > { %1557 = vst.msk [vmem:[%s2755_s12 + $0x50] sm:$0xff] %vm924_vm3, %v1525_v38  ;;  %v1605_v41 = vsel %vm924_vm3, %v1525_v38, 0.0  ;;  %v1669_v43 = vmul.f32 %v1525_v38, %v1525_v38 }
 0x18b   : > { %v1606_v23 = vadd.f32 %v1605_v41, %v1604_v30 }
 0x18c   : > { %v1710_v29 = vsel %vm924_vm3, %v1669_v43, 0.0 }
 0x18d   : > { %v1711_v55 = vadd.f32 %v1710_v29, %v1709_v15  ;;  %v1416_v32 = vpop.f32.mrf.mxu2 }
 0x18e   : > { %v1490_v33 = vadd.f32 %v1416_v32, %v1264_v24  ;;  %v1275_v6 = vpop.f32.mrf.mxu1 }
 0x18f   : > { %v1150_v37 = vpop.f32.mrf.mxu0 }
 0x190   : > { %v1526_v0 = vadd.f32 %v2750_v53, %v1490_v33  ;;  %v1273_v31 = vadd.f32 %v1272_v36, %v1150_v37 }
 0x192   : > { %1558 = vst.msk [vmem:[%s2755_s12 + $0x58] sm:$0xff] %vm924_vm3, %v1526_v0  ;;  %v1607_v46 = vsel %vm924_vm3, %v1526_v0, 0.0  ;;  %v1670_v10 = vmul.f32 %v1526_v0, %v1526_v0 }
 0x193   : > { %v1608_v45 = vadd.f32 %v1607_v46, %v1606_v23  ;;  %v2921_v14 = vpop.f32.mrf.mxu3 }
 0x194   : > { %v1712_v48 = vsel %vm924_vm3, %v1670_v10, 0.0 }
 0x195   : > { %v1713_v54 = vadd.f32 %v1712_v48, %v1711_v55  ;;  %v1419_v3 = vpop.f32.mrf.mxu2 }
 0x196   : > { %v1491_v20 = vadd.f32 %v1419_v3, %v1267_v60  ;;  %v1278_v35 = vpop.f32.mrf.mxu1  ;;  %v1303_v3 = vadd.f32 %v2914_v13, %v2815_v42  ;;  %v1306_v42 = vadd.f32 %v2921_v14, %v2833_v12 }
 0x197   : > { %v1153_v49 = vpop.f32.mrf.mxu0 }
 0x198   : > { %v1527_v2 = vadd.f32 %v2750_v53, %v1491_v20  ;;  %v1276_v44 = vadd.f32 %v1275_v6, %v1153_v49 }
 0x19a   : > { %1559 = vst.msk [vmem:[%s2755_s12 + $0x60] sm:$0xff] %vm924_vm3, %v1527_v2  ;;  %v1609_v27 = vsel %vm924_vm3, %v1527_v2, 0.0  ;;  %v1671_v21 = vmul.f32 %v1527_v2, %v1527_v2 }
 0x19b   : > { %v1610_v9 = vadd.f32 %v1609_v27, %v1608_v45  ;;  %v2928_v62 = vpop.f32.mrf.mxu3 }
 0x19c   : > { %v1714_v8 = vsel %vm924_vm3, %v1671_v21, 0.0  ;;  %v1309_v12 = vadd.f32 %v2928_v62, %v2853_v25 }
 0x19d   : > { %v1715_v59 = vadd.f32 %v1714_v8, %v1713_v54  ;;  %v1422_v61 = vpop.f32.mrf.mxu2 }
 0x19e   : > { %v1492_v63 = vadd.f32 %v1422_v61, %v1270_v57  ;;  %v1281_v51 = vpop.f32.mrf.mxu1 }
 0x19f   : > { %v1156_v50 = vpop.f32.mrf.mxu0 }
 0x1a0   : > { %v1528_v40 = vadd.f32 %v2750_v53, %v1492_v63  ;;  %v1279_v38 = vadd.f32 %v1278_v35, %v1156_v50 }
 0x1a2   : > { %1560 = vst.msk [vmem:[%s2755_s12 + $0x68] sm:$0xff] %vm924_vm3, %v1528_v40  ;;  %v1611_v58 = vsel %vm924_vm3, %v1528_v40, 0.0  ;;  %v1672_v22 = vmul.f32 %v1528_v40, %v1528_v40 }
 0x1a3   : > { %v2935_v11 = vadd.f32 %v1611_v58, %v1610_v9  ;;  %v2937_v47 = vpop.f32.mrf.mxu3 }
 0x1a4   : > { %v1716_v52 = vsel %vm924_vm3, %v1672_v22, 0.0 }
 0x1a5   : > { %v2940_v7 = vadd.f32 %v1716_v52, %v1715_v59  ;;  %v1425_v17 = vpop.f32.mrf.mxu2 }
 0x1a6   : > { %v1493_v18 = vadd.f32 %v1425_v17, %v1273_v31  ;;  %v1284_v24 = vpop.f32.mrf.mxu1 }
 0x1a7   : > { %v1159_v15 = vpop.f32.mrf.mxu0 }
 0x1a8   : > { %v1529_v19 = vadd.f32 %v2750_v53, %v1493_v18  ;;  %v1282_v32 = vadd.f32 %v1281_v51, %v1159_v15 }
 0x1aa   : > { %1561 = vst.msk [vmem:[%s2755_s12 + $0x70] sm:$0xff] %vm924_vm3, %v1529_v19  ;;  %v1673_v35 = vmul.f32 %v1529_v19, %v1529_v19 }
 0x1ab   : > { %v2945_v30 = vpop.f32.mrf.mxu3 }
 0x1ad   : > { %v1428_v16 = vpop.f32.mrf.mxu2 }
 0x1ae   : > { %v1494_v5 = vadd.f32 %v1428_v16, %v1276_v44  ;;  %v1287_v46 = vpop.f32.mrf.mxu1  ;;  %v1613_v44 = vsel %vm924_vm3, %v1529_v19, 0.0 }
 0x1af   : > { %v1162_v43 = vpop.f32.mrf.mxu0  ;;  %v1614_v19 = vadd.f32 %v1613_v44, %v2935_v11 }
 0x1b0   : > { %v1530_v56 = vadd.f32 %v2750_v53, %v1494_v5  ;;  %v1285_v45 = vadd.f32 %v1284_v24, %v1162_v43  ;;  %v1312_v24 = vadd.f32 %v2937_v47, %v2862_v28 }
 0x1b2   : > { %1562 = vst.msk [vmem:[%s2755_s12 + $0x78] sm:$0xff] %vm924_vm3, %v1530_v56  ;;  %v1674_v15 = vmul.f32 %v1530_v56, %v1530_v56  ;;  %v1615_v25 = vsel %vm924_vm3, %v1530_v56, 0.0 }
 0x1b3   : > { %v2950_v1 = vpop.f32.mrf.mxu3 }
 0x1b5   : > { %v1431_v41 = vpop.f32.mrf.mxu2 }
 0x1b6   : > { %v1495_v23 = vadd.f32 %v1431_v41, %v1279_v38  ;;  %v1290_v49 = vpop.f32.mrf.mxu1  ;;  %v1718_v38 = vsel %vm924_vm3, %v1673_v35, 0.0 }
 0x1b7   : > { %v1165_v36 = vpop.f32.mrf.mxu0  ;;  %v1719_v56 = vadd.f32 %v1718_v38, %v2940_v7 }
 0x1b8   : > { %v1531_v29 = vadd.f32 %v2750_v53, %v1495_v23  ;;  %v1288_v6 = vadd.f32 %v1287_v46, %v1165_v36 }
 0x1ba   : > { %1563 = vst.msk [vmem:[%s2755_s12 + $0x80] sm:$0xff] %vm924_vm3, %v1531_v29  ;;  %v1675_v62 = vmul.f32 %v1531_v29, %v1531_v29 }
 0x1bb   : > { %v2955_v55 = vpop.f32.mrf.mxu3 }
 0x1bd   : > { %v1434_v33 = vpop.f32.mrf.mxu2 }
 0x1be   : > { %v1496_v37 = vadd.f32 %v1434_v33, %v1282_v32  ;;  %v1293_v58 = vpop.f32.mrf.mxu1  ;;  %v1720_v32 = vsel %vm924_vm3, %v1674_v15, 0.0  ;;  %v1617_v33 = vsel %vm924_vm3, %v1531_v29, 0.0 }
 0x1bf   : > { %v1168_v20 = vpop.f32.mrf.mxu0  ;;  %v1721_v28 = vadd.f32 %v1720_v32, %v1719_v56  ;;  %v1318_v32 = vadd.f32 %v2950_v1, %v2884_v4 }
 0x1c0   : > { %v1532_v0 = vadd.f32 %v2750_v53, %v1496_v37  ;;  %v1291_v59 = vadd.f32 %v1290_v49, %v1168_v20  ;;  %v1616_v37 = vadd.f32 %v1615_v25, %v1614_v19 }
 0x1c2   : > { %1564 = vst.msk [vmem:[%s2755_s12 + $0x88] sm:$0xff] %vm924_vm3, %v1532_v0  ;;  %v1676_v23 = vmul.f32 %v1532_v0, %v1532_v0  ;;  %v1619_v11 = vsel %vm924_vm3, %v1532_v0, 0.0  ;;  %v1618_v47 = vadd.f32 %v1617_v33, %v1616_v37 }
 0x1c3   : > { %v2960_v10 = vpop.f32.mrf.mxu3 }
 0x1c5   : > { %v1437_v60 = vpop.f32.mrf.mxu2 }
 0x1c6   : > { %v1497_v48 = vadd.f32 %v1437_v60, %v1285_v45  ;;  %v1296_v41 = vpop.f32.mrf.mxu1  ;;  %v1722_v45 = vsel %vm924_vm3, %v1675_v62, 0.0 }
 0x1c7   : > { %v1171_v61 = vpop.f32.mrf.mxu0 }
 0x1c8   : > { %v1533_v54 = vadd.f32 %v2750_v53, %v1497_v48  ;;  %v1294_v52 = vadd.f32 %v1293_v58, %v1171_v61  ;;  %v1315_v61 = vadd.f32 %v2945_v30, %v2873_v34 }
 0x1ca   : > { %1565 = vst.msk [vmem:[%s2755_s12 + $0x90] sm:$0xff] %vm924_vm3, %v1533_v54  ;;  %v1677_v36 = vmul.f32 %v1533_v54, %v1533_v54  ;;  %v1621_v29 = vsel %vm924_vm3, %v1533_v54, 0.0 }
 0x1cb   : > { %v1455_v2 = vpop.f32.mrf.mxu3 }
 0x1cc   : > { %v1503_v27 = vadd.f32 %v1455_v2, %v1303_v3  ;;  %v1724_v3 = vsel %vm924_vm3, %v1676_v23, 0.0  ;;  %v1726_v0 = vsel %vm924_vm3, %v1677_v36, 0.0 }
 0x1cd   : > { %v1440_v21 = vpop.f32.mrf.mxu2 }
 0x1ce   : > { %v2968_v9 = vadd.f32 %v2750_v53, %v1503_v27  ;;  %v1498_v57 = vadd.f32 %v1440_v21, %v1288_v6  ;;  %v1723_v6 = vadd.f32 %v1722_v45, %v1721_v28  ;;  %v1620_v27 = vadd.f32 %v1619_v11, %v1618_v47 }
 0x1cf   : > { %v1174_v16 = vpop.f32.mrf.mxu0 }
 0x1d0   : > { %1571 = vst.msk [vmem:[%s2755_s12 + $0xc0] sm:$0xff] %vm924_vm3, %v2968_v9  ;;  %v1534_v8 = vadd.f32 %v2750_v53, %v1498_v57  ;;  %v1297_v60 = vadd.f32 %v1296_v41, %v1174_v16  ;;  %v1725_v54 = vadd.f32 %v1724_v3, %v1723_v6  ;;  %v1683_v33 = vmul.f32 %v2968_v9, %v2968_v9 }
 0x1d1   : > { %v1633_v11 = vsel %vm924_vm3, %v2968_v9, 0.0 }
 0x1d2   : > { %1566 = vst.msk [vmem:[%s2755_s12 + $0x98] sm:$0xff] %vm924_vm3, %v1534_v8  ;;  %v1678_v2 = vmul.f32 %v1534_v8, %v1534_v8  ;;  %v1623_v21 = vsel %vm924_vm3, %v1534_v8, 0.0  ;;  %v1738_v47 = vsel %vm924_vm3, %v1683_v33, 0.0 }
 0x1d3   : > { %v1458_v13 = vpop.f32.mrf.mxu3 }
 0x1d4   : > { %v1504_v63 = vadd.f32 %v1458_v13, %v1306_v42  ;;  %v1728_v8 = vsel %vm924_vm3, %v1678_v2, 0.0 }
 0x1d5   : > { %v1443_v40 = vpop.f32.mrf.mxu2 }
 0x1d6   : > { %v2979_v22 = vadd.f32 %v2750_v53, %v1504_v63  ;;  %v1499_v50 = vadd.f32 %v1443_v40, %v1291_v59  ;;  %v1622_v59 = vadd.f32 %v1621_v29, %v1620_v27  ;;  %v1299_v63 = vpop.f32.mrf.mxu1 }
 0x1d7   : > { %v1177_v42 = vpop.f32.mrf.mxu0 }
 0x1d8   : > { %1572 = vst.msk [vmem:[%s2755_s12 + $0xc8] sm:$0xff] %vm924_vm3, %v2979_v22  ;;  %v1535_v31 = vadd.f32 %v2750_v53, %v1499_v50  ;;  %v1727_v50 = vadd.f32 %v1726_v0, %v1725_v54  ;;  %v1635_v3 = vsel %vm924_vm3, %v2979_v22, 0.0 }
 0x1da   : > { %1567 = vst.msk [vmem:[%s2755_s12 + $0xa0] sm:$0xff] %vm924_vm3, %v1535_v31  ;;  %v1679_v57 = vmul.f32 %v1535_v31, %v1535_v31  ;;  %v1625_v40 = vsel %vm924_vm3, %v1535_v31, 0.0  ;;  %v1729_v44 = vadd.f32 %v1728_v8, %v1727_v50 }
 0x1db   : > { %v1461_v14 = vpop.f32.mrf.mxu3 }
 0x1dc   : > { %v1505_v17 = vadd.f32 %v1461_v14, %v1309_v12  ;;  %v1624_v12 = vadd.f32 %v1623_v21, %v1622_v59  ;;  %v1300_v14 = vadd.f32 %v1299_v63, %v1177_v42 }
 0x1dd   : > { %v1446_v18 = vpop.f32.mrf.mxu2 }
 0x1de   : > { %v2991_v51 = vadd.f32 %v2750_v53, %v1505_v17  ;;  %v1500_v5 = vadd.f32 %v1446_v18, %v1294_v52  ;;  %v2111_v52 = vmov 0.0   ;;  %v1730_v17 = vsel %vm924_vm3, %v1679_v57, 0.0 }
 0x1df   : > { %1584 = vst.msk [vmem:[%s3024_s15] sm:$0x3] %vm1583_vm6, %v2111_v52  ;;  %v1626_v15 = vadd.f32 %v1625_v40, %v1624_v12  ;;  %v1731_v62 = vadd.f32 %v1730_v17, %v1729_v44 }
 0x1e0   : > { %1573 = vst.msk [vmem:[%s2755_s12 + $0xd0] sm:$0xff] %vm924_vm3, %v2991_v51  ;;  %v1536_v43 = vadd.f32 %v2750_v53, %v1500_v5  ;;  %v1637_v6 = vsel %vm924_vm3, %v2991_v51, 0.0 }
 0x1e2   : > { %1568 = vst.msk [vmem:[%s2755_s12 + $0xa8] sm:$0xff] %vm924_vm3, %v1536_v43  ;;  %v1680_v58 = vmul.f32 %v1536_v43, %v1536_v43  ;;  %v1627_v18 = vsel %vm924_vm3, %v1536_v43, 0.0 }
 0x1e3   : > { %v1464_v46 = vpop.f32.mrf.mxu3  ;;  %v1628_v41 = vadd.f32 %v1627_v18, %v1626_v15 }
 0x1e4   : > { %v1506_v48 = vadd.f32 %v1464_v46, %v1312_v24  ;;  %v1732_v16 = vsel %vm924_vm3, %v1680_v58, 0.0 }
 0x1e5   : > { %v1449_v20 = vpop.f32.mrf.mxu2  ;;  %v1733_v23 = vadd.f32 %v1732_v16, %v1731_v62 }
 0x1e6   : > { %v3013_v7 = vadd.f32 %v2750_v53, %v1506_v48  ;;  %v1501_v49 = vadd.f32 %v1449_v20, %v1297_v60  ;;  %v1684_v60 = vmul.f32 %v2979_v22, %v2979_v22  ;;  %v1685_v20 = vmul.f32 %v2991_v51, %v2991_v51 }
 0x1e7   : > { %v1321_v22 = vadd.f32 %v2955_v55, %v2896_v26 }
 0x1e8   : > { %1574 = vst.msk [vmem:[%s2755_s12 + $0xd8] sm:$0xff] %vm924_vm3, %v3013_v7  ;;  %v1537_v13 = vadd.f32 %v2750_v53, %v1501_v49  ;;  %v1740_v49 = vsel %vm924_vm3, %v1684_v60, 0.0  ;;  %v1686_v27 = vmul.f32 %v3013_v7, %v3013_v7  ;;  %v1742_v57 = vsel %vm924_vm3, %v1685_v20, 0.0 }
 0x1e9   : > { %v1639_v42 = vsel %vm924_vm3, %v3013_v7, 0.0 }
 0x1ea   : > { %1569 = vst.msk [vmem:[%s2755_s12 + $0xb0] sm:$0xff] %vm924_vm3, %v1537_v13  ;;  %v1681_v34 = vmul.f32 %v1537_v13, %v1537_v13  ;;  %v1629_v5 = vsel %vm924_vm3, %v1537_v13, 0.0 }
 0x1eb   : > { %v1467_v35 = vpop.f32.mrf.mxu3  ;;  %v1630_v24 = vadd.f32 %v1629_v5, %v1628_v41 }
 0x1ec   : > { %v1507_v30 = vadd.f32 %v1467_v35, %v1315_v61  ;;  %v1734_v19 = vsel %vm924_vm3, %v1681_v34, 0.0  ;;  %v1744_v61 = vsel %vm924_vm3, %v1686_v27, 0.0 }
 0x1ed   : > { %v1452_v31 = vpop.f32.mrf.mxu2  ;;  %v1735_v36 = vadd.f32 %v1734_v19, %v1733_v23 }
 0x1ee   : > { %v1543_v38 = vadd.f32 %v2750_v53, %v1507_v30  ;;  %v1502_v25 = vadd.f32 %v1452_v31, %v1300_v14  ;;  %v1324_v30 = vadd.f32 %v2960_v10, %v2907_v39 }
 0x1f0   : > { %1575 = vst.msk [vmem:[%s2755_s12 + $0xe0] sm:$0xff] %vm924_vm3, %v1543_v38  ;;  %v1538_v43 = vadd.f32 %v2750_v53, %v1502_v25  ;;  %v1687_v13 = vmul.f32 %v1543_v38, %v1543_v38  ;;  %v1641_v8 = vsel %vm924_vm3, %v1543_v38, 0.0 }
 0x1f2   : > { %1570 = vst.msk [vmem:[%s2755_s12 + $0xb8] sm:$0xff] %vm924_vm3, %v1538_v43  ;;  %v1631_v56 = vsel %vm924_vm3, %v1538_v43, 0.0  ;;  %v1682_v37 = vmul.f32 %v1538_v43, %v1538_v43  ;;  %v1746_v26 = vsel %vm924_vm3, %v1687_v13, 0.0 }
 0x1f3   : > { %v1632_v46 = vadd.f32 %v1631_v56, %v1630_v24  ;;  %v1470_v45 = vpop.f32.mrf.mxu3 }
 0x1f4   : > { %v1736_v4 = vsel %vm924_vm3, %v1682_v37, 0.0  ;;  %v1508_v1 = vadd.f32 %v1470_v45, %v1318_v32  ;;  %v1585_v37 = vld [vmem:[%s3024_s15] sm:$0x1]  ;;  %v1658_v45 = vld [vmem:[%s3024_s15 + $0x1] sm:$0x1] }
 0x1f5   : > { %v1634_v48 = vadd.f32 %v1633_v11, %v1632_v46  ;;  %v1737_v28 = vadd.f32 %v1736_v4, %v1735_v36 }
 0x1f6   : > { %v1544_v29 = vadd.f32 %v2750_v53, %v1508_v1 }
 0x1f7   : > { %v1636_v2 = vadd.f32 %v1635_v3, %v1634_v48  ;;  %v1739_v9 = vadd.f32 %v1738_v47, %v1737_v28 }
 0x1f8   : > { %1576 = vst.msk [vmem:[%s2755_s12 + $0xe8] sm:$0xff] %vm924_vm3, %v1544_v29  ;;  %v1688_v63 = vmul.f32 %v1544_v29, %v1544_v29  ;;  %v1643_v55 = vsel %vm924_vm3, %v1544_v29, 0.0 }
 0x1f9   : > { %v1741_v0 = vadd.f32 %v1740_v49, %v1739_v9  ;;  %v1638_v21 = vadd.f32 %v1637_v6, %v1636_v2 }
 0x1fa   : > { %v1748_v35 = vsel %vm924_vm3, %v1688_v63, 0.0 }
 0x1fb   : > { %v1640_v54 = vadd.f32 %v1639_v42, %v1638_v21  ;;  %v1743_v59 = vadd.f32 %v1742_v57, %v1741_v0  ;;  %v1473_v51 = vpop.f32.mrf.mxu3 }
 0x1fc   : > { %v1509_v40 = vadd.f32 %v1473_v51, %v1321_v22 }
 0x1fd   : > { %v1642_v58 = vadd.f32 %v1641_v8, %v1640_v54  ;;  %v1745_v50 = vadd.f32 %v1744_v61, %v1743_v59 }
 0x1fe   : > { %v1545_v7 = vadd.f32 %v2750_v53, %v1509_v40 }
 0x1ff   : > { %v1644_v12 = vadd.f32 %v1643_v55, %v1642_v58  ;;  %v1747_v14 = vadd.f32 %v1746_v26, %v1745_v50 }
 0x200   : > { %1577 = vst.msk [vmem:[%s2755_s12 + $0xf0] sm:$0xff] %vm924_vm3, %v1545_v7  ;;  %v1645_v52 = vsel %vm924_vm3, %v1545_v7, 0.0  ;;  %v1689_v17 = vmul.f32 %v1545_v7, %v1545_v7 }
 0x201   : > { %v1749_v18 = vadd.f32 %v1748_v35, %v1747_v14  ;;  %v1646_v34 = vadd.f32 %v1645_v52, %v1644_v12 }
 0x202   : > { %v1750_v44 = vsel %vm924_vm3, %v1689_v17, 0.0 }
 0x203   : > { %v1751_v15 = vadd.f32 %v1750_v44, %v1749_v18  ;;  %v1476_v31 = vpop.f32.mrf.mxu3 }
 0x204   : > { %v1510_v16 = vadd.f32 %v1476_v31, %v1324_v30 }
 0x206   : > { %v1546_v5 = vadd.f32 %v2750_v53, %v1510_v16 }
 0x208   : > { %1578 = vst.msk [vmem:[%s2755_s12 + $0xf8] sm:$0xff] %vm924_vm3, %v1546_v5  ;;  %v1647_v38 = vsel %vm924_vm3, %v1546_v5, 0.0  ;;  %v1690_v25 = vmul.f32 %v1546_v5, %v1546_v5 }
 0x209   : > { %v1648_v62 = vadd.f32 %v1647_v38, %v1646_v34 }
 0x20a   : > { %v1752_v41 = vsel %vm924_vm3, %v1690_v25, 0.0 }
 0x20b   : > { %v1649_v19 = vrot.slane %v1648_v62, 4  ;;  %v1753_v43 = vadd.f32 %v1752_v41, %v1751_v15 }
 0x20d   : > { %v1650_v39 = vadd.f32 %v1649_v19, %v1648_v62  ;;  %v1754_v10 = vrot.slane %v1753_v43, 4 }
 0x20f   : > { %v1651_v23 = vrot.slane %v1650_v39, 2  ;;  %v1755_v24 = vadd.f32 %v1754_v10, %v1753_v43 }
 0x211   : > { %v1652_v32 = vadd.f32 %v1651_v23, %v1650_v39  ;;  %v1756_v53 = vrot.slane %v1755_v24, 2 }
 0x213   : > { %v1653_v33 = vrot.slane %v1652_v32, 1  ;;  %v1757_v56 = vadd.f32 %v1756_v53, %v1755_v24 }
 0x215   : > { %v1654_v36 = vadd.f32 %v1653_v33, %v1652_v32  ;;  %v1758_v46 = vrot.slane %v1757_v56, 1 }
 0x217   : > { %v1655_v11 = vadd.f32 %v1654_v36, %v1585_v37  ;;  %v1759_v60 = vadd.f32 %v1758_v46, %v1757_v56 }
 0x219   : > { %1657 = vst.msk [vmem:[%s3024_s15] sm:$0x1] %vm1656_vm7, %v1655_v11  ;;  %v1760_v4 = vadd.f32 %v1759_v60, %v1658_v45 }
 0x21b   : > { %1761 = vst.msk [vmem:[%s3024_s15 + $0x1] sm:$0x1] %vm1656_vm7, %v1760_v4 }
 0x21c PF: > { %s17_s23 = sadd.s32 1, %s2107_s23   ;;  %s3109_s21 = smov %s2103_s22 }
 0x21d   : > { %p14_p5 = scmp.ge.s32.totalorder %s17_s23, 4   ;;  %s3110_s22 = smov %s3112_s24 }
 0x21f   :  { %16 = sbr.rel (!%p14_p5) target bundleno = 2 (0x2), region = 92 }

// kernel: conv_block_nested_forward.4
= control target key start
LH: loop header
LB: loop body
LE: loop exit
PB: predicated region body
PF: predicated region fallthrough
CT: control target
= control target key end

     0   :  { %s2485_s26 = smov 0   ;;  %s2487_s2 = smov 0   ;;  %s3638_s0 = inlined_call_operand.vmem [shape: f32[2,16,16,8], index: 0, kind: input, shape index: {}, may-alias: {0,1,2}]   ;;  %s3639_s1 = inlined_call_operand.vmem [shape: f32[2,16,16,8], index: 1, kind: input, shape index: {}, may-alias: {0,1,2}]   ;;  %s3640_s2 = inlined_call_operand.vmem [shape: f32[2,16,16,8], index: 2, kind: input, shape index: {}, may-alias: {0,1,2}]   ;;  %s3641_s3 = inlined_call_operand.vmem [shape: f32[1,8], index: 3, kind: input, shape index: {}]   ;;  %s3642_s4 = inlined_call_operand.vmem [shape: f32[1,8], index: 4, kind: input, shape index: {}]   ;;  %s3643_s5 = inlined_call_operand.vmem [shape: f32[72,8], index: 5, kind: input, shape index: {}]   ;;  %s3644_s6 = inlined_call_operand.vmem [shape: f32[1,8], index: 6, kind: input, shape index: {}]   ;;  %s3645_s7 = inlined_call_operand.vmem [shape: f32[2,16,16,8], index: 7, kind: output, shape index: {0}]   ;;  %s3646_s8 = inlined_call_operand.vmem [shape: f32[2,2,8], index: 8, kind: output, shape index: {1}]  }
   0x1   :  { %s2489_s27 = smov 0  }
   0x2 LB: > { %s31_s28 = sadd.s32 1, %s2431_s2  ;;  %p2251_p0 = scmp.ge.s32.totalorder %s2435_s27, 1  ;;  %s2435_s27 = sphi %s2489_s27, %s19_s27   ;;  %s2431_s2 = sphi %s2487_s2, %s3648_s2   ;;  %s2427_s26 = sphi %s2485_s26, %s3647_s26  }
   0x3   : > { %p33_p1 = scmp.ge.s32.totalorder %s31_s28, 2  ;;  %p351_p2 = scmp.lt.s32.totalorder %s2435_s27, 3 }
   0x5   : > { %s3650_s28 = smov (%p33_p1, %s31_s28), 0  ;;  %p352_p3 = pnand %p2251_p0, %p351_p2 }
   0x6   : > { %p443_p4 = scmp.lt.s32.totalorder (!%p352_p3), %s2427_s26, 1  ;;  %s2438_s15 = smov (!%p352_p3), 8  }
   0x7   : > { %355 = sbr.rel (%p352_p3) target bundleno = 542 (0x21e), region = 48  ;;  %s2439_s16 = smov (!%p352_p3), 16  }
   0xc   : > { %vm685_vm0 = vcmask 1040384   ;;  %v2437_v0 = vmov 0.0   ;;  %vm862_vm1 = vcmask 1046528   ;;  %s3652_s26 = smov (!%p443_p4, %s2427_s26), 1  ;;  %v2511_v2 = vld [vmem:[%s3641_s3] ss:$0 sm:$0xff] }
   0xd   : > { %v2504_v1 = vrot.slane %v2437_v0, 7  ;;  %s2360_s9 = sshll.u32 %s3652_s26, 8  ;;  %v2534_v11 = vld [vmem:[%s3642_s4] ss:$0 sm:$0xff]  ;;  %vm1039_vm2 = vcmask 1045504   ;;  %vm1216_vm3 = vcmask 64512  }
   0xe   : > { %s2529_s12 = scalar_lea.vmem %s3639_s1, %s2360_s9  ;;  %vm1249_vm4 = vcmask 130048   ;;  %vm1316_vm5 = vcmask 195584   ;;  %s3247_s20 = scalar_lea.vmem %s3645_s7, %s2360_s9  ;;  %vm1899_vm6 = vcmask 58368   ;;  %vm1972_vm7 = vcmask 57344  }
   0xf   : > { %v2515_v3 = vsel %vm685_vm0, 0.0, %v2504_v1  ;;  %v812_v4 = vsel %vm685_vm0, %v2504_v1, 0.0  ;;  %v864_v5 = vrot.slane %v2504_v1, 1  ;;  %v1041_v6 = vrot.slane %v2504_v1, 2  ;;  %v523_v14 = vld [vmem:[%s2529_s12 + $0x10] sm:$0xff]  ;;  %v524_v15 = vld [vmem:[%s2529_s12 + $0x18] sm:$0xff] }
  0x10   : > { %v863_v7 = vrot.slane %v2515_v3, 1  ;;  %v866_v8 = vrot.slane %v812_v4, 1  ;;  %v1040_v9 = vrot.slane %v2515_v3, 2  ;;  %v1043_v10 = vrot.slane %v812_v4, 2  ;;  %v521_v16 = vld [vmem:[%s2529_s12] sm:$0xff]  ;;  %v522_v22 = vld [vmem:[%s2529_s12 + $0x8] sm:$0xff] }
  0x11   : > { %v555_v20 = vmul.f32 %v2511_v2, %v523_v14  ;;  %v556_v21 = vmul.f32 %v2511_v2, %v524_v15  ;;  %v553_v23 = vmul.f32 %v2511_v2, %v521_v16  ;;  %v525_v24 = vld [vmem:[%s2529_s12 + $0x20] sm:$0xff]  ;;  %v526_v25 = vld [vmem:[%s2529_s12 + $0x28] sm:$0xff]  ;;  %v554_v26 = vmul.f32 %v2511_v2, %v522_v22  ;;  %s2260_s9 = sshll.u32 %s3652_s26, 1 }
  0x12   : > { %v2537_v12 = vsel %vm862_vm1, %v863_v7, %v864_v5  ;;  %v2540_v13 = vsel %vm862_vm1, %v864_v5, %v866_v8  ;;  %v2546_v17 = vsel %vm1039_vm2, %v1040_v9, %v1041_v6  ;;  %v2549_v18 = vsel %vm1039_vm2, %v1041_v6, %v1043_v10  ;;  %v545_v44 = vld [vmem:[%s2529_s12 + $0xc0] sm:$0xff]  ;;  %v546_v45 = vld [vmem:[%s2529_s12 + $0xc8] sm:$0xff]  ;;  %s3531_s22 = scalar_lea.vmem %s3646_s8, %s2260_s9 }
  0x13   : > { %v2400_v19 = vpack.i.bf16 %v2540_v13, %v2537_v12  ;;  %v2405_v27 = vpack.i.bf16 %v2549_v18, %v2546_v17  ;;  %v587_v28 = vadd.f32 %v2534_v11, %v555_v20  ;;  %v588_v29 = vadd.f32 %v2534_v11, %v556_v21  ;;  %1900 = vst.msk [vmem:[%s3531_s22] sm:$0x3] %vm1899_vm6, %v2437_v0 }
  0x14   : > { %v585_v30 = vadd.f32 %v2534_v11, %v553_v23  ;;  %v586_v31 = vadd.f32 %v2534_v11, %v554_v26  ;;  %v557_v32 = vmul.f32 %v2511_v2, %v525_v24  ;;  %v558_v33 = vmul.f32 %v2511_v2, %v526_v25 }
  0x15   : > { %2401 = vrot.lane.b32.xlu1 %v2400_v19, %s2438_s15  ;;  %2406 = vrot.lane.b32.xlu2 %v2405_v27, %s2439_s16  ;;  %v619_v34 = vmax.f32 %v587_v28, 0.0  ;;  %v620_v35 = vmax.f32 %v588_v29, 0.0  ;;  %v577_v54 = vmul.f32 %v2511_v2, %v545_v44  ;;  %v578_v55 = vmul.f32 %v2511_v2, %v546_v45  ;;  %v527_v44 = vld [vmem:[%s2529_s12 + $0x30] sm:$0xff]  ;;  %v528_v45 = vld [vmem:[%s2529_s12 + $0x38] sm:$0xff] }
  0x16   : > { %v617_v36 = vmax.f32 %v585_v30, 0.0  ;;  %v618_v37 = vmax.f32 %v586_v31, 0.0  ;;  %v589_v42 = vadd.f32 %v2534_v11, %v557_v32  ;;  %v590_v43 = vadd.f32 %v2534_v11, %v558_v33  ;;  %v547_v30 = vld [vmem:[%s2529_s12 + $0xd0] sm:$0xff]  ;;  %v548_v31 = vld [vmem:[%s2529_s12 + $0xd8] sm:$0xff] }
  0x17   : > { %v692_v38 = vrot.slane %v619_v34, 7  ;;  %v693_v39 = vrot.slane %v620_v35, 7  ;;  %v609_v6 = vadd.f32 %v2534_v11, %v577_v54  ;;  %v610_v7 = vadd.f32 %v2534_v11, %v578_v55 }
  0x18   : > { %v689_v40 = vrot.slane %v617_v36, 7  ;;  %v690_v41 = vrot.slane %v618_v37, 7  ;;  %v621_v58 = vmax.f32 %v589_v42, 0.0  ;;  %v622_v59 = vmax.f32 %v590_v43, 0.0 }
  0x19   : > { %v2575_v46 = vsel %vm685_vm0, %v692_v38, %v693_v39  ;;  %v2578_v47 = vsel %vm685_vm0, 0.0, %v692_v38  ;;  %v814_v57 = vsel %vm685_vm0, %v693_v39, 0.0  ;;  %v641_v19 = vmax.f32 %v609_v6, 0.0 }
  0x1a   : > { %v2581_v48 = vsel %vm685_vm0, 0.0, %v689_v40  ;;  %v873_v49 = vrot.slane %v2578_v47, 1  ;;  %v874_v50 = vrot.slane %v2575_v46, 1  ;;  %v2586_v51 = vsel %vm685_vm0, %v689_v40, %v690_v41 }
  0x1b   : > { %v868_v52 = vrot.slane %v2581_v48, 1  ;;  %v869_v53 = vrot.slane %v2586_v51, 1  ;;  %v1050_v61 = vrot.slane %v2578_v47, 2  ;;  %v1051_v62 = vrot.slane %v2575_v46, 2 }
  0x1c   : > { %v875_v56 = vsel %vm862_vm1, %v873_v49, %v874_v50  ;;  %v1046_v63 = vrot.slane %v2586_v51, 2  ;;  %v1045_v4 = vrot.slane %v2581_v48, 2  ;;  %v1053_v5 = vrot.slane %v814_v57, 2 }
  0x1d   : > { %951 = vrot.lane.b32.xlu0 %v875_v56, %s2438_s15  ;;  %v870_v60 = vsel %vm862_vm1, %v868_v52, %v869_v53  ;;  %v695_v8 = vrot.slane %v621_v58, 7  ;;  %v696_v9 = vrot.slane %v622_v59, 7  ;;  %v1052_v14 = vsel %vm1039_vm2, %v1050_v61, %v1051_v62 }
  0x1e   : > { %947 = vrot.lane.b32.xlu1 %v870_v60, %s2438_s15  ;;  %v1047_v10 = vsel %vm1039_vm2, %v1045_v4, %v1046_v63  ;;  %v1054_v15 = vsel %vm1039_vm2, %v1051_v62, %v1053_v5  ;;  %v813_v16 = vsel %vm685_vm0, %v690_v41, 0.0  ;;  %v642_v20 = vmax.f32 %v610_v7, 0.0 }
  0x1f   : > { %1124 = vrot.lane.b32.xlu2 %v1047_v10, %s2439_s16  ;;  %v2609_v21 = vsel %vm685_vm0, %v695_v8, %v696_v9  ;;  %v2612_v22 = vsel %vm685_vm0, 0.0, %v695_v8  ;;  %v871_v23 = vrot.slane %v813_v16, 1  ;;  %v876_v24 = vrot.slane %v814_v57, 1 }
  0x20   : > { %v878_v26 = vrot.slane %v2612_v22, 1  ;;  %v879_v27 = vrot.slane %v2609_v21, 1  ;;  %v725_v28 = vrot.slane %v641_v19, 7  ;;  %v726_v29 = vrot.slane %v642_v20, 7 }
  0x21   : > { %v872_v25 = vsel %vm862_vm1, %v869_v53, %v871_v23  ;;  %v877_v32 = vsel %vm862_vm1, %v874_v50, %v876_v24  ;;  %v579_v37 = vmul.f32 %v2511_v2, %v547_v30  ;;  %v580_v38 = vmul.f32 %v2511_v2, %v548_v31  ;;  %v530_v30 = vld [vmem:[%s2529_s12 + $0x48] sm:$0xff] }
  0x22   : > { %v880_v33 = vsel %vm862_vm1, %v878_v26, %v879_v27  ;;  %v2625_v34 = vsel %vm685_vm0, %v725_v28, %v726_v29  ;;  %v2628_v35 = vsel %vm685_vm0, 0.0, %v725_v28  ;;  %v1048_v40 = vrot.slane %v813_v16, 2 }
  0x23   : > { %v929_v36 = vrot.slane %v2625_v34, 1  ;;  %v928_v39 = vrot.slane %v2628_v35, 1  ;;  %v1105_v42 = vrot.slane %v2628_v35, 2  ;;  %v1106_v43 = vrot.slane %v2625_v34, 2 }
  0x24   : > { %v611_v49 = vadd.f32 %v2534_v11, %v579_v37  ;;  %v612_v50 = vadd.f32 %v2534_v11, %v580_v38  ;;  %v1049_v52 = vsel %vm1039_vm2, %v1046_v63, %v1048_v40  ;;  %v815_v53 = vsel %vm685_vm0, %v696_v9, 0.0 }
  0x25   : > { %1128 = vrot.lane.b32.xlu0 %v1052_v14, %s2439_s16  ;;  %v930_v41 = vsel %vm862_vm1, %v928_v39, %v929_v36  ;;  %v559_v54 = vmul.f32 %v2511_v2, %v527_v44  ;;  %v1107_v55 = vsel %vm1039_vm2, %v1105_v42, %v1106_v43  ;;  %v560_v56 = vmul.f32 %v2511_v2, %v528_v45 }
  0x26   : > { %1130 = vrot.lane.b32.xlu1 %v1054_v15, %s2439_s16  ;;  %v881_v57 = vrot.slane %v815_v53, 1  ;;  %v643_v58 = vmax.f32 %v611_v49, 0.0  ;;  %v644_v59 = vmax.f32 %v612_v50, 0.0  ;;  %v1055_v60 = vrot.slane %v2612_v22, 2  ;;  %v549_v50 = vld [vmem:[%s2529_s12 + $0xe0] sm:$0xff] }
  0x27   : > { %949 = vrot.lane.b32.xlu2 %v872_v25, %s2438_s15  ;;  %v1056_v61 = vrot.slane %v2609_v21, 2  ;;  %v591_v62 = vadd.f32 %v2534_v11, %v559_v54  ;;  %v1058_v4 = vrot.slane %v815_v53, 2  ;;  %v592_v5 = vadd.f32 %v2534_v11, %v560_v56  ;;  %v550_v53 = vld [vmem:[%s2529_s12 + $0xe8] sm:$0xff] }
  0x28   : > { %v882_v63 = vsel %vm862_vm1, %v879_v27, %v881_v57  ;;  %v728_v6 = vrot.slane %v643_v58, 7  ;;  %v729_v7 = vrot.slane %v644_v59, 7  ;;  %v825_v9 = vsel %vm685_vm0, %v726_v29, 0.0  ;;  %v529_v29 = vld [vmem:[%s2529_s12 + $0x40] sm:$0xff] }
  0x29   : > { %v1057_v8 = vsel %vm1039_vm2, %v1055_v60, %v1056_v61  ;;  %v623_v10 = vmax.f32 %v591_v62, 0.0  ;;  %v1059_v14 = vsel %vm1039_vm2, %v1056_v61, %v1058_v4  ;;  %v624_v15 = vmax.f32 %v592_v5, 0.0 }
  0x2a   : > { %v1108_v16 = vrot.slane %v825_v9, 2  ;;  %v2661_v19 = vsel %vm685_vm0, %v728_v6, %v729_v7  ;;  %v2664_v20 = vsel %vm685_vm0, 0.0, %v728_v6  ;;  %v931_v23 = vrot.slane %v825_v9, 1 }
  0x2b   : > { %v698_v24 = vrot.slane %v623_v10, 7  ;;  %v699_v26 = vrot.slane %v624_v15, 7  ;;  %v933_v27 = vrot.slane %v2664_v20, 1  ;;  %v934_v28 = vrot.slane %v2661_v19, 1  ;;  %v531_v10 = vld [vmem:[%s2529_s12 + $0x50] sm:$0xff] }
  0x2c   : > { %v1109_v25 = vsel %vm1039_vm2, %v1106_v43, %v1108_v16  ;;  %v932_v31 = vsel %vm862_vm1, %v929_v36, %v931_v23  ;;  %v562_v39 = vmul.f32 %v2511_v2, %v530_v30  ;;  %v581_v56 = vmul.f32 %v2511_v2, %v549_v50 }
  0x2d   : > { %953 = vrot.lane.b32.xlu0 %v877_v32, %s2438_s15  ;;  %v2676_v32 = vsel %vm685_vm0, 0.0, %v698_v24  ;;  %v2680_v37 = vsel %vm685_vm0, %v698_v24, %v699_v26  ;;  %v935_v38 = vsel %vm862_vm1, %v933_v27, %v934_v28  ;;  %v582_v59 = vmul.f32 %v2511_v2, %v550_v53 }
  0x2e   : > { %955 = vrot.lane.b32.xlu1 %v880_v33, %s2438_s15  ;;  %v561_v33 = vmul.f32 %v2511_v2, %v529_v29  ;;  %v1060_v40 = vrot.slane %v2676_v32, 2  ;;  %v1061_v36 = vrot.slane %v2680_v37, 2  ;;  %v883_v42 = vrot.slane %v2676_v32, 1 }
  0x2f   : > { %995 = vrot.lane.b32.xlu2 %v930_v41, %s2438_s15  ;;  %v816_v41 = vsel %vm685_vm0, %v699_v26, 0.0  ;;  %v884_v43 = vrot.slane %v2680_v37, 1  ;;  %v1110_v62 = vrot.slane %v2664_v20, 2  ;;  %v613_v4 = vadd.f32 %v2534_v11, %v581_v56 }
  0x30   : > { %v593_v44 = vadd.f32 %v2534_v11, %v561_v33  ;;  %v1062_v45 = vsel %vm1039_vm2, %v1060_v40, %v1061_v36  ;;  %v886_v49 = vrot.slane %v816_v41, 1  ;;  %v563_v29 = vmul.f32 %v2511_v2, %v531_v10 }
  0x31   : > { %v885_v54 = vsel %vm862_vm1, %v883_v42, %v884_v43  ;;  %v645_v16 = vmax.f32 %v613_v4, 0.0 }
  0x32   : > { %v625_v57 = vmax.f32 %v593_v44, 0.0  ;;  %v887_v58 = vsel %vm862_vm1, %v884_v43, %v886_v49  ;;  %v551_v43 = vld [vmem:[%s2529_s12 + $0xf0] sm:$0xff]  ;;  %v595_v44 = vadd.f32 %v2534_v11, %v563_v29  ;;  %v552_v49 = vld [vmem:[%s2529_s12 + $0xf8] sm:$0xff] }
  0x33   : > { %v731_v33 = vrot.slane %v645_v16, 7 }
  0x34   : > { %v701_v5 = vrot.slane %v625_v57, 7 }
  0x35   : > { %1126 = vrot.lane.b32.xlu0 %v1049_v52, %s2439_s16  ;;  %v594_v52 = vadd.f32 %v2534_v11, %v562_v39  ;;  %v2738_v50 = vsel %vm685_vm0, 0.0, %v731_v33 }
  0x36   : > { %1172 = vrot.lane.b32.xlu1 %v1107_v55, %s2439_s16  ;;  %v826_v55 = vsel %vm685_vm0, %v729_v7, 0.0  ;;  %v2714_v23 = vsel %vm685_vm0, 0.0, %v701_v5  ;;  %v1115_v56 = vrot.slane %v2738_v50, 2 }
  0x37   : > { %957 = vrot.lane.b32.xlu2 %v882_v63, %s2438_s15  ;;  %v626_v60 = vmax.f32 %v594_v52, 0.0  ;;  %v936_v61 = vrot.slane %v826_v55, 1  ;;  %v1111_v63 = vrot.slane %v2661_v19, 2  ;;  %v1113_v7 = vrot.slane %v826_v55, 2 }
  0x38   : > { %v888_v27 = vrot.slane %v2714_v23, 1  ;;  %v1065_v40 = vrot.slane %v2714_v23, 2  ;;  %v583_v52 = vmul.f32 %v2511_v2, %v551_v43  ;;  %v584_v55 = vmul.f32 %v2511_v2, %v552_v49 }
  0x39   : > { %v937_v6 = vsel %vm862_vm1, %v934_v28, %v936_v61  ;;  %v702_v9 = vrot.slane %v626_v60, 7  ;;  %v1112_v15 = vsel %vm1039_vm2, %v1110_v62, %v1111_v63  ;;  %v1114_v24 = vsel %vm1039_vm2, %v1111_v63, %v1113_v7  ;;  %v2755_v60 = vld [vmem:[%s3643_s5 + $0x10] sm:$0xff] }
  0x3a   : > { %v938_v61 = vrot.slane %v2738_v50, 1  ;;  %v615_v63 = vadd.f32 %v2534_v11, %v583_v52  ;;  %1545 = vmatpush.msra.mxu1 %v2755_v60 }
  0x3b   : > { %v2718_v26 = vsel %vm685_vm0, %v701_v5, %v702_v9 }
  0x3c   : > { %v889_v28 = vrot.slane %v2718_v26, 1  ;;  %v1066_v42 = vrot.slane %v2718_v26, 2 }
  0x3d   : > { %1132 = vrot.lane.b32.xlu0 %v1057_v8, %s2439_s16  ;;  %v614_v8 = vadd.f32 %v2534_v11, %v582_v59 }
  0x3e   : > { %1134 = vrot.lane.b32.xlu1 %v1059_v14, %s2439_s16  ;;  %v532_v14 = vld [vmem:[%s2529_s12 + $0x58] sm:$0xff] }
  0x3f   : > { %1174 = vrot.lane.b32.xlu2 %v1109_v25, %s2439_s16  ;;  %v646_v25 = vmax.f32 %v614_v8, 0.0  ;;  %v564_v30 = vmul.f32 %v2511_v2, %v532_v14  ;;  %v817_v14 = vsel %vm685_vm0, %v702_v9, 0.0 }
  0x41   : > { %v732_v39 = vrot.slane %v646_v25, 7  ;;  %v1068_v25 = vrot.slane %v817_v14, 2 }
  0x43   : > { %v2742_v53 = vsel %vm685_vm0, %v731_v33, %v732_v39  ;;  %v2748_v57 = vsel %vm685_vm0, %v732_v39, 0.0  ;;  %v1069_v9 = vsel %vm1039_vm2, %v1066_v42, %v1068_v25  ;;  %v1283_v33 = vld [vmem:[%s3643_s5 + $0x8] sm:$0xff] }
  0x44   : > { %v939_v62 = vrot.slane %v2742_v53, 1  ;;  %v941_v5 = vrot.slane %v2748_v57, 1  ;;  %1546 = vmatpush.msra.mxu1 %v1283_v33 }
  0x45   : > { %997 = vrot.lane.b32.xlu0 %v932_v31, %s2438_s15  ;;  %v1063_v31 = vrot.slane %v816_v41, 2 }
  0x46   : > { %999 = vrot.lane.b32.xlu1 %v935_v38, %s2438_s15  ;;  %v890_v38 = vsel %vm862_vm1, %v888_v27, %v889_v28  ;;  %v940_v10 = vsel %vm862_vm1, %v938_v61, %v939_v62  ;;  %v942_v16 = vsel %vm862_vm1, %v939_v62, %v941_v5  ;;  %v534_v5 = vld [vmem:[%s2529_s12 + $0x68] sm:$0xff] }
  0x47   : > { %1136 = vrot.lane.b32.xlu2 %v1062_v45, %s2439_s16  ;;  %v596_v45 = vadd.f32 %v2534_v11, %v564_v30  ;;  %v1064_v41 = vsel %vm1039_vm2, %v1061_v36, %v1063_v31  ;;  %v627_v36 = vmax.f32 %v595_v44, 0.0  ;;  %v891_v30 = vrot.slane %v817_v14, 1  ;;  %v544_v44 = vld [vmem:[%s2529_s12 + $0xb8] sm:$0xff] }
  0x49   : > { %v628_v59 = vmax.f32 %v596_v45, 0.0  ;;  %v704_v7 = vrot.slane %v627_v36, 7  ;;  %v892_v45 = vsel %vm862_vm1, %v889_v28, %v891_v30  ;;  %v576_v36 = vmul.f32 %v2511_v2, %v544_v44  ;;  %v1315_v28 = vld [vmem:[%s3643_s5 + $0x28] sm:$0xff]  ;;  %v2843_v30 = vld [vmem:[%s3643_s5 + $0x40] sm:$0xff] }
  0x4a   : > { %1426 = vmatpush.msra.mxu0 %v1315_v28  ;;  %2364 = vmatpush.msra.mxu3 %v1315_v28 }
  0x4b   : > { %v705_v8 = vrot.slane %v628_v59, 7  ;;  %v2775_v29 = vsel %vm685_vm0, 0.0, %v704_v7  ;;  %v1118_v59 = vrot.slane %v2748_v57, 2  ;;  %v1314_v57 = vld [vmem:[%s3643_s5 + $0x20] sm:$0xff]  ;;  %1695 = vmatpush.msra.mxu2 %v2843_v30 }
  0x4c   : > { %v893_v39 = vrot.slane %v2775_v29, 1  ;;  %1427 = vmatpush.msra.mxu0 %v1314_v57  ;;  %2365 = vmatpush.msra.mxu3 %v1314_v57 }
  0x4d   : > { %959 = vrot.lane.b32.xlu0 %v885_v54, %s2438_s15  ;;  %v1067_v54 = vsel %vm1039_vm2, %v1065_v40, %v1066_v42  ;;  %v2772_v27 = vsel %vm685_vm0, %v704_v7, %v705_v8  ;;  %v543_v42 = vld [vmem:[%s2529_s12 + $0xb0] sm:$0xff]  ;;  %v608_v7 = vadd.f32 %v2534_v11, %v576_v36  ;;  %v818_v14 = vsel %vm685_vm0, %v705_v8, 0.0 }
  0x4e   : > { %961 = vrot.lane.b32.xlu1 %v887_v58, %s2438_s15  ;;  %v1116_v58 = vrot.slane %v2742_v53, 2  ;;  %v894_v40 = vrot.slane %v2772_v27, 1  ;;  %v2865_v36 = vld [vmem:[%s3643_s5 + $0x30] sm:$0xff] }
  0x4f   : > { %1001 = vrot.lane.b32.xlu2 %v937_v6, %s2438_s15  ;;  %v616_v6 = vadd.f32 %v2534_v11, %v584_v55  ;;  %v640_v8 = vmax.f32 %v608_v7, 0.0 }
  0x50   : > { %v1117_v4 = vsel %vm1039_vm2, %v1115_v56, %v1116_v58  ;;  %v575_v56 = vmul.f32 %v2511_v2, %v543_v42  ;;  %v1071_v42 = vrot.slane %v2772_v27, 2 }
  0x51   : > { %v723_v28 = vrot.slane %v640_v8, 7 }
  0x55   : > { %1176 = vrot.lane.b32.xlu0 %v1112_v15, %s2439_s16  ;;  %v647_v15 = vmax.f32 %v615_v63, 0.0 }
  0x56   : > { %1178 = vrot.lane.b32.xlu1 %v1114_v24, %s2439_s16  ;;  %v648_v24 = vmax.f32 %v616_v6, 0.0  ;;  %v607_v6 = vadd.f32 %v2534_v11, %v575_v56  ;;  %v1073_v56 = vrot.slane %v818_v14, 2 }
  0x57   : > { %963 = vrot.lane.b32.xlu2 %v890_v38, %s2438_s15  ;;  %v734_v31 = vrot.slane %v647_v15, 7  ;;  %v2786_v38 = vld [vmem:[%s3643_s5] sm:$0xff] }
  0x58   : > { %v2790_v43 = vrot.slane %v648_v24, 7  ;;  %1547 = vmatpush.msra.mxu1 %v2786_v38  ;;  %v1313_v24 = vld [vmem:[%s3643_s5 + $0x18] sm:$0xff] }
  0x59   : > { %v2800_v49 = vsel %vm685_vm0, 0.0, %v734_v31  ;;  %1428 = vmatpush.msra.mxu0 %v1313_v24  ;;  %2366 = vmatpush.msra.mxu3 %v1313_v24 }
  0x5a   : > { %v2805_v52 = vsel %vm685_vm0, %v734_v31, %v2790_v43  ;;  %v1298_v62 = vrot.slane %v2800_v49, 2  ;;  %v639_v31 = vmax.f32 %v607_v6, 0.0 }
  0x5b   : > { %v1288_v55 = vrot.slane %v2805_v52, 1  ;;  %v1299_v63 = vrot.slane %v2805_v52, 2  ;;  %2367 = vmatpush.msrb.mxu3 %v2755_v60 }
  0x5c   : > { %v722_v60 = vrot.slane %v639_v31, 7  ;;  %v536_v31 = vld [vmem:[%s2529_s12 + $0x78] sm:$0xff] }
  0x5d   : > { %1138 = vrot.lane.b32.xlu0 %v1064_v41, %s2439_s16  ;;  %v895_v41 = vsel %vm862_vm1, %v893_v39, %v894_v40  ;;  %v1300_v25 = vsel %vm1039_vm2, %v1298_v62, %v1299_v63  ;;  %v2851_v39 = vld [vmem:[%s3643_s5 + $0x38] sm:$0xff]  ;;  %2368 = vmatpush.msrb.mxu3 %v1283_v33 }
  0x5e   : > { %1140 = vrot.lane.b32.xlu1 %v1067_v54, %s2439_s16  ;;  %v1287_v54 = vrot.slane %v2800_v49, 1  ;;  %1696 = vmatpush.msra.mxu2 %v2851_v39  ;;  %v2875_v33 = vsel %vm685_vm0, %v722_v60, %v723_v28  ;;  %v2878_v6 = vsel %vm685_vm0, 0.0, %v722_v60 }
  0x5f   : > { %1180 = vrot.lane.b32.xlu2 %v1117_v4, %s2439_s16  ;;  %v533_v4 = vld [vmem:[%s2529_s12 + $0x60] sm:$0xff]  ;;  %2369 = vmatpush.msrb.mxu3 %v2786_v38 }
  0x60   : > { %v1289_v61 = vsel %vm862_vm1, %v1287_v54, %v1288_v55  ;;  %v565_v15 = vmul.f32 %v2511_v2, %v533_v4  ;;  %1697 = vmatpush.msra.mxu2 %v2865_v36  ;;  %v1074_v4 = vsel %vm1039_vm2, %v1071_v42, %v1073_v56 }
  0x65   : > { %1003 = vrot.lane.b32.xlu0 %v940_v10, %s2438_s15  ;;  %v1119_v10 = vsel %vm1039_vm2, %v1116_v58, %v1118_v59  ;;  %v896_v58 = vrot.slane %v818_v14, 1  ;;  %v923_v14 = vrot.slane %v2878_v6, 1 }
  0x66   : > { %1005 = vrot.lane.b32.xlu1 %v942_v16, %s2438_s15  ;;  %v566_v16 = vmul.f32 %v2511_v2, %v534_v5 }
  0x67   : > { %1142 = vrot.lane.b32.xlu2 %v1069_v9, %s2439_s16  ;;  %v1070_v9 = vrot.slane %v2775_v29, 2  ;;  %v897_v54 = vsel %vm862_vm1, %v894_v40, %v896_v58  ;;  %v828_v40 = vsel %vm685_vm0, %v2790_v43, 0.0  ;;  %v535_v58 = vld [vmem:[%s2529_s12 + $0x70] sm:$0xff] }
  0x68   : > { %v1301_v5 = vrot.slane %v828_v40, 2  ;;  %v1290_v38 = vrot.slane %v828_v40, 1  ;;  %v568_v40 = vmul.f32 %v2511_v2, %v536_v31 }
  0x69   : > { %v1072_v59 = vsel %vm1039_vm2, %v1070_v9, %v1071_v42 }
  0x6d   : > { %965 = vrot.lane.b32.xlu0 %v892_v45, %s2438_s15  ;;  %v597_v45 = vadd.f32 %v2534_v11, %v565_v15  ;;  %v924_v15 = vrot.slane %v2875_v33, 1 }
  0x6e   : > { %967 = vrot.lane.b32.xlu1 %v895_v41, %s2438_s15  ;;  %v598_v41 = vadd.f32 %v2534_v11, %v566_v16  ;;  %v1291_v16 = vsel %vm862_vm1, %v1288_v55, %v1290_v38 }
  0x6f   : > { %1292 = vrot.lane.b32.xlu2 %v1289_v61, %s2438_s15  ;;  %v2856_v44 = vpop.permute.xlu2 %2406  ;;  %v629_v61 = vmax.f32 %v597_v45, 0.0 }
  0x70   : > { %v630_v62 = vmax.f32 %v598_v41, 0.0  ;;  %v2408_v45 = vunpack.i.l.bf16 %v2856_v44 }
  0x71   : > { %v707_v7 = vrot.slane %v629_v61, 7 }
  0x72   : > { %v708_v43 = vrot.slane %v630_v62, 7 }
  0x74   : > { %v2890_v24 = vsel %vm685_vm0, %v707_v7, %v708_v43  ;;  %v2902_v9 = vsel %vm685_vm0, %v708_v43, 0.0  ;;  %v538_v43 = vld [vmem:[%s2529_s12 + $0x88] sm:$0xff] }
  0x75   : > { %1182 = vrot.lane.b32.xlu0 %v1119_v10, %s2439_s16  ;;  %v1302_v10 = vsel %vm1039_vm2, %v1299_v63, %v1301_v5  ;;  %v925_v63 = vsel %vm862_vm1, %v923_v14, %v924_v15  ;;  %v1076_v55 = vrot.slane %v2890_v24, 2  ;;  %v901_v62 = vrot.slane %v2902_v9, 1 }
  0x76   : > { %1303 = vrot.lane.b32.xlu1 %v1300_v25, %s2439_s16  ;;  %v2893_v25 = vsel %vm685_vm0, 0.0, %v707_v7  ;;  %v537_v7 = vld [vmem:[%s2529_s12 + $0x80] sm:$0xff] }
  0x77   : > { %969 = vrot.lane.b32.xlu2 %v897_v54, %s2438_s15  ;;  %v1075_v8 = vrot.slane %v2893_v25, 2  ;;  %v898_v41 = vrot.slane %v2893_v25, 1  ;;  %v899_v54 = vrot.slane %v2890_v24, 1 }
  0x79   : > { %v1125_v57 = vpop.permute.xlu2 %1124  ;;  %v1077_v61 = vsel %vm1039_vm2, %v1075_v8, %v1076_v55  ;;  %v824_v8 = vsel %vm685_vm0, %v723_v28, 0.0 }
  0x7d   : > { %1144 = vrot.lane.b32.xlu0 %v1072_v59, %s2439_s16  ;;  %v567_v59 = vmul.f32 %v2511_v2, %v535_v58  ;;  %v902_v58 = vsel %vm862_vm1, %v899_v54, %v901_v62 }
  0x7e   : > { %1146 = vrot.lane.b32.xlu1 %v1074_v4, %s2439_s16 }
  0x7f   : > { %1305 = vrot.lane.b32.xlu2 %v1302_v10, %s2439_s16  ;;  %v900_v10 = vsel %vm862_vm1, %v898_v41, %v899_v54  ;;  %v599_v14 = vadd.f32 %v2534_v11, %v567_v59  ;;  %v1100_v41 = vrot.slane %v2878_v6, 2 }
  0x81   : > { %v2910_v60 = vpop.permute.xlu2 %949 }
  0x85   : > { %1294 = vrot.lane.b32.xlu0 %v1291_v16, %s2438_s15  ;;  %v600_v16 = vadd.f32 %v2534_v11, %v568_v40 }
  0x86   : > { %991 = vrot.lane.b32.xlu1 %v925_v63, %s2438_s15  ;;  %v2409_v63 = vunpack.i.h.bf16 %v2856_v44  ;;  %v631_v44 = vmax.f32 %v599_v14, 0.0 }
  0x87   : > { %v2402_v42 = vpop.permute.xlu1 %2401  ;;  %1148 = vrot.lane.b32.xlu2 %v1077_v61, %s2439_s16  ;;  %v632_v59 = vmax.f32 %v600_v16, 0.0  ;;  %v1103_v61 = vrot.slane %v824_v8, 2  ;;  %v926_v16 = vrot.slane %v824_v8, 1 }
  0x88   : > { %v2403_v56 = vunpack.i.l.bf16 %v2402_v42  ;;  %v2404_v4 = vunpack.i.h.bf16 %v2402_v42  ;;  %v569_v42 = vmul.f32 %v2511_v2, %v537_v7 }
  0x89   : > { %v2940_v28 = vpop.permute.xlu2 %995  ;;  %v711_v14 = vrot.slane %v632_v59, 7 }
  0x8a   : > { %v1217_v5 = vsel %vm1216_vm3, %v2515_v3, %v2403_v56  ;;  %v1218_v31 = vsel %vm1216_vm3, %v2504_v1, %v2404_v4  ;;  %v1101_v56 = vrot.slane %v2875_v33, 2  ;;  %v601_v4 = vadd.f32 %v2534_v11, %v569_v42 }
  0x8b   : > { %v1250_v38 = vsel %vm1249_vm4, %v1217_v5, %v2408_v45  ;;  %v570_v45 = vmul.f32 %v2511_v2, %v538_v43  ;;  %v1251_v40 = vsel %vm1249_vm4, %v1218_v31, %v2409_v63 }
  0x8c   : > { %2293 = vmatmul.msk.f32.vlgmr.msra.gmra.mxu1 %vm1316_vm5, %v1250_v38  ;;  %v1102_v7 = vsel %vm1039_vm2, %v1100_v41, %v1101_v56  ;;  %v1104_v63 = vsel %vm1039_vm2, %v1101_v56, %v1103_v61  ;;  %v633_v31 = vmax.f32 %v601_v4, 0.0 }
  0x8d   : > { %971 = vrot.lane.b32.xlu0 %v900_v10, %s2438_s15  ;;  %v602_v5 = vadd.f32 %v2534_v11, %v570_v45  ;;  %v710_v10 = vrot.slane %v631_v44, 7 }
  0x8e   : > { %973 = vrot.lane.b32.xlu1 %v902_v58, %s2438_s15  ;;  %v820_v58 = vsel %vm685_vm0, %v711_v14, 0.0 }
  0x8f   : > { %v952_v54 = vpop.permute.xlu0 %951  ;;  %v634_v42 = vmax.f32 %v602_v5, 0.0  ;;  %v2960_v8 = vsel %vm685_vm0, %v710_v10, %v711_v14  ;;  %v906_v44 = vrot.slane %v820_v58, 1  ;;  %v2973_v4 = vsel %vm685_vm0, 0.0, %v710_v10 }
  0x90   : > { %v948_v62 = vpop.permute.xlu1 %947  ;;  %v1221_v45 = vsel %vm1216_vm3, %v2578_v47, %v952_v54  ;;  %v904_v56 = vrot.slane %v2960_v8, 1 }
  0x91   : > { %v1219_v38 = vsel %vm1216_vm3, %v2581_v48, %v948_v62  ;;  %v927_v48 = vsel %vm862_vm1, %v924_v15, %v926_v16  ;;  %v714_v61 = vrot.slane %v634_v42, 7  ;;  %v539_v62 = vld [vmem:[%s2529_s12 + $0x90] sm:$0xff] }
  0x92   : > { %v1252_v43 = vsel %vm1249_vm4, %v1219_v38, %v1125_v57  ;;  %993 = vrot.lane.b32.xlu2 %v927_v48, %s2438_s15  ;;  %v1078_v57 = vrot.slane %v2902_v9, 2  ;;  %v540_v9 = vld [vmem:[%s2529_s12 + $0x98] sm:$0xff]  ;;  %v571_v47 = vmul.f32 %v2511_v2, %v539_v62  ;;  %v2981_v38 = vpop.permute.xlu2 %957  ;;  %v907_v14 = vsel %vm862_vm1, %v904_v56, %v906_v44 }
  0x93   : > { %2261 = vmatmul.msk.f32.vlgmr.msra.gmra.mxu0 %vm1316_vm5, %v1252_v43  ;;  %v572_v54 = vmul.f32 %v2511_v2, %v540_v9  ;;  %v1080_v48 = vrot.slane %v2973_v4, 2 }
  0x94   : > { %2294 = vmatmul.msk.f32.gmra.mxu1 %vm1316_vm5, %v1251_v40  ;;  %v713_v40 = vrot.slane %v633_v31, 7  ;;  %v1079_v5 = vsel %vm1039_vm2, %v1076_v55, %v1078_v57  ;;  %v603_v16 = vadd.f32 %v2534_v11, %v571_v47  ;;  %v1081_v57 = vrot.slane %v2960_v8, 2 }
  0x95   : > { %1168 = vrot.lane.b32.xlu0 %v1102_v7, %s2439_s16  ;;  %v903_v7 = vrot.slane %v2973_v4, 1  ;;  %v604_v10 = vadd.f32 %v2534_v11, %v572_v54 }
  0x96   : > { %1170 = vrot.lane.b32.xlu1 %v1104_v63, %s2439_s16  ;;  %v2988_v63 = vsel %vm685_vm0, %v713_v40, %v714_v61  ;;  %v2991_v31 = vsel %vm685_vm0, 0.0, %v713_v40  ;;  %v635_v55 = vmax.f32 %v603_v16, 0.0  ;;  %v1082_v54 = vsel %vm1039_vm2, %v1080_v48, %v1081_v57 }
  0x97   : > { %v1129_v41 = vpop.permute.xlu0 %1128  ;;  %v636_v42 = vmax.f32 %v604_v10, 0.0  ;;  %v1086_v44 = vrot.slane %v2988_v63, 2 }
  0x98   : > { %v2966_v15 = vsel %vm1249_vm4, %v1221_v45, %v1129_v41  ;;  %v1131_v59 = vpop.permute.xlu1 %1130  ;;  %v1085_v41 = vrot.slane %v2991_v31, 2  ;;  %v716_v62 = vrot.slane %v635_v55, 7  ;;  %v909_v55 = vrot.slane %v2988_v63, 1 }
  0x99   : > { %2325 = vmatmul.msk.f32.vlgmr.msra.gmra.mxu2 %vm1316_vm5, %v2966_v15  ;;  %v717_v9 = vrot.slane %v636_v42, 7 }
  0x9b   : > { %v3013_v16 = vsel %vm685_vm0, %v716_v62, %v717_v9 }
  0x9c   : > { %2295 = vmatmul.msk.f32.gmra.mxu1 %vm1316_vm5, %v1252_v43  ;;  %v905_v43 = vsel %vm862_vm1, %v903_v7, %v904_v56  ;;  %v1087_v7 = vsel %vm1039_vm2, %v1085_v41, %v1086_v44 }
  0x9d   : > { %1150 = vrot.lane.b32.xlu0 %v1079_v5, %s2439_s16  ;;  %975 = vrot.lane.b32.xlu2 %v905_v43, %s2438_s15  ;;  %v1083_v5 = vrot.slane %v820_v58, 2  ;;  %v1243_v58 = vsel %vm1216_vm3, %v2628_v35, %v2940_v28  ;;  %v908_v43 = vrot.slane %v2991_v31, 1  ;;  %v541_v28 = vld [vmem:[%s2529_s12 + $0xa0] sm:$0xff] }
  0x9e   : > { %977 = vrot.lane.b32.xlu1 %v907_v14, %s2438_s15  ;;  %v3010_v14 = vpop.permute.xlu2 %1174 }
  0x9f   : > { %v954_v45 = vpop.permute.xlu0 %953  ;;  %v1084_v10 = vsel %vm1039_vm2, %v1081_v57, %v1083_v5  ;;  %v910_v41 = vsel %vm862_vm1, %v908_v43, %v909_v55 }
  0xa0   : > { %v1222_v56 = vsel %vm1216_vm3, %v2575_v46, %v954_v45  ;;  %v956_v40 = vpop.permute.xlu1 %955  ;;  %v3016_v46 = vsel %vm685_vm0, 0.0, %v716_v62  ;;  %v542_v45 = vld [vmem:[%s2529_s12 + $0xa8] sm:$0xff]  ;;  %v821_v62 = vsel %vm685_vm0, %v714_v61, 0.0 }
  0xa1   : > { %v3004_v47 = vsel %vm1249_vm4, %v1222_v56, %v1131_v59  ;;  %v1220_v59 = vsel %vm1216_vm3, %v2586_v51, %v2910_v60  ;;  %v913_v48 = vrot.slane %v3016_v46, 1  ;;  %v914_v51 = vrot.slane %v3013_v16, 1 }
  0xa2   : > { %2326 = vmatmul.msk.f32.gmra.mxu2 %vm1316_vm5, %v3004_v47  ;;  %v573_v56 = vmul.f32 %v2511_v2, %v541_v28  ;;  %v574_v5 = vmul.f32 %v2511_v2, %v542_v45  ;;  %v1223_v61 = vsel %vm1216_vm3, %v2612_v22, %v956_v40  ;;  %v911_v40 = vrot.slane %v821_v62, 1 }
  0xa5   : > { %1152 = vrot.lane.b32.xlu0 %v1082_v54, %s2439_s16  ;;  %1154 = vrot.lane.b32.xlu2 %v1084_v10, %s2439_s16  ;;  %v915_v54 = vsel %vm862_vm1, %v913_v48, %v914_v51  ;;  %v605_v10 = vadd.f32 %v2534_v11, %v573_v56 }
  0xa6   : > { %1156 = vrot.lane.b32.xlu1 %v1087_v7, %s2439_s16  ;;  %v822_v7 = vsel %vm685_vm0, %v717_v9, 0.0  ;;  %v1137_v43 = vpop.permute.xlu2 %1136 }
  0xa7   : > { %v1127_v42 = vpop.permute.xlu0 %1126  ;;  %v916_v45 = vrot.slane %v822_v7, 1 }
  0xa8   : > { %v1253_v60 = vsel %vm1249_vm4, %v1220_v59, %v1127_v42  ;;  %v1173_v57 = vpop.permute.xlu1 %1172  ;;  %v606_v59 = vadd.f32 %v2534_v11, %v574_v5  ;;  %v1093_v42 = vrot.slane %v822_v7, 2  ;;  %v637_v11 = vmax.f32 %v605_v10, 0.0 }
  0xa9   : > { %2262 = vmatmul.msk.f32.gmra.mxu0 %vm1316_vm5, %v1253_v60  ;;  %2296 = vmatmul.msk.f32.gmra.mxu1 %vm1316_vm5, %v1253_v60  ;;  %v3036_v35 = vsel %vm1249_vm4, %v1243_v58, %v1173_v57  ;;  %v1088_v58 = vrot.slane %v821_v62, 2  ;;  %v912_v57 = vsel %vm862_vm1, %v909_v55, %v911_v40 }
  0xaa   : > { %2285 = vmatmul.msk.f32.vlgmr.msra.gmra.mxu3 %vm1316_vm5, %v3036_v35 }
  0xab   : > { %2370 = vmatpush.msra.mxu3 %v2843_v30  ;;  %v1091_v30 = vrot.slane %v3013_v16, 2  ;;  %v1089_v22 = vsel %vm1039_vm2, %v1086_v44, %v1088_v58 }
  0xad   : > { %979 = vrot.lane.b32.xlu0 %v910_v41, %s2438_s15  ;;  %2371 = vmatpush.msra.mxu3 %v2851_v39  ;;  %v638_v39 = vmax.f32 %v606_v59, 0.0  ;;  %v1094_v60 = vsel %vm1039_vm2, %v1091_v30, %v1093_v42 }
  0xae   : > { %983 = vrot.lane.b32.xlu1 %v915_v54, %s2438_s15  ;;  %981 = vrot.lane.b32.xlu2 %v912_v57, %s2438_s15  ;;  %v1002_v54 = vpop.permute.xlu2 %1001 }
  0xaf   : > { %v1133_v2 = vpop.permute.xlu0 %1132  ;;  %2372 = vmatpush.msra.mxu3 %v2865_v36  ;;  %v1224_v36 = vsel %vm1216_vm3, %v2609_v21, %v2981_v38  ;;  %v720_v28 = vrot.slane %v638_v39, 7 }
  0xb0   : > { %v1256_v9 = vsel %vm1249_vm4, %v1223_v61, %v1133_v2  ;;  %v1135_v48 = vpop.permute.xlu1 %1134 }
  0xb1   : > { %2263 = vmatmul.msk.f32.gmra.mxu0 %vm1316_vm5, %v2966_v15  ;;  %2297 = vmatmul.msk.f32.gmra.mxu1 %vm1316_vm5, %v2966_v15  ;;  %v719_v15 = vrot.slane %v637_v11, 7  ;;  %v1257_v44 = vsel %vm1249_vm4, %v1224_v36, %v1135_v48  ;;  %v823_v55 = vsel %vm685_vm0, %v720_v28, 0.0 }
  0xb2   : > { %2327 = vmatmul.msk.f32.gmra.mxu2 %vm1316_vm5, %v1256_v9  ;;  %v921_v7 = vrot.slane %v823_v55, 1 }
  0xb3   : > { %v3085_v38 = vsel %vm685_vm0, %v719_v15, %v720_v28 }
  0xb4   : > { %v919_v5 = vrot.slane %v3085_v38, 1  ;;  %v1096_v61 = vrot.slane %v3085_v38, 2 }
  0xb5   : > { %1158 = vrot.lane.b32.xlu0 %v1089_v22, %s2439_s16 }
  0xb6   : > { %1162 = vrot.lane.b32.xlu1 %v1094_v60, %s2439_s16  ;;  %v922_v10 = vsel %vm862_vm1, %v919_v5, %v921_v7 }
  0xb7   : > { %v998_v41 = vpop.permute.xlu0 %997 }
  0xb8   : > { %v1244_v56 = vsel %vm1216_vm3, %v2625_v34, %v998_v41  ;;  %v1000_v62 = vpop.permute.xlu1 %999  ;;  %v917_v34 = vsel %vm862_vm1, %v914_v51, %v916_v45 }
  0xb9   : > { %2264 = vmatmul.msk.f32.gmra.mxu0 %vm1316_vm5, %v3004_v47  ;;  %2298 = vmatmul.msk.f32.gmra.mxu1 %vm1316_vm5, %v3004_v47  ;;  %v3082_v21 = vsel %vm1249_vm4, %v1244_v56, %v3010_v14  ;;  %v3094_v47 = vsel %vm685_vm0, 0.0, %v719_v15  ;;  %v1090_v14 = vrot.slane %v3016_v46, 2 }
  0xba   : > { %2328 = vmatmul.msk.f32.gmra.mxu2 %vm1316_vm5, %v1257_v44  ;;  %2286 = vmatmul.msk.f32.gmra.mxu3 %vm1316_vm5, %v3082_v21  ;;  %v1095_v58 = vrot.slane %v3094_v47, 2 }
  0xbb   : > { %v1092_v59 = vsel %vm1039_vm2, %v1090_v14, %v1091_v30  ;;  %v964_v30 = vpop.permute.xlu2 %963 }
  0xbc   : > { %1160 = vrot.lane.b32.xlu2 %v1092_v59, %s2439_s16  ;;  %v1097_v11 = vsel %vm1039_vm2, %v1095_v58, %v1096_v61 }
  0xbd   : > { %985 = vrot.lane.b32.xlu0 %v917_v34, %s2438_s15 }
  0xbe   : > { %989 = vrot.lane.b32.xlu1 %v922_v10, %s2438_s15 }
  0xbf   : > { %v960_v51 = vpop.permute.xlu0 %959 }
  0xc0   : > { %v1225_v2 = vsel %vm1216_vm3, %v2676_v32, %v960_v51  ;;  %v962_v42 = vpop.permute.xlu1 %961  ;;  %v1245_v32 = vsel %vm1216_vm3, %v2664_v20, %v1000_v62 }
  0xc1   : > { %2265 = vmatmul.msk.f32.gmra.mxu0 %vm1316_vm5, %v1256_v9  ;;  %2299 = vmatmul.msk.f32.gmra.mxu1 %vm1316_vm5, %v1256_v9  ;;  %v1258_v48 = vsel %vm1249_vm4, %v1225_v2, %v1137_v43  ;;  %v918_v43 = vrot.slane %v3094_v47, 1  ;;  %v1226_v36 = vsel %vm1216_vm3, %v2680_v37, %v962_v42 }
  0xc2   : > { %2329 = vmatmul.msk.f32.gmra.mxu2 %vm1316_vm5, %v1258_v48 }
  0xc3   : > { %v1181_v40 = vpop.permute.xlu2 %1180  ;;  %v920_v20 = vsel %vm862_vm1, %v918_v43, %v919_v5 }
  0xc4   : > { %987 = vrot.lane.b32.xlu2 %v920_v20, %s2438_s15 }
  0xc5   : > { %1164 = vrot.lane.b32.xlu0 %v1097_v11, %s2439_s16 }
  0xc6   : > { %1663 = vrot.lane.b32.xlu1 %v2546_v17, %s2439_s16  ;;  %v1246_v17 = vsel %vm1216_vm3, %v2661_v19, %v1002_v54  ;;  %v1227_v19 = vsel %vm1216_vm3, %v2714_v23, %v964_v30 }
  0xc7   : > { %v1177_v39 = vpop.permute.xlu0 %1176 }
  0xc8   : > { %v3117_v22 = vsel %vm1249_vm4, %v1245_v32, %v1177_v39  ;;  %v1179_v9 = vpop.permute.xlu1 %1178 }
  0xc9   : > { %2266 = vmatmul.msk.f32.gmra.mxu0 %vm1316_vm5, %v1257_v44  ;;  %2287 = vmatmul.msk.f32.gmra.mxu3 %vm1316_vm5, %v3117_v22  ;;  %v3131_v60 = vsel %vm1249_vm4, %v1246_v17, %v1179_v9 }
  0xca   : > { %2300 = vmatmul.msk.f32.gmra.mxu1 %vm1316_vm5, %v1257_v44 }
  0xcb   : > { %v1143_v37 = vpop.permute.xlu2 %1142 }
  0xcd   : > { %1652 = vrot.lane.b32.xlu0 %v2537_v12, %s2438_s15  ;;  %v1098_v12 = vrot.slane %v823_v55, 2 }
  0xcf   : > { %v1139_v57 = vpop.permute.xlu0 %1138  ;;  %v1099_v45 = vsel %vm1039_vm2, %v1096_v61, %v1098_v12 }
  0xd0   : > { %v1259_v15 = vsel %vm1249_vm4, %v1226_v36, %v1139_v57  ;;  %v1141_v28 = vpop.permute.xlu1 %1140  ;;  %1166 = vrot.lane.b32.xlu2 %v1099_v45, %s2439_s16 }
  0xd1   : > { %2267 = vmatmul.msk.f32.gmra.mxu0 %vm1316_vm5, %v1258_v48  ;;  %2288 = vmatmul.msk.f32.gmra.mxu3 %vm1316_vm5, %v3131_v60  ;;  %v1260_v44 = vsel %vm1249_vm4, %v1227_v19, %v1141_v28 }
  0xd2   : > { %2301 = vmatmul.msk.f32.gmra.mxu1 %vm1316_vm5, %v1258_v48  ;;  %2330 = vmatmul.msk.f32.gmra.mxu2 %vm1316_vm5, %v1259_v15 }
  0xd3   : > { %v1293_v55 = vpop.permute.xlu2 %1292 }
  0xd4   : > { %v1309_v10 = vsel %vm1216_vm3, %v2800_v49, %v1293_v55 }
  0xd5   : > { %1665 = vrot.lane.b32.xlu0 %v2549_v18, %s2439_s16 }
  0xd7   : > { %v1004_v41 = vpop.permute.xlu0 %1003 }
  0xd8   : > { %v1247_v56 = vsel %vm1216_vm3, %v2738_v50, %v1004_v41  ;;  %v1006_v62 = vpop.permute.xlu1 %1005  ;;  %1654 = vrot.lane.b32.xlu2 %v2540_v13, %s2438_s15 }
  0xd9   : > { %2268 = vmatmul.msk.f32.gmra.mxu0 %vm1316_vm5, %v1259_v15  ;;  %v3152_v54 = vsel %vm1249_vm4, %v1247_v56, %v1181_v40  ;;  %v1248_v5 = vsel %vm1216_vm3, %v2742_v53, %v1006_v62 }
  0xda   : > { %2302 = vmatmul.msk.f32.gmra.mxu1 %vm1316_vm5, %v1259_v15  ;;  %2331 = vmatmul.msk.f32.gmra.mxu2 %vm1316_vm5, %v1260_v44 }
  0xdb   : > { %2289 = vmatmul.msk.f32.gmra.mxu3 %vm1316_vm5, %v3152_v54 }
  0xdf   : > { %v966_v18 = vpop.permute.xlu0 %965 }
  0xe0   : > { %v1228_v23 = vsel %vm1216_vm3, %v2718_v26, %v966_v18  ;;  %v968_v50 = vpop.permute.xlu1 %967  ;;  %v970_v26 = vpop.permute.xlu2 %969 }
  0xe1   : > { %2269 = vmatmul.msk.f32.gmra.mxu0 %vm1316_vm5, %v1260_v44  ;;  %v1261_v34 = vsel %vm1249_vm4, %v1228_v23, %v1143_v37  ;;  %v1229_v53 = vsel %vm1216_vm3, %v2775_v29, %v968_v50  ;;  %v1230_v49 = vsel %vm1216_vm3, %v2772_v27, %v970_v26 }
  0xe2   : > { %2303 = vmatmul.msk.f32.gmra.mxu1 %vm1316_vm5, %v1260_v44  ;;  %2332 = vmatmul.msk.f32.gmra.mxu2 %vm1316_vm5, %v1261_v34 }
  0xe7   : > { %v1183_v7 = vpop.permute.xlu0 %1182 }
  0xe8   : > { %v3169_v13 = vsel %vm1249_vm4, %v1248_v5, %v1183_v7  ;;  %v1304_v14 = vpop.permute.xlu1 %1303  ;;  %v1306_v2 = vpop.permute.xlu2 %1305 }
  0xe9   : > { %2270 = vmatmul.msk.f32.gmra.mxu0 %vm1316_vm5, %v1261_v34  ;;  %2290 = vmatmul.msk.f32.gmra.mxu3 %vm1316_vm5, %v3169_v13  ;;  %v3178_v59 = vsel %vm1249_vm4, %v1309_v10, %v1304_v14 }
  0xea   : > { %2304 = vmatmul.msk.f32.gmra.mxu1 %vm1316_vm5, %v1261_v34 }
  0xef   : > { %v1145_v58 = vpop.permute.xlu0 %1144 }
  0xf0   : > { %v1262_v61 = vsel %vm1249_vm4, %v1229_v53, %v1145_v58  ;;  %v1147_v51 = vpop.permute.xlu1 %1146  ;;  %v1149_v27 = vpop.permute.xlu2 %1148 }
  0xf1   : > { %2271 = vmatmul.msk.f32.gmra.mxu0 %vm1316_vm5, %v1262_v61  ;;  %2291 = vmatmul.msk.f32.gmra.mxu3 %vm1316_vm5, %v3178_v59  ;;  %v1263_v42 = vsel %vm1249_vm4, %v1230_v49, %v1147_v51 }
  0xf2   : > { %2305 = vmatmul.msk.f32.gmra.mxu1 %vm1316_vm5, %v1262_v61  ;;  %2333 = vmatmul.msk.f32.gmra.mxu2 %vm1316_vm5, %v1262_v61 }
  0xf7   : > { %v1295_v29 = vpop.permute.xlu0 %1294 }
  0xf8   : > { %v1310_v48 = vsel %vm1216_vm3, %v2805_v52, %v1295_v29  ;;  %v992_v30 = vpop.permute.xlu1 %991  ;;  %v994_v40 = vpop.permute.xlu2 %993 }
  0xf9   : > { %2272 = vmatmul.msk.f32.gmra.mxu0 %vm1316_vm5, %v1263_v42  ;;  %v3195_v11 = vsel %vm1249_vm4, %v1310_v48, %v1306_v2  ;;  %v1241_v43 = vsel %vm1216_vm3, %v2878_v6, %v992_v30 }
  0xfa   : > { %2306 = vmatmul.msk.f32.gmra.mxu1 %vm1316_vm5, %v1263_v42  ;;  %2334 = vmatmul.msk.f32.gmra.mxu2 %vm1316_vm5, %v1263_v42 }
  0xfb   : > { %2292 = vmatmul.msk.f32.gmra.mxu3 %vm1316_vm5, %v3195_v11 }
  0xff   : > { %v972_v32 = vpop.permute.xlu0 %971 }
 0x100   : > { %v1231_v39 = vsel %vm1216_vm3, %v2893_v25, %v972_v32  ;;  %v974_v9 = vpop.permute.xlu1 %973  ;;  %v1242_v25 = vsel %vm1216_vm3, %v2875_v33, %v994_v40  ;;  %v976_v19 = vpop.permute.xlu2 %975 }
 0x101   : > { %v1264_v52 = vsel %vm1249_vm4, %v1231_v39, %v1149_v27  ;;  %v1232_v15 = vsel %vm1216_vm3, %v2890_v24, %v974_v9  ;;  %v1233_v33 = vsel %vm1216_vm3, %v2973_v4, %v976_v19  ;;  %v3238_v4 = vld [vmem:[%s3644_s6] ss:$0 sm:$0xff] }
 0x102   : > { %2273 = vmatmul.msk.f32.gmra.mxu0 %vm1316_vm5, %v1264_v52  ;;  %2307 = vmatmul.msk.f32.gmra.mxu1 %vm1316_vm5, %v1264_v52 }
 0x103   : > { %2335 = vmatmul.msk.f32.gmra.mxu2 %vm1316_vm5, %v1264_v52 }
 0x107   : > { %v1169_v17 = vpop.permute.xlu0 %1168 }
 0x108   : > { %v3210_v20 = vsel %vm1249_vm4, %v1241_v43, %v1169_v17  ;;  %v1171_v36 = vpop.permute.xlu1 %1170  ;;  %v1155_v18 = vpop.permute.xlu2 %1154 }
 0x109   : > { %2317 = vmatmul.msk.f32.vlgmr.msrb.gmra.mxu3 %vm1316_vm5, %v3210_v20  ;;  %v1549_v57 = vpop.f32.mrf.mxu1  ;;  %v3219_v12 = vsel %vm1249_vm4, %v1242_v25, %v1171_v36 }
 0x10f   : > { %v1151_v28 = vpop.permute.xlu0 %1150 }
 0x110   : > { %v1265_v6 = vsel %vm1249_vm4, %v1232_v15, %v1151_v28  ;;  %v1430_v45 = vpop.f32.mrf.mxu0  ;;  %v978_v41 = vpop.permute.xlu1 %977 }
 0x111   : > { %2274 = vmatmul.msk.f32.gmra.mxu0 %vm1316_vm5, %v1265_v6  ;;  %2308 = vmatmul.msk.f32.gmra.mxu1 %vm1316_vm5, %v1265_v6  ;;  %v1552_v44 = vpop.f32.mrf.mxu1  ;;  %v1550_v56 = vadd.f32 %v1549_v57, %v1430_v45  ;;  %v1234_v62 = vsel %vm1216_vm3, %v2960_v8, %v978_v41  ;;  %v982_v61 = vpop.permute.xlu2 %981 }
 0x112   : > { %2318 = vmatmul.msk.f32.gmra.mxu3 %vm1316_vm5, %v3219_v12  ;;  %2336 = vmatmul.msk.f32.gmra.mxu2 %vm1316_vm5, %v1265_v6  ;;  %v1267_v55 = vsel %vm1249_vm4, %v1234_v62, %v1155_v18  ;;  %v1236_v42 = vsel %vm1216_vm3, %v2988_v63, %v982_v61 }
 0x117   : > { %v1153_v24 = vpop.permute.xlu0 %1152 }
 0x118   : > { %v1266_v37 = vsel %vm1249_vm4, %v1233_v33, %v1153_v24  ;;  %v1157_v14 = vpop.permute.xlu1 %1156 }
 0x119   : > { %2275 = vmatmul.msk.f32.gmra.mxu0 %vm1316_vm5, %v1266_v37  ;;  %2309 = vmatmul.msk.f32.gmra.mxu1 %vm1316_vm5, %v1266_v37  ;;  %v1555_v8 = vpop.f32.mrf.mxu1  ;;  %v1161_v25 = vpop.permute.xlu2 %1160 }
 0x11a   : > { %2319 = vmatmul.msk.f32.gmra.mxu3 %vm1316_vm5, %v3036_v35  ;;  %2337 = vmatmul.msk.f32.gmra.mxu2 %vm1316_vm5, %v1266_v37 }
 0x11c   : > { %v1699_v23 = vpop.f32.mrf.mxu2 }
 0x11d   : > { %v1795_v50 = vadd.f32 %v1699_v23, %v1550_v56 }
 0x11f   : > { %v1831_v34 = vadd.f32 %v3238_v4, %v1795_v50  ;;  %v980_v5 = vpop.permute.xlu0 %979 }
 0x120   : > { %v1235_v7 = vsel %vm1216_vm3, %v2991_v31, %v980_v5  ;;  %v984_v40 = vpop.permute.xlu1 %983 }
 0x121   : > { %1863 = vst.msk [vmem:[%s3247_s20] sm:$0xff] %vm1216_vm3, %v1831_v34  ;;  %2276 = vmatmul.msk.f32.gmra.mxu0 %vm1316_vm5, %v1267_v55  ;;  %2310 = vmatmul.msk.f32.gmra.mxu1 %vm1316_vm5, %v1267_v55  ;;  %v1268_v10 = vsel %vm1249_vm4, %v1235_v7, %v1157_v14  ;;  %v1975_v49 = vmul.f32 %v1831_v34, %v1831_v34  ;;  %v1902_v48 = vsel %vm1216_vm3, %v1831_v34, 0.0  ;;  %v988_v7 = vpop.permute.xlu2 %987 }
 0x122   : > { %2320 = vmatmul.msk.f32.gmra.mxu3 %vm1316_vm5, %v3082_v21  ;;  %2338 = vmatmul.msk.f32.gmra.mxu2 %vm1316_vm5, %v1267_v55  ;;  %v1237_v63 = vsel %vm1216_vm3, %v3016_v46, %v984_v40 }
 0x123   : > { %v2007_v9 = vsel %vm1216_vm3, %v1975_v49, 0.0  ;;  %v1270_v19 = vsel %vm1249_vm4, %v1237_v63, %v1161_v25 }
 0x125   : > { %v1702_v58 = vpop.f32.mrf.mxu2 }
 0x126   : > { %v1433_v26 = vpop.f32.mrf.mxu0  ;;  %v1558_v2 = vpop.f32.mrf.mxu1 }
 0x127   : > { %v1553_v53 = vadd.f32 %v1552_v44, %v1433_v26  ;;  %v1159_v29 = vpop.permute.xlu0 %1158 }
 0x128   : > { %v1269_v39 = vsel %vm1249_vm4, %v1236_v42, %v1159_v29  ;;  %v1163_v44 = vpop.permute.xlu1 %1162 }
 0x129   : > { %v1796_v51 = vadd.f32 %v1702_v58, %v1553_v53  ;;  %2277 = vmatmul.msk.f32.gmra.mxu0 %vm1316_vm5, %v1268_v10  ;;  %2311 = vmatmul.msk.f32.gmra.mxu1 %vm1316_vm5, %v1268_v10  ;;  %v1239_v53 = vsel %vm1216_vm3, %v3094_v47, %v988_v7 }
 0x12a   : > { %2321 = vmatmul.msk.f32.gmra.mxu3 %vm1316_vm5, %v3117_v22  ;;  %2339 = vmatmul.msk.f32.gmra.mxu2 %vm1316_vm5, %v1268_v10 }
 0x12b   : > { %v1832_v31 = vadd.f32 %v3238_v4, %v1796_v51 }
 0x12d   : > { %1864 = vst.msk [vmem:[%s3247_s20 + $0x8] sm:$0xff] %vm1216_vm3, %v1832_v31  ;;  %v1903_v30 = vsel %vm1216_vm3, %v1832_v31, 0.0  ;;  %v1976_v27 = vmul.f32 %v1832_v31, %v1832_v31  ;;  %v3300_v14 = vpop.f32.mrf.mxu3 }
 0x12e   : > { %v1436_v32 = vpop.f32.mrf.mxu0  ;;  %v1904_v52 = vadd.f32 %v1903_v30, %v1902_v48  ;;  %v1561_v57 = vpop.f32.mrf.mxu1 }
 0x12f   : > { %v2008_v43 = vsel %vm1216_vm3, %v1976_v27, 0.0  ;;  %v1556_v36 = vadd.f32 %v1555_v8, %v1436_v32  ;;  %v986_v24 = vpop.permute.xlu0 %985 }
 0x130   : > { %v2009_v17 = vadd.f32 %v2008_v43, %v2007_v9  ;;  %v1238_v41 = vsel %vm1216_vm3, %v3013_v16, %v986_v24  ;;  %v990_v30 = vpop.permute.xlu1 %989  ;;  %v1167_v9 = vpop.permute.xlu2 %1166 }
 0x131   : > { %2278 = vmatmul.msk.f32.gmra.mxu0 %vm1316_vm5, %v1269_v39  ;;  %2312 = vmatmul.msk.f32.gmra.mxu1 %vm1316_vm5, %v1269_v39  ;;  %v1271_v34 = vsel %vm1249_vm4, %v1238_v41, %v1163_v44 }
 0x132   : > { %2322 = vmatmul.msk.f32.gmra.mxu3 %vm1316_vm5, %v3131_v60  ;;  %2340 = vmatmul.msk.f32.gmra.mxu2 %vm1316_vm5, %v1269_v39 }
 0x135   : > { %v1705_v15 = vpop.f32.mrf.mxu2 }
 0x136   : > { %v1797_v28 = vadd.f32 %v1705_v15, %v1556_v36  ;;  %v1439_v6 = vpop.f32.mrf.mxu0  ;;  %v1564_v5 = vpop.f32.mrf.mxu1 }
 0x137   : > { %v1559_v62 = vadd.f32 %v1558_v2, %v1439_v6  ;;  %v1165_v58 = vpop.permute.xlu0 %1164 }
 0x138   : > { %v1833_v33 = vadd.f32 %v3238_v4, %v1797_v28  ;;  %v1272_v29 = vsel %vm1249_vm4, %v1239_v53, %v1165_v58 }
 0x139   : > { %2279 = vmatmul.msk.f32.gmra.mxu0 %vm1316_vm5, %v1270_v19  ;;  %2313 = vmatmul.msk.f32.gmra.mxu1 %vm1316_vm5, %v1270_v19 }
 0x13a   : > { %1865 = vst.msk [vmem:[%s3247_s20 + $0x10] sm:$0xff] %vm1216_vm3, %v1833_v33  ;;  %v1905_v45 = vsel %vm1216_vm3, %v1833_v33, 0.0  ;;  %v1977_v46 = vmul.f32 %v1833_v33, %v1833_v33  ;;  %2323 = vmatmul.msk.f32.gmra.mxu3 %vm1316_vm5, %v3152_v54  ;;  %2341 = vmatmul.msk.f32.gmra.mxu2 %vm1316_vm5, %v1270_v19 }
 0x13b   : > { %v1906_v37 = vadd.f32 %v1905_v45, %v1904_v52  ;;  %v1240_v52 = vsel %vm1216_vm3, %v3085_v38, %v990_v30 }
 0x13c   : > { %v2010_v56 = vsel %vm1216_vm3, %v1977_v46, 0.0  ;;  %v1273_v25 = vsel %vm1249_vm4, %v1240_v52, %v1167_v9 }
 0x13d   : > { %v2011_v18 = vadd.f32 %v2010_v56, %v2009_v17  ;;  %v1708_v23 = vpop.f32.mrf.mxu2  ;;  %v3323_v43 = vpop.f32.mrf.mxu3 }
 0x13e   : > { %v1798_v50 = vadd.f32 %v1708_v23, %v1559_v62  ;;  %v1442_v55 = vpop.f32.mrf.mxu0  ;;  %v1567_v27 = vpop.f32.mrf.mxu1 }
 0x13f   : > { %v1562_v51 = vadd.f32 %v1561_v57, %v1442_v55 }
 0x140   : > { %v1834_v8 = vadd.f32 %v3238_v4, %v1798_v50 }
 0x141   : > { %2280 = vmatmul.msk.f32.gmra.mxu0 %vm1316_vm5, %v1271_v34  ;;  %2314 = vmatmul.msk.f32.gmra.mxu1 %vm1316_vm5, %v1271_v34 }
 0x142   : > { %1866 = vst.msk [vmem:[%s3247_s20 + $0x18] sm:$0xff] %vm1216_vm3, %v1834_v8  ;;  %v1907_v16 = vsel %vm1216_vm3, %v1834_v8, 0.0  ;;  %v1978_v26 = vmul.f32 %v1834_v8, %v1834_v8  ;;  %2324 = vmatmul.msk.f32.gmra.mxu3 %vm1316_vm5, %v3169_v13  ;;  %2342 = vmatmul.msk.f32.gmra.mxu2 %vm1316_vm5, %v1271_v34 }
 0x143   : > { %v1908_v10 = vadd.f32 %v1907_v16, %v1906_v37 }
 0x144   : > { %v2012_v61 = vsel %vm1216_vm3, %v1978_v26, 0.0 }
 0x145   : > { %v2013_v49 = vadd.f32 %v2012_v61, %v2011_v18  ;;  %v1711_v31 = vpop.f32.mrf.mxu2 }
 0x146   : > { %v1799_v2 = vadd.f32 %v1711_v31, %v1562_v51  ;;  %v1445_v42 = vpop.f32.mrf.mxu0  ;;  %v1653_v31 = vpop.permute.xlu0 %1652 }
 0x147   : > { %v1570_v38 = vpop.f32.mrf.mxu1 }
 0x148   : > { %v1835_v48 = vadd.f32 %v3238_v4, %v1799_v2 }
 0x149   : > { %2281 = vmatmul.msk.f32.gmra.mxu0 %vm1316_vm5, %v1272_v29  ;;  %2315 = vmatmul.msk.f32.gmra.mxu1 %vm1316_vm5, %v1272_v29 }
 0x14a   : > { %1867 = vst.msk [vmem:[%s3247_s20 + $0x20] sm:$0xff] %vm1216_vm3, %v1835_v48  ;;  %v1909_v47 = vsel %vm1216_vm3, %v1835_v48, 0.0  ;;  %v1979_v32 = vmul.f32 %v1835_v48, %v1835_v48  ;;  %2343 = vmatmul.msk.f32.gmra.mxu2 %vm1316_vm5, %v1272_v29  ;;  %2349 = vmatmul.msk.f32.vlgmr.msra.gmra.mxu3 %vm1316_vm5, %v3117_v22  ;;  %v1565_v22 = vadd.f32 %v1564_v5, %v1445_v42  ;;  %v1664_v42 = vpop.permute.xlu1 %1663 }
 0x14b   : > { %v1910_v39 = vadd.f32 %v1909_v47, %v1908_v10  ;;  %v1655_v47 = vpop.permute.xlu2 %1654 }
 0x14c   : > { %v2014_v17 = vsel %vm1216_vm3, %v1979_v32, 0.0  ;;  %v3332_v36 = vpop.f32.mrf.mxu3 }
 0x14d   : > { %v2015_v40 = vadd.f32 %v2014_v17, %v2013_v49 }
 0x14e   : > { %v1448_v63 = vpop.f32.mrf.mxu0 }
 0x14f   : > { %v1568_v24 = vadd.f32 %v1567_v27, %v1448_v63  ;;  %v1573_v46 = vpop.f32.mrf.mxu1  ;;  %v1666_v63 = vpop.permute.xlu0 %1665 }
 0x151   : > { %2282 = vmatmul.msk.f32.gmra.mxu0 %vm1316_vm5, %v1273_v25  ;;  %2316 = vmatmul.msk.f32.gmra.mxu1 %vm1316_vm5, %v1273_v25 }
 0x152   : > { %2344 = vmatmul.msk.f32.gmra.mxu2 %vm1316_vm5, %v1273_v25  ;;  %2350 = vmatmul.msk.f32.gmra.mxu3 %vm1316_vm5, %v3131_v60 }
 0x154   : > { %v3345_v44 = vpop.f32.mrf.mxu3 }
 0x155   : > { %v1714_v57 = vpop.f32.mrf.mxu2 }
 0x156   : > { %v1800_v15 = vadd.f32 %v1714_v57, %v1565_v22  ;;  %v1451_v28 = vpop.f32.mrf.mxu0 }
 0x157   : > { %v1571_v50 = vadd.f32 %v1570_v38, %v1451_v28  ;;  %v1576_v7 = vpop.f32.mrf.mxu1 }
 0x158   : > { %v1836_v6 = vadd.f32 %v3238_v4, %v1800_v15 }
 0x159   : > { %2283 = vmatmul.msk.f32.gmra.mxu0 %vm1316_vm5, %v3210_v20 }
 0x15a   : > { %1868 = vst.msk [vmem:[%s3247_s20 + $0x28] sm:$0xff] %vm1216_vm3, %v1836_v6  ;;  %v1911_v19 = vsel %vm1216_vm3, %v1836_v6, 0.0  ;;  %v1980_v33 = vmul.f32 %v1836_v6, %v1836_v6  ;;  %2345 = vmatmul.msk.f32.gmra.mxu2 %vm1316_vm5, %v3210_v20  ;;  %2351 = vmatmul.msk.f32.gmra.mxu3 %vm1316_vm5, %v3152_v54 }
 0x15b   : > { %v1912_v60 = vadd.f32 %v1911_v19, %v1910_v39 }
 0x15c   : > { %v2016_v45 = vsel %vm1216_vm3, %v1980_v33, 0.0 }
 0x15d   : > { %v2017_v37 = vadd.f32 %v2016_v45, %v2015_v40  ;;  %v1717_v41 = vpop.f32.mrf.mxu2  ;;  %v1670_v40 = vsel %vm1216_vm3, %v2504_v1, %v1655_v47 }
 0x15e   : > { %v1801_v56 = vadd.f32 %v1717_v41, %v1568_v24  ;;  %v1454_v62 = vpop.f32.mrf.mxu0  ;;  %v3358_v16 = vpop.f32.mrf.mxu3  ;;  %v1672_v57 = vsel %vm1249_vm4, %v1670_v40, %v1666_v63 }
 0x15f   : > { %v1579_v49 = vpop.f32.mrf.mxu1 }
 0x160   : > { %v1837_v18 = vadd.f32 %v3238_v4, %v1801_v56 }
 0x161   : > { %2284 = vmatmul.msk.f32.gmra.mxu0 %vm1316_vm5, %v3219_v12 }
 0x162   : > { %1869 = vst.msk [vmem:[%s3247_s20 + $0x30] sm:$0xff] %vm1216_vm3, %v1837_v18  ;;  %v1913_v54 = vsel %vm1216_vm3, %v1837_v18, 0.0  ;;  %v1981_v20 = vmul.f32 %v1837_v18, %v1837_v18  ;;  %2346 = vmatmul.msk.f32.gmra.mxu2 %vm1316_vm5, %v3219_v12  ;;  %2352 = vmatmul.msk.f32.gmra.mxu3 %vm1316_vm5, %v3169_v13 }
 0x163   : > { %v1914_v23 = vadd.f32 %v1913_v54, %v1912_v60 }
 0x164   : > { %v2018_v55 = vsel %vm1216_vm3, %v1981_v20, 0.0 }
 0x165   : > { %v2019_v34 = vadd.f32 %v2018_v55, %v2017_v37  ;;  %v1720_v5 = vpop.f32.mrf.mxu2 }
 0x166   : > { %v1802_v8 = vadd.f32 %v1720_v5, %v1571_v50  ;;  %v1457_v10 = vpop.f32.mrf.mxu0 }
 0x167   : > { %v1582_v39 = vpop.f32.mrf.mxu1  ;;  %v1577_v52 = vadd.f32 %v1576_v7, %v1457_v10 }
 0x168   : > { %v1838_v26 = vadd.f32 %v3238_v4, %v1802_v8 }
 0x16a   : > { %1870 = vst.msk [vmem:[%s3247_s20 + $0x38] sm:$0xff] %vm1216_vm3, %v1838_v26  ;;  %v1915_v12 = vsel %vm1216_vm3, %v1838_v26, 0.0  ;;  %v1982_v53 = vmul.f32 %v1838_v26, %v1838_v26  ;;  %2347 = vmatmul.msk.f32.gmra.mxu2 %vm1316_vm5, %v3036_v35  ;;  %2353 = vmatmul.msk.f32.gmra.mxu3 %vm1316_vm5, %v3178_v59  ;;  %v1574_v35 = vadd.f32 %v1573_v46, %v1454_v62 }
 0x16b   : > { %v1916_v13 = vadd.f32 %v1915_v12, %v1914_v23  ;;  %v1669_v59 = vsel %vm1216_vm3, %v2515_v3, %v1653_v31 }
 0x16c   : > { %v2020_v58 = vsel %vm1216_vm3, %v1982_v53, 0.0  ;;  %v3369_v51 = vpop.f32.mrf.mxu3  ;;  %v1671_v30 = vsel %vm1249_vm4, %v1669_v59, %v1664_v42 }
 0x16d   : > { %v2021_v61 = vadd.f32 %v2020_v58, %v2019_v34 }
 0x16e   : > { %v1460_v2 = vpop.f32.mrf.mxu0 }
 0x16f   : > { %v1580_v60 = vadd.f32 %v1579_v49, %v1460_v2  ;;  %v1585_v24 = vpop.f32.mrf.mxu1 }
 0x172   : > { %2348 = vmatmul.msk.f32.gmra.mxu2 %vm1316_vm5, %v3082_v21  ;;  %2354 = vmatmul.msk.f32.gmra.mxu3 %vm1316_vm5, %v3195_v11 }
 0x174   : > { %v3379_v32 = vpop.f32.mrf.mxu3 }
 0x175   : > { %v1723_v29 = vpop.f32.mrf.mxu2 }
 0x176   : > { %v1803_v48 = vadd.f32 %v1723_v29, %v1574_v35  ;;  %v1463_v17 = vpop.f32.mrf.mxu0 }
 0x177   : > { %v1588_v34 = vpop.f32.mrf.mxu1  ;;  %v1583_v5 = vadd.f32 %v1582_v39, %v1463_v17 }
 0x178   : > { %v1839_v27 = vadd.f32 %v3238_v4, %v1803_v48 }
 0x17a   : > { %1871 = vst.msk [vmem:[%s3247_s20 + $0x40] sm:$0xff] %vm1216_vm3, %v1839_v27  ;;  %v1917_v21 = vsel %vm1216_vm3, %v1839_v27, 0.0  ;;  %v1983_v11 = vmul.f32 %v1839_v27, %v1839_v27  ;;  %2355 = vmatmul.msk.f32.gmra.mxu3 %vm1316_vm5, %v1671_v30 }
 0x17b   : > { %v1918_v3 = vadd.f32 %v1917_v21, %v1916_v13 }
 0x17c   : > { %v2022_v9 = vsel %vm1216_vm3, %v1983_v11, 0.0 }
 0x17d   : > { %v2023_v25 = vadd.f32 %v2022_v9, %v2021_v61  ;;  %v1726_v38 = vpop.f32.mrf.mxu2 }
 0x17e   : > { %v1804_v22 = vadd.f32 %v1726_v38, %v1577_v52  ;;  %v3395_v1 = vpop.f32.mrf.mxu3 }
 0x17f   : > { %v1466_v46 = vpop.f32.mrf.mxu0  ;;  %v1591_v53 = vpop.f32.mrf.mxu1 }
 0x180   : > { %v1840_v15 = vadd.f32 %v3238_v4, %v1804_v22  ;;  %v1586_v49 = vadd.f32 %v1585_v24, %v1466_v46 }
 0x182   : > { %1872 = vst.msk [vmem:[%s3247_s20 + $0x48] sm:$0xff] %vm1216_vm3, %v1840_v15  ;;  %v1919_v28 = vsel %vm1216_vm3, %v1840_v15, 0.0  ;;  %v1984_v6 = vmul.f32 %v1840_v15, %v1840_v15  ;;  %2356 = vmatmul.msk.f32.gmra.mxu3 %vm1316_vm5, %v1672_v57 }
 0x183   : > { %v1920_v19 = vadd.f32 %v1919_v28, %v1918_v3 }
 0x184   : > { %v2024_v33 = vsel %vm1216_vm3, %v1984_v6, 0.0 }
 0x185   : > { %v2025_v45 = vadd.f32 %v2024_v33, %v2023_v25 }
 0x186   : > { %v1729_v37 = vpop.f32.mrf.mxu2 }
 0x187   : > { %v1805_v41 = vadd.f32 %v1729_v37, %v1580_v60 }
 0x189   : > { %v1841_v56 = vadd.f32 %v3238_v4, %v1805_v41 }
 0x18b   : > { %1873 = vst.msk [vmem:[%s3247_s20 + $0x50] sm:$0xff] %vm1216_vm3, %v1841_v56  ;;  %v1921_v62 = vsel %vm1216_vm3, %v1841_v56, 0.0  ;;  %v1985_v18 = vmul.f32 %v1841_v56, %v1841_v56 }
 0x18c   : > { %v1922_v54 = vadd.f32 %v1921_v62, %v1920_v19  ;;  %v3401_v20 = vpop.f32.mrf.mxu3 }
 0x18d   : > { %v2026_v23 = vsel %vm1216_vm3, %v1985_v18, 0.0 }
 0x18e   : > { %v2027_v50 = vadd.f32 %v2026_v23, %v2025_v45  ;;  %v1469_v55 = vpop.f32.mrf.mxu0  ;;  %v1594_v30 = vpop.f32.mrf.mxu1 }
 0x18f   : > { %v1589_v11 = vadd.f32 %v1588_v34, %v1469_v55 }
 0x195   : > { %v3404_v8 = vpop.f32.mrf.mxu3  ;;  %v1732_v7 = vpop.f32.mrf.mxu2 }
 0x196   : > { %v1806_v26 = vadd.f32 %v1732_v7, %v1583_v5  ;;  %v1472_v10 = vpop.f32.mrf.mxu0  ;;  %v1597_v38 = vpop.f32.mrf.mxu1 }
 0x197   : > { %v1592_v25 = vadd.f32 %v1591_v53, %v1472_v10 }
 0x198   : > { %v1842_v12 = vadd.f32 %v3238_v4, %v1806_v26 }
 0x19a   : > { %1874 = vst.msk [vmem:[%s3247_s20 + $0x58] sm:$0xff] %vm1216_vm3, %v1842_v12  ;;  %v1923_v13 = vsel %vm1216_vm3, %v1842_v12, 0.0  ;;  %v1986_v58 = vmul.f32 %v1842_v12, %v1842_v12  ;;  %v1622_v12 = vadd.f32 %v3401_v20, %v3300_v14  ;;  %v1625_v14 = vadd.f32 %v3404_v8, %v3323_v43 }
 0x19b   : > { %v1924_v61 = vadd.f32 %v1923_v13, %v1922_v54 }
 0x19c   : > { %v2028_v31 = vsel %vm1216_vm3, %v1986_v58, 0.0 }
 0x19d   : > { %v2029_v2 = vadd.f32 %v2028_v31, %v2027_v50  ;;  %v3411_v35 = vpop.f32.mrf.mxu3  ;;  %v1735_v59 = vpop.f32.mrf.mxu2 }
 0x19e   : > { %v1807_v42 = vadd.f32 %v1735_v59, %v1586_v49  ;;  %v1475_v48 = vpop.f32.mrf.mxu0  ;;  %v1600_v24 = vpop.f32.mrf.mxu1  ;;  %v1628_v43 = vadd.f32 %v3411_v35, %v3332_v36 }
 0x19f   : > { %v1595_v6 = vadd.f32 %v1594_v30, %v1475_v48 }
 0x1a0   : > { %v1843_v29 = vadd.f32 %v3238_v4, %v1807_v42 }
 0x1a2   : > { %1875 = vst.msk [vmem:[%s3247_s20 + $0x60] sm:$0xff] %vm1216_vm3, %v1843_v29  ;;  %v1925_v27 = vsel %vm1216_vm3, %v1843_v29, 0.0  ;;  %v1987_v47 = vmul.f32 %v1843_v29, %v1843_v29 }
 0x1a3   : > { %v3417_v21 = vadd.f32 %v1925_v27, %v1924_v61 }
 0x1a4   : > { %v2030_v39 = vsel %vm1216_vm3, %v1987_v47, 0.0 }
 0x1a5   : > { %v3420_v3 = vadd.f32 %v2030_v39, %v2029_v2  ;;  %v3422_v52 = vpop.f32.mrf.mxu3  ;;  %v1738_v9 = vpop.f32.mrf.mxu2 }
 0x1a6   : > { %v1808_v17 = vadd.f32 %v1738_v9, %v1589_v11  ;;  %v1478_v63 = vpop.f32.mrf.mxu0  ;;  %v1603_v54 = vpop.f32.mrf.mxu1  ;;  %v1631_v35 = vadd.f32 %v3422_v52, %v3345_v44 }
 0x1a7   : > { %v1598_v37 = vadd.f32 %v1597_v38, %v1478_v63 }
 0x1a8   : > { %v3425_v40 = vadd.f32 %v3238_v4, %v1808_v17 }
 0x1aa   : > { %1876 = vst.msk [vmem:[%s3247_s20 + $0x68] sm:$0xff] %vm1216_vm3, %v3425_v40 }
 0x1ad   : > { %v3430_v22 = vpop.f32.mrf.mxu3  ;;  %v1741_v57 = vpop.f32.mrf.mxu2 }
 0x1ae   : > { %v1809_v15 = vadd.f32 %v1741_v57, %v1592_v25  ;;  %v1481_v19 = vpop.f32.mrf.mxu0  ;;  %v1606_v10 = vpop.f32.mrf.mxu1 }
 0x1af   : > { %v1601_v50 = vadd.f32 %v1600_v24, %v1481_v19  ;;  %v1927_v19 = vsel %vm1216_vm3, %v3425_v40, 0.0 }
 0x1b0   : > { %v3433_v28 = vadd.f32 %v3238_v4, %v1809_v15  ;;  %v1928_v44 = vadd.f32 %v1927_v19, %v3417_v21 }
 0x1b2   : > { %1877 = vst.msk [vmem:[%s3247_s20 + $0x70] sm:$0xff] %vm1216_vm3, %v3433_v28  ;;  %v1989_v36 = vmul.f32 %v3433_v28, %v3433_v28 }
 0x1b4   : > { %v2034_v52 = vsel %vm1216_vm3, %v1989_v36, 0.0 }
 0x1b5   : > { %v3438_v33 = vpop.f32.mrf.mxu3  ;;  %v1744_v60 = vpop.f32.mrf.mxu2 }
 0x1b6   : > { %v1810_v45 = vadd.f32 %v1744_v60, %v1595_v6  ;;  %v1484_v62 = vpop.f32.mrf.mxu0  ;;  %v1609_v20 = vpop.f32.mrf.mxu1  ;;  %v1988_v6 = vmul.f32 %v3425_v40, %v3425_v40 }
 0x1b7   : > { %v1604_v53 = vadd.f32 %v1603_v54, %v1484_v62 }
 0x1b8   : > { %v3441_v46 = vadd.f32 %v3238_v4, %v1810_v45  ;;  %v2032_v24 = vsel %vm1216_vm3, %v1988_v6, 0.0 }
 0x1ba   : > { %1878 = vst.msk [vmem:[%s3247_s20 + $0x78] sm:$0xff] %vm1216_vm3, %v3441_v46  ;;  %v1990_v62 = vmul.f32 %v3441_v46, %v3441_v46 }
 0x1bd   : > { %v3446_v41 = vpop.f32.mrf.mxu3  ;;  %v1747_v56 = vpop.f32.mrf.mxu2 }
 0x1be   : > { %v1811_v18 = vadd.f32 %v1747_v56, %v1598_v37  ;;  %v1487_v7 = vpop.f32.mrf.mxu0  ;;  %v1612_v38 = vpop.f32.mrf.mxu1  ;;  %v1929_v56 = vsel %vm1216_vm3, %v3433_v28, 0.0 }
 0x1bf   : > { %v1607_v42 = vadd.f32 %v1606_v10, %v1487_v7  ;;  %v2033_v7 = vadd.f32 %v2032_v24, %v3420_v3  ;;  %v1930_v10 = vadd.f32 %v1929_v56, %v1928_v44 }
 0x1c0   : > { %v3449_v23 = vadd.f32 %v3238_v4, %v1811_v18 }
 0x1c2   : > { %1879 = vst.msk [vmem:[%s3247_s20 + $0x80] sm:$0xff] %vm1216_vm3, %v3449_v23 }
 0x1c5   : > { %v3454_v55 = vpop.f32.mrf.mxu3  ;;  %v1750_v34 = vpop.f32.mrf.mxu2 }
 0x1c6   : > { %v1812_v5 = vadd.f32 %v1750_v34, %v1601_v50  ;;  %v1490_v59 = vpop.f32.mrf.mxu0  ;;  %v1931_v50 = vsel %vm1216_vm3, %v3441_v46, 0.0  ;;  %v1991_v34 = vmul.f32 %v3449_v23, %v3449_v23  ;;  %v2036_v46 = vsel %vm1216_vm3, %v1990_v62, 0.0 }
 0x1c7   : > { %v1610_v8 = vadd.f32 %v1609_v20, %v1490_v59  ;;  %v1932_v3 = vadd.f32 %v1931_v50, %v1930_v10 }
 0x1c8   : > { %v3457_v26 = vadd.f32 %v3238_v4, %v1812_v5 }
 0x1ca   : > { %1880 = vst.msk [vmem:[%s3247_s20 + $0x88] sm:$0xff] %vm1216_vm3, %v3457_v26  ;;  %v1992_v21 = vmul.f32 %v3457_v26, %v3457_v26  ;;  %v1935_v59 = vsel %vm1216_vm3, %v3457_v26, 0.0 }
 0x1cd   : > { %v1753_v13 = vpop.f32.mrf.mxu2  ;;  %v1771_v58 = vpop.f32.mrf.mxu3 }
 0x1ce   : > { %v1813_v61 = vadd.f32 %v1753_v13, %v1604_v53  ;;  %v1819_v49 = vadd.f32 %v1771_v58, %v1622_v12  ;;  %v1493_v39 = vpop.f32.mrf.mxu0  ;;  %v1615_v12 = vpop.f32.mrf.mxu1  ;;  %v1933_v53 = vsel %vm1216_vm3, %v3449_v23, 0.0  ;;  %v2035_v13 = vadd.f32 %v2034_v52, %v2033_v7 }
 0x1cf   : > { %v1613_v60 = vadd.f32 %v1612_v38, %v1493_v39  ;;  %v1934_v20 = vadd.f32 %v1933_v53, %v1932_v3 }
 0x1d0   : > { %v3465_v31 = vadd.f32 %v3238_v4, %v1813_v61  ;;  %v3468_v2 = vadd.f32 %v3238_v4, %v1819_v49  ;;  %v1634_v61 = vadd.f32 %v3430_v22, %v3358_v16  ;;  %v2038_v49 = vsel %vm1216_vm3, %v1991_v34, 0.0 }
 0x1d1   : > { %v1936_v26 = vadd.f32 %v1935_v59, %v1934_v20 }
 0x1d2   : > { %1881 = vst.msk [vmem:[%s3247_s20 + $0x90] sm:$0xff] %vm1216_vm3, %v3465_v31  ;;  %v1993_v58 = vmul.f32 %v3465_v31, %v3465_v31 }
 0x1d3   : > { %1887 = vst.msk [vmem:[%s3247_s20 + $0xc0] sm:$0xff] %vm1216_vm3, %v3468_v2 }
 0x1d5   : > { %v1756_v29 = vpop.f32.mrf.mxu2  ;;  %v1774_v48 = vpop.f32.mrf.mxu3 }
 0x1d6   : > { %v1814_v30 = vadd.f32 %v1756_v29, %v1607_v42  ;;  %v1820_v27 = vadd.f32 %v1774_v48, %v1625_v14  ;;  %v1496_v40 = vpop.f32.mrf.mxu0  ;;  %v2037_v14 = vadd.f32 %v2036_v46, %v2035_v13  ;;  %v2040_v42 = vsel %vm1216_vm3, %v1992_v21, 0.0  ;;  %v1618_v19 = vpop.f32.mrf.mxu1 }
 0x1d7   : > { %v1616_v23 = vadd.f32 %v1615_v12, %v1496_v40  ;;  %v1999_v12 = vmul.f32 %v3468_v2, %v3468_v2 }
 0x1d8   : > { %v3479_v47 = vadd.f32 %v3238_v4, %v1814_v30  ;;  %v3482_v11 = vadd.f32 %v3238_v4, %v1820_v27  ;;  %v1937_v30 = vsel %vm1216_vm3, %v3465_v31, 0.0 }
 0x1da   : > { %1882 = vst.msk [vmem:[%s3247_s20 + $0x98] sm:$0xff] %vm1216_vm3, %v3479_v47  ;;  %v1994_v16 = vmul.f32 %v3479_v47, %v3479_v47  ;;  %v1939_v0 = vsel %vm1216_vm3, %v3479_v47, 0.0 }
 0x1db   : > { %1888 = vst.msk [vmem:[%s3247_s20 + $0xc8] sm:$0xff] %vm1216_vm3, %v3482_v11 }
 0x1dc   : > { %v2044_v38 = vsel %vm1216_vm3, %v1994_v16, 0.0 }
 0x1dd   : > { %v1759_v9 = vpop.f32.mrf.mxu2  ;;  %v1777_v17 = vpop.f32.mrf.mxu3 }
 0x1de   : > { %v1815_v63 = vadd.f32 %v1759_v9, %v1610_v8  ;;  %v1821_v25 = vadd.f32 %v1777_v17, %v1628_v43  ;;  %v2039_v43 = vadd.f32 %v2038_v49, %v2037_v14  ;;  %v2042_v8 = vsel %vm1216_vm3, %v1993_v58, 0.0 }
 0x1df   : > { %v1640_v58 = vadd.f32 %v3446_v41, %v3379_v32  ;;  %v2000_v49 = vmul.f32 %v3482_v11, %v3482_v11 }
 0x1e0   : > { %v1851_v57 = vadd.f32 %v3238_v4, %v1815_v63  ;;  %v3494_v15 = vadd.f32 %v3238_v4, %v1821_v25  ;;  %v2041_v31 = vadd.f32 %v2040_v42, %v2039_v43  ;;  %v1938_v63 = vadd.f32 %v1937_v30, %v1936_v26  ;;  %v1499_v25 = vpop.f32.mrf.mxu0 }
 0x1e1   : > { %v2054_v42 = vsel %vm1216_vm3, %v1999_v12, 0.0  ;;  %v2056_v30 = vsel %vm1216_vm3, %v2000_v49, 0.0 }
 0x1e2   : > { %1883 = vst.msk [vmem:[%s3247_s20 + $0xa0] sm:$0xff] %vm1216_vm3, %v1851_v57  ;;  %v1995_v39 = vmul.f32 %v1851_v57, %v1851_v57  ;;  %v1941_v6 = vsel %vm1216_vm3, %v1851_v57, 0.0  ;;  %v2043_v47 = vadd.f32 %v2042_v8, %v2041_v31  ;;  %v2001_v32 = vmul.f32 %v3494_v15, %v3494_v15 }
 0x1e3   : > { %1889 = vst.msk [vmem:[%s3247_s20 + $0xd0] sm:$0xff] %vm1216_vm3, %v3494_v15  ;;  %v1953_v16 = vsel %vm1216_vm3, %v3494_v15, 0.0  ;;  %v1643_v15 = vadd.f32 %v3454_v55, %v3395_v1 }
 0x1e4   : > { %v2046_v24 = vsel %vm1216_vm3, %v1995_v39, 0.0  ;;  %v2045_v62 = vadd.f32 %v2044_v38, %v2043_v47 }
 0x1e5   : > { %v1762_v45 = vpop.f32.mrf.mxu2  ;;  %v1780_v37 = vpop.f32.mrf.mxu3 }
 0x1e6   : > { %v1816_v18 = vadd.f32 %v1762_v45, %v1613_v60  ;;  %v1822_v54 = vadd.f32 %v1780_v37, %v1631_v35  ;;  %v1637_v35 = vadd.f32 %v3438_v33, %v3369_v51  ;;  %v1940_v60 = vadd.f32 %v1939_v0, %v1938_v63 }
 0x1e7   : > { %v1619_v45 = vadd.f32 %v1618_v19, %v1499_v25  ;;  %v2047_v40 = vadd.f32 %v2046_v24, %v2045_v62 }
 0x1e8   : > { %v1852_v28 = vadd.f32 %v3238_v4, %v1816_v18  ;;  %v3523_v5 = vadd.f32 %v3238_v4, %v1822_v54  ;;  %v1942_v57 = vadd.f32 %v1941_v6, %v1940_v60 }
 0x1ea   : > { %1884 = vst.msk [vmem:[%s3247_s20 + $0xa8] sm:$0xff] %vm1216_vm3, %v1852_v28  ;;  %v1996_v36 = vmul.f32 %v1852_v28, %v1852_v28  ;;  %v1943_v37 = vsel %vm1216_vm3, %v1852_v28, 0.0  ;;  %v1955_v8 = vsel %vm1216_vm3, %v3523_v5, 0.0 }
 0x1eb   : > { %1890 = vst.msk [vmem:[%s3247_s20 + $0xd8] sm:$0xff] %vm1216_vm3, %v3523_v5  ;;  %v1944_v50 = vadd.f32 %v1943_v37, %v1942_v57 }
 0x1ec   : > { %v2048_v44 = vsel %vm1216_vm3, %v1996_v36, 0.0 }
 0x1ed   : > { %v1765_v29 = vpop.f32.mrf.mxu2  ;;  %v1783_v48 = vpop.f32.mrf.mxu3  ;;  %v2049_v10 = vadd.f32 %v2048_v44, %v2047_v40 }
 0x1ee   : > { %v1817_v22 = vadd.f32 %v1765_v29, %v1616_v23  ;;  %v1823_v27 = vadd.f32 %v1783_v48, %v1634_v61  ;;  %v1949_v61 = vsel %vm1216_vm3, %v3468_v2, 0.0  ;;  %v1951_v29 = vsel %vm1216_vm3, %v3482_v11, 0.0 }
 0x1ef   : > { %v2058_v11 = vsel %vm1216_vm3, %v2001_v32, 0.0 }
 0x1f0   : > { %v1853_v9 = vadd.f32 %v3238_v4, %v1817_v22  ;;  %v3560_v17 = vadd.f32 %v3238_v4, %v1823_v27  ;;  %v2002_v22 = vmul.f32 %v3523_v5, %v3523_v5 }
 0x1f2   : > { %1885 = vst.msk [vmem:[%s3247_s20 + $0xb0] sm:$0xff] %vm1216_vm3, %v1853_v9  ;;  %v1997_v56 = vmul.f32 %v1853_v9, %v1853_v9  ;;  %v1945_v51 = vsel %vm1216_vm3, %v1853_v9, 0.0  ;;  %v2003_v0 = vmul.f32 %v3560_v17, %v3560_v17  ;;  %v2060_v31 = vsel %vm1216_vm3, %v2002_v22, 0.0 }
 0x1f3   : > { %1891 = vst.msk [vmem:[%s3247_s20 + $0xe0] sm:$0xff] %vm1216_vm3, %v3560_v17  ;;  %v1946_v21 = vadd.f32 %v1945_v51, %v1944_v50  ;;  %v1957_v63 = vsel %vm1216_vm3, %v3560_v17, 0.0 }
 0x1f4   : > { %v2050_v34 = vsel %vm1216_vm3, %v1997_v56, 0.0  ;;  %v2062_v36 = vsel %vm1216_vm3, %v2003_v0, 0.0 }
 0x1f5   : > { %v1768_v18 = vpop.f32.mrf.mxu2  ;;  %v1786_v54 = vpop.f32.mrf.mxu3  ;;  %v2051_v13 = vadd.f32 %v2050_v34, %v2049_v10 }
 0x1f6   : > { %v1818_v33 = vadd.f32 %v1768_v18, %v1619_v45  ;;  %v1824_v52 = vadd.f32 %v1786_v54, %v1637_v35 }
 0x1f8   : > { %v1854_v7 = vadd.f32 %v3238_v4, %v1818_v33  ;;  %v1860_v28 = vadd.f32 %v3238_v4, %v1824_v52 }
 0x1fa   : > { %1886 = vst.msk [vmem:[%s3247_s20 + $0xb8] sm:$0xff] %vm1216_vm3, %v1854_v7  ;;  %v1947_v46 = vsel %vm1216_vm3, %v1854_v7, 0.0  ;;  %v1998_v53 = vmul.f32 %v1854_v7, %v1854_v7  ;;  %v2004_v25 = vmul.f32 %v1860_v28, %v1860_v28  ;;  %v1959_v35 = vsel %vm1216_vm3, %v1860_v28, 0.0 }
 0x1fb   : > { %v1948_v3 = vadd.f32 %v1947_v46, %v1946_v21  ;;  %1892 = vst.msk [vmem:[%s3247_s20 + $0xe8] sm:$0xff] %vm1216_vm3, %v1860_v28  ;;  %v1901_v21 = vld [vmem:[%s3531_s22] sm:$0x1] }
 0x1fc   : > { %v2052_v59 = vsel %vm1216_vm3, %v1998_v53, 0.0  ;;  %v2064_v1 = vsel %vm1216_vm3, %v2004_v25, 0.0  ;;  %v1974_v53 = vld [vmem:[%s3531_s22 + $0x1] sm:$0x1] }
 0x1fd   : > { %v1950_v23 = vadd.f32 %v1949_v61, %v1948_v3  ;;  %v2053_v14 = vadd.f32 %v2052_v59, %v2051_v13  ;;  %v1789_v20 = vpop.f32.mrf.mxu3 }
 0x1fe   : > { %v1825_v41 = vadd.f32 %v1789_v20, %v1640_v58 }
 0x1ff   : > { %v1952_v48 = vadd.f32 %v1951_v29, %v1950_v23  ;;  %v2055_v2 = vadd.f32 %v2054_v42, %v2053_v14 }
 0x200   : > { %v1861_v27 = vadd.f32 %v3238_v4, %v1825_v41 }
 0x201   : > { %v2057_v43 = vadd.f32 %v2056_v30, %v2055_v2  ;;  %v1954_v26 = vadd.f32 %v1953_v16, %v1952_v48 }
 0x202   : > { %1893 = vst.msk [vmem:[%s3247_s20 + $0xf0] sm:$0xff] %vm1216_vm3, %v1861_v27  ;;  %v2005_v47 = vmul.f32 %v1861_v27, %v1861_v27  ;;  %v1961_v55 = vsel %vm1216_vm3, %v1861_v27, 0.0 }
 0x203   : > { %v1956_v39 = vadd.f32 %v1955_v8, %v1954_v26  ;;  %v2059_v9 = vadd.f32 %v2058_v11, %v2057_v43 }
 0x204   : > { %v2066_v56 = vsel %vm1216_vm3, %v2005_v47, 0.0 }
 0x205   : > { %v1958_v38 = vadd.f32 %v1957_v63, %v1956_v39  ;;  %v2061_v6 = vadd.f32 %v2060_v31, %v2059_v9  ;;  %v1792_v5 = vpop.f32.mrf.mxu3 }
 0x206   : > { %v1826_v19 = vadd.f32 %v1792_v5, %v1643_v15 }
 0x207   : > { %v1960_v60 = vadd.f32 %v1959_v35, %v1958_v38  ;;  %v2063_v24 = vadd.f32 %v2062_v36, %v2061_v6 }
 0x208   : > { %v1862_v45 = vadd.f32 %v3238_v4, %v1826_v19 }
 0x209   : > { %v2065_v17 = vadd.f32 %v2064_v1, %v2063_v24  ;;  %v1962_v37 = vadd.f32 %v1961_v55, %v1960_v60 }
 0x20a   : > { %1894 = vst.msk [vmem:[%s3247_s20 + $0xf8] sm:$0xff] %vm1216_vm3, %v1862_v45  ;;  %v1963_v62 = vsel %vm1216_vm3, %v1862_v45, 0.0  ;;  %v2006_v57 = vmul.f32 %v1862_v45, %v1862_v45 }
 0x20b   : > { %v2067_v18 = vadd.f32 %v2066_v56, %v2065_v17  ;;  %v1964_v54 = vadd.f32 %v1963_v62, %v1962_v37 }
 0x20c   : > { %v2068_v44 = vsel %vm1216_vm3, %v2006_v57, 0.0 }
 0x20d   : > { %v1965_v51 = vrot.slane %v1964_v54, 4  ;;  %v2069_v33 = vadd.f32 %v2068_v44, %v2067_v18 }
 0x20f   : > { %v1966_v52 = vadd.f32 %v1965_v51, %v1964_v54  ;;  %v2070_v4 = vrot.slane %v2069_v33, 4 }
 0x211   : > { %v1967_v40 = vrot.slane %v1966_v52, 2  ;;  %v2071_v50 = vadd.f32 %v2070_v4, %v2069_v33 }
 0x213   : > { %v1968_v34 = vadd.f32 %v1967_v40, %v1966_v52  ;;  %v2072_v7 = vrot.slane %v2071_v50, 2 }
 0x215   : > { %v1969_v28 = vrot.slane %v1968_v34, 1  ;;  %v2073_v10 = vadd.f32 %v2072_v7, %v2071_v50 }
 0x217   : > { %v1970_v12 = vadd.f32 %v1969_v28, %v1968_v34  ;;  %v2074_v46 = vrot.slane %v2073_v10, 1 }
 0x219   : > { %v1971_v13 = vadd.f32 %v1970_v12, %v1901_v21  ;;  %v2075_v3 = vadd.f32 %v2074_v46, %v2073_v10 }
 0x21b   : > { %1973 = vst.msk [vmem:[%s3531_s22] sm:$0x1] %vm1972_vm7, %v1971_v13  ;;  %v2076_v58 = vadd.f32 %v2075_v3, %v1974_v53 }
 0x21d   : > { %2077 = vst.msk [vmem:[%s3531_s22 + $0x1] sm:$0x1] %vm1972_vm7, %v2076_v58 }
 0x21e PF: > { %s19_s27 = sadd.s32 1, %s2435_s27   ;;  %s3647_s26 = smov %s2431_s2 }
 0x21f   : > { %p16_p5 = scmp.ge.s32.totalorder %s19_s27, 4   ;;  %s3648_s2 = smov %s3650_s28 }
 0x221   :  { %18 = sbr.rel (!%p16_p5) target bundleno = 2 (0x2), region = 100 }

</bundles_post_ra>
